<compile_context>
chip_gen: v6e
topology: v6e:2x2x1
jax: 0.10.0
libtpu: 0.0.40
codegen_flags: <defaults>
</compile_context>

<pallas_src>
import functools

import jax
import jax.numpy as jnp
from jax.experimental import pallas as pl
from jax.experimental.pallas import tpu as pltpu

DROPOUT_RATE = 0.2


def _round_up(n, m):
    return ((n + m - 1) // m) * m


def _mc_dropout_mlp_kernel(*refs, apply_dropout, threshold, keep_scale):
    """One batch tile of the fused 3-layer MLP (all activations stay in VMEM)."""
    if apply_dropout:
        (x_ref, bits1_ref, bits2_ref, w1_ref, b1_ref, w2_ref, b2_ref,
         w3_ref, b3_ref, o_ref) = refs
    else:
        (x_ref, w1_ref, b1_ref, w2_ref, b2_ref, w3_ref, b3_ref, o_ref) = refs

    def matmul(h, w_ref):
        # Cast only the MXU inputs (no-op for f32 weights); accumulate in f32.
        return jnp.dot(h.astype(w_ref.dtype), w_ref[...],
                       preferred_element_type=jnp.float32)

    def dropout(h, bits_ref):
        # Integer-domain decision: keep iff bits >= p * 2^32  (P(keep) = 1-p).
        keep = bits_ref[...] >= jnp.uint32(threshold)
        return jnp.where(keep, h * keep_scale, 0.0)

    # Layer 1: Linear + ReLU (+ Dropout)
    h = jnp.maximum(matmul(x_ref[...], w1_ref) + b1_ref[...], 0.0)
    if apply_dropout:
        h = dropout(h, bits1_ref)

    # Layer 2: Linear + ReLU (+ Dropout)
    h = jnp.maximum(matmul(h, w2_ref) + b2_ref[...], 0.0)
    if apply_dropout:
        h = dropout(h, bits2_ref)

    # Layer 3: Linear
    o_ref[...] = (matmul(h, w3_ref) + b3_ref[...]).astype(o_ref.dtype)


def mc_dropout_mlp(x, params, *, key=None, apply_dropout=True,
                   dropout_rate=DROPOUT_RATE, batch_tile=512,
                   matmul_dtype=jnp.float32):
    """MCDropoutMLP forward pass via a single batch-tiled pallas_call.

    x:      [B, input_dim] float32
    params: dict with w1 [in,512], b1 [512], w2 [512,256], b2 [256],
            w3 [256,out], b3 [out]
    """
    B, d_in = x.shape
    h1 = params["w1"].shape[1]
    h2 = params["w2"].shape[1]
    d_out = params["w3"].shape[1]

    # Lane-align every feature dim (300 -> 384; 512/256 unchanged).
    d_in_p = _round_up(d_in, 128)
    h1_p = _round_up(h1, 128)
    h2_p = _round_up(h2, 128)
    d_out_p = _round_up(d_out, 128)

    # Batch tile: multiple of 128 MXU rows, capped by the (padded) batch.
    tb = _round_up(min(int(batch_tile), _round_up(B, 128)), 128)
    b_pad = _round_up(B, tb)
    grid = (b_pad // tb,)

    f32 = jnp.float32
    x_p = jnp.pad(x.astype(f32),
                  ((0, b_pad - B), (0, d_in_p - d_in))).astype(matmul_dtype)
    w1 = jnp.pad(params["w1"].astype(f32),
                 ((0, d_in_p - d_in), (0, h1_p - h1))).astype(matmul_dtype)
    b1 = jnp.pad(params["b1"].astype(f32), ((0, h1_p - h1),)).reshape(1, h1_p)
    w2 = jnp.pad(params["w2"].astype(f32),
                 ((0, h1_p - h1), (0, h2_p - h2))).astype(matmul_dtype)
    b2 = jnp.pad(params["b2"].astype(f32), ((0, h2_p - h2),)).reshape(1, h2_p)
    w3 = jnp.pad(params["w3"].astype(f32),
                 ((0, h2_p - h2), (0, d_out_p - d_out))).astype(matmul_dtype)
    b3 = jnp.pad(params["b3"].astype(f32),
                 ((0, d_out_p - d_out),)).reshape(1, d_out_p)

    tile_map = lambda i: (i, 0)
    whole_map = lambda i: (0, 0)

    in_specs = [pl.BlockSpec((tb, d_in_p), tile_map)]
    args = [x_p]

    if apply_dropout:
        if key is None:
            key = jax.random.PRNGKey(0)
        k1, k2 = jax.random.split(key)
        # TODO(synk): switch to in-kernel pltpu.prng_random_bits (seeded with
        # seed + pl.program_id(0)) once the execution environment lowers the
        # TPU PRNG primitives; host-side bits are used here for portability.
        bits1 = jax.random.bits(k1, (b_pad, h1_p), dtype=jnp.uint32)
        bits2 = jax.random.bits(k2, (b_pad, h2_p), dtype=jnp.uint32)
        in_specs += [pl.BlockSpec((tb, h1_p), tile_map),
                     pl.BlockSpec((tb, h2_p), tile_map)]
        args += [bits1, bits2]

    for a in (w1, b1, w2, b2, w3, b3):
        in_specs.append(pl.BlockSpec(a.shape, whole_map))
        args.append(a)

    threshold = min(int(round(float(dropout_rate) * 2.0 ** 32)), 2 ** 32 - 1)
    keep_scale = 1.0 / (1.0 - float(dropout_rate))

    kernel = functools.partial(
        _mc_dropout_mlp_kernel,
        apply_dropout=bool(apply_dropout),
        threshold=threshold,
        keep_scale=keep_scale,
    )

    out = pl.pallas_call(
        kernel,
        grid=grid,
        out_shape=jax.ShapeDtypeStruct((b_pad, d_out_p), jnp.float32),
        in_specs=in_specs,
        out_specs=pl.BlockSpec((tb, d_out_p), tile_map),
        compiler_params=pltpu.CompilerParams(
            dimension_semantics=("parallel",)),
    )(*args)

    return out[:B, :d_out]


def _init_linear(key, fan_in, fan_out):
    """Deterministic init mirroring torch.nn.Linear's uniform(-1/sqrt(fan_in))."""
    kw, kb = jax.random.split(key)
    bound = 1.0 / jnp.sqrt(float(fan_in))
    w = jax.random.uniform(kw, (fan_in, fan_out), jnp.float32, -bound, bound)
    b = jax.random.uniform(kb, (fan_out,), jnp.float32, -bound, bound)
    return w, b


def init_params(key, input_dim=300, output_dim=300):
    k1, k2, k3 = jax.random.split(key, 3)
    w1, b1 = _init_linear(k1, input_dim, 512)
    w2, b2 = _init_linear(k2, 512, 256)
    w3, b3 = _init_linear(k3, 256, output_dim)
    return {"w1": w1, "b1": b1, "w2": w2, "b2": b2, "w3": w3, "b3": b3}


if __name__ == "__main__":
    key = jax.random.PRNGKey(0)
    k_params, k_x, k_drop = jax.random.split(key, 3)

    input_dim, output_dim = 300, 300
    batch, num_mc_samples = 32, 4

    params = init_params(k_params, input_dim, output_dim)
    x = jax.random.normal(k_x, (batch, input_dim), dtype=jnp.float32)

    # MC dropout: fold the independent stochastic forward passes into the batch
    # so each grid tile has >=128 MXU rows.
    x_mc = jnp.tile(x, (num_mc_samples, 1))                 # [S*B, in]
    y_mc = mc_dropout_mlp(x_mc, params, key=k_drop, apply_dropout=True)
    y_mc = y_mc.reshape(num_mc_samples, batch, output_dim)  # [S, B, out]
    jax.block_until_ready(y_mc)

    # Dropout-off path must match a plain MLP.
    y_nodrop = mc_dropout_mlp(x, params, apply_dropout=False)
    jax.block_until_ready(y_nodrop)

    def ref_nodrop(x, p):
        hp = jax.lax.Precision.HIGHEST
        h = jnp.maximum(jnp.dot(x, p["w1"], precision=hp) + p["b1"], 0.0)
        h = jnp.maximum(jnp.dot(h, p["w2"], precision=hp) + p["b2"], 0.0)
        return jnp.dot(h, p["w3"], precision=hp) + p["b3"]

    ref = ref_nodrop(x, params)

    assert y_mc.shape == (num_mc_samples, batch, output_dim)
    assert bool(jnp.all(jnp.isfinite(y_mc)))
    # Independent dropout masks => MC samples must differ.
    assert not bool(jnp.allclose(y_mc[0], y_mc[1]))
    max_err = float(jnp.max(jnp.abs(y_nodrop - ref)))
    assert max_err < 2e-2, f"no-dropout path mismatch: {max_err}"

    print("KERNEL_OK")
</pallas_src>

<mosaic_0001>
module attributes {stable_mosaic.version = 11 : i64} {
  func.func @_mc_dropout_mlp_kernel(%arg0: i32, %arg1: memref<128x384xf32, #tpu.memory_space<vmem>>, %arg2: memref<128x512xi32, #tpu.memory_space<vmem>>, %arg3: memref<128x256xi32, #tpu.memory_space<vmem>>, %arg4: memref<384x512xf32, #tpu.memory_space<vmem>>, %arg5: memref<1x512xf32, #tpu.memory_space<vmem>>, %arg6: memref<512x256xf32, #tpu.memory_space<vmem>>, %arg7: memref<1x256xf32, #tpu.memory_space<vmem>>, %arg8: memref<256x384xf32, #tpu.memory_space<vmem>>, %arg9: memref<1x384xf32, #tpu.memory_space<vmem>>, %arg10: memref<128x384xf32, #tpu.memory_space<vmem>>) attributes {dimension_semantics = [#tpu.dimension_semantics<parallel>], iteration_bounds = array<i64: 1>, scalar_prefetch = 0 : i64, scratch_operands = 0 : i64, tpu.core_type = #tpu.core_type<tc>, window_params = [{transform_indices = @transform_0, window_bounds = array<i64: 128, 384>}, {transform_indices = @transform_1, window_bounds = array<i64: 128, 512>}, {transform_indices = @transform_2, window_bounds = array<i64: 128, 256>}, {pipeline_mode = #tpu.pipeline_mode<synchronous>, transform_indices = @transform_3, window_bounds = array<i64: 384, 512>}, {pipeline_mode = #tpu.pipeline_mode<synchronous>, transform_indices = @transform_4, window_bounds = array<i64: 1, 512>}, {pipeline_mode = #tpu.pipeline_mode<synchronous>, transform_indices = @transform_5, window_bounds = array<i64: 512, 256>}, {pipeline_mode = #tpu.pipeline_mode<synchronous>, transform_indices = @transform_6, window_bounds = array<i64: 1, 256>}, {pipeline_mode = #tpu.pipeline_mode<synchronous>, transform_indices = @transform_7, window_bounds = array<i64: 256, 384>}, {pipeline_mode = #tpu.pipeline_mode<synchronous>, transform_indices = @transform_8, window_bounds = array<i64: 1, 384>}, {transform_indices = @transform_9, window_bounds = array<i64: 128, 384>}]} {
    %c0 = arith.constant 0 : index
    %c0_0 = arith.constant 0 : index
    %0 = vector.load %arg1[%c0, %c0_0] : memref<128x384xf32, #tpu.memory_space<vmem>>, vector<128x384xf32>
    %c0_1 = arith.constant 0 : index
    %c0_2 = arith.constant 0 : index
    %1 = vector.load %arg4[%c0_1, %c0_2] : memref<384x512xf32, #tpu.memory_space<vmem>>, vector<384x512xf32>
    %cst = arith.constant dense<0.000000e+00> : vector<128x512xf32>
    %2 = tpu.matmul %0, %1, %cst {dimension_numbers = #tpu.dot_dimension_numbers<[1], [0], [0], [1], [0, 0, 1, 1], [], []>} : vector<128x384xf32>, vector<384x512xf32>, vector<128x512xf32> -> vector<128x512xf32>
    %c0_3 = arith.constant 0 : index
    %c0_4 = arith.constant 0 : index
    %3 = vector.load %arg5[%c0_3, %c0_4] : memref<1x512xf32, #tpu.memory_space<vmem>>, vector<1x512xf32>
    %4 = vector.broadcast %3 : vector<1x512xf32> to vector<128x512xf32>
    %5 = arith.addf %2, %4 : vector<128x512xf32>
    %cst_5 = arith.constant 0.000000e+00 : f32
    %6 = vector.broadcast %cst_5 : f32 to vector<128x512xf32>
    %7 = arith.maximumf %5, %6 : vector<128x512xf32>
    %c0_6 = arith.constant 0 : index
    %c0_7 = arith.constant 0 : index
    %8 = vector.load %arg2[%c0_6, %c0_7] : memref<128x512xi32, #tpu.memory_space<vmem>>, vector<128x512xi32>
    %c858993459_i32 = arith.constant 858993459 : i32
    %9 = vector.broadcast %c858993459_i32 : i32 to vector<128x512xi32>
    %10 = arith.cmpi uge, %8, %9 : vector<128x512xi32>
    %cst_8 = arith.constant 1.250000e+00 : f32
    %11 = vector.broadcast %cst_8 : f32 to vector<128x512xf32>
    %12 = arith.mulf %7, %11 : vector<128x512xf32>
    %cst_9 = arith.constant 0.000000e+00 : f32
    %13 = vector.broadcast %cst_9 : f32 to vector<128x512xf32>
    %14 = arith.select %10, %12, %13 : vector<128x512xi1>, vector<128x512xf32>
    %c0_10 = arith.constant 0 : index
    %c0_11 = arith.constant 0 : index
    %15 = vector.load %arg6[%c0_10, %c0_11] : memref<512x256xf32, #tpu.memory_space<vmem>>, vector<512x256xf32>
    %cst_12 = arith.constant dense<0.000000e+00> : vector<128x256xf32>
    %16 = tpu.matmul %14, %15, %cst_12 {dimension_numbers = #tpu.dot_dimension_numbers<[1], [0], [0], [1], [0, 0, 1, 1], [], []>} : vector<128x512xf32>, vector<512x256xf32>, vector<128x256xf32> -> vector<128x256xf32>
    %c0_13 = arith.constant 0 : index
    %c0_14 = arith.constant 0 : index
    %17 = vector.load %arg7[%c0_13, %c0_14] : memref<1x256xf32, #tpu.memory_space<vmem>>, vector<1x256xf32>
    %18 = vector.broadcast %17 : vector<1x256xf32> to vector<128x256xf32>
    %19 = arith.addf %16, %18 : vector<128x256xf32>
    %cst_15 = arith.constant 0.000000e+00 : f32
    %20 = vector.broadcast %cst_15 : f32 to vector<128x256xf32>
    %21 = arith.maximumf %19, %20 : vector<128x256xf32>
    %c0_16 = arith.constant 0 : index
    %c0_17 = arith.constant 0 : index
    %22 = vector.load %arg3[%c0_16, %c0_17] : memref<128x256xi32, #tpu.memory_space<vmem>>, vector<128x256xi32>
    %c858993459_i32_18 = arith.constant 858993459 : i32
    %23 = vector.broadcast %c858993459_i32_18 : i32 to vector<128x256xi32>
    %24 = arith.cmpi uge, %22, %23 : vector<128x256xi32>
    %cst_19 = arith.constant 1.250000e+00 : f32
    %25 = vector.broadcast %cst_19 : f32 to vector<128x256xf32>
    %26 = arith.mulf %21, %25 : vector<128x256xf32>
    %cst_20 = arith.constant 0.000000e+00 : f32
    %27 = vector.broadcast %cst_20 : f32 to vector<128x256xf32>
    %28 = arith.select %24, %26, %27 : vector<128x256xi1>, vector<128x256xf32>
    %c0_21 = arith.constant 0 : index
    %c0_22 = arith.constant 0 : index
    %29 = vector.load %arg8[%c0_21, %c0_22] : memref<256x384xf32, #tpu.memory_space<vmem>>, vector<256x384xf32>
    %cst_23 = arith.constant dense<0.000000e+00> : vector<128x384xf32>
    %30 = tpu.matmul %28, %29, %cst_23 {dimension_numbers = #tpu.dot_dimension_numbers<[1], [0], [0], [1], [0, 0, 1, 1], [], []>} : vector<128x256xf32>, vector<256x384xf32>, vector<128x384xf32> -> vector<128x384xf32>
    %c0_24 = arith.constant 0 : index
    %c0_25 = arith.constant 0 : index
    %31 = vector.load %arg9[%c0_24, %c0_25] : memref<1x384xf32, #tpu.memory_space<vmem>>, vector<1x384xf32>
    %32 = vector.broadcast %31 : vector<1x384xf32> to vector<128x384xf32>
    %33 = arith.addf %30, %32 : vector<128x384xf32>
    %c0_26 = arith.constant 0 : index
    %c0_27 = arith.constant 0 : index
    %34 = vector.load %arg10[%c0_26, %c0_27] : memref<128x384xf32, #tpu.memory_space<vmem>>, vector<128x384xf32>
    tpu.vector_store %arg10[%c0_26, %c0_27], %33 {strides = array<i32>} : memref<128x384xf32, #tpu.memory_space<vmem>>, vector<128x384xf32>,
    return
  }
  func.func @transform_0(%arg0: i32) -> (i32, i32) {
    %c0_i32 = arith.constant 0 : i32
    %c0_i32_0 = arith.constant 0 : i32
    return %arg0, %c0_i32 : i32, i32
  }
  func.func @transform_1(%arg0: i32) -> (i32, i32) {
    %c0_i32 = arith.constant 0 : i32
    %c0_i32_0 = arith.constant 0 : i32
    return %arg0, %c0_i32 : i32, i32
  }
  func.func @transform_2(%arg0: i32) -> (i32, i32) {
    %c0_i32 = arith.constant 0 : i32
    %c0_i32_0 = arith.constant 0 : i32
    return %arg0, %c0_i32 : i32, i32
  }
  func.func @transform_3(%arg0: i32) -> (i32, i32) {
    %c0_i32 = arith.constant 0 : i32
    %c0_i32_0 = arith.constant 0 : i32
    %c0_i32_1 = arith.constant 0 : i32
    return %c0_i32, %c0_i32_0 : i32, i32
  }
  func.func @transform_4(%arg0: i32) -> (i32, i32) {
    %c0_i32 = arith.constant 0 : i32
    %c0_i32_0 = arith.constant 0 : i32
    %c0_i32_1 = arith.constant 0 : i32
    return %c0_i32, %c0_i32_0 : i32, i32
  }
  func.func @transform_5(%arg0: i32) -> (i32, i32) {
    %c0_i32 = arith.constant 0 : i32
    %c0_i32_0 = arith.constant 0 : i32
    %c0_i32_1 = arith.constant 0 : i32
    return %c0_i32, %c0_i32_0 : i32, i32
  }
  func.func @transform_6(%arg0: i32) -> (i32, i32) {
    %c0_i32 = arith.constant 0 : i32
    %c0_i32_0 = arith.constant 0 : i32
    %c0_i32_1 = arith.constant 0 : i32
    return %c0_i32, %c0_i32_0 : i32, i32
  }
  func.func @transform_7(%arg0: i32) -> (i32, i32) {
    %c0_i32 = arith.constant 0 : i32
    %c0_i32_0 = arith.constant 0 : i32
    %c0_i32_1 = arith.constant 0 : i32
    return %c0_i32, %c0_i32_0 : i32, i32
  }
  func.func @transform_8(%arg0: i32) -> (i32, i32) {
    %c0_i32 = arith.constant 0 : i32
    %c0_i32_0 = arith.constant 0 : i32
    %c0_i32_1 = arith.constant 0 : i32
    return %c0_i32, %c0_i32_0 : i32, i32
  }
  func.func @transform_9(%arg0: i32) -> (i32, i32) {
    %c0_i32 = arith.constant 0 : i32
    %c0_i32_0 = arith.constant 0 : i32
    return %arg0, %c0_i32 : i32, i32
  }
}

</mosaic_0001>

<bundles_post_ra>
// kernel: tpu_custom_call.1
= control target key start
LH: loop header
LB: loop body
LE: loop exit
PB: predicated region body
PF: predicated region fallthrough
CT: control target
= control target key end

     0   :  { %14 = vsyncpa [#allocation3], 0  ;;  %s3625_s0 = inlined_call_operand.hbm [shape: f32[128,384], index: 0, kind: input, shape index: {}]   ;;  %s3626_s1 = inlined_call_operand.hbm [shape: u32[128,512], index: 1, kind: input, shape index: {}]   ;;  %s3627_s2 = inlined_call_operand.hbm [shape: u32[128,256], index: 2, kind: input, shape index: {}]   ;;  %s3628_s3 = inlined_call_operand.hbm [shape: f32[384,512], index: 3, kind: input, shape index: {}]   ;;  %s3629_s4 = inlined_call_operand.vmem [shape: f32[1,512], index: 4, kind: input, shape index: {}]   ;;  %s3630_s5 = inlined_call_operand.hbm [shape: f32[512,256], index: 5, kind: input, shape index: {}]   ;;  %s3631_s6 = inlined_call_operand.vmem [shape: f32[1,256], index: 6, kind: input, shape index: {}]   ;;  %s3632_s7 = inlined_call_operand.hbm [shape: f32[256,384], index: 7, kind: input, shape index: {}]   ;;  %s3633_s8 = inlined_call_operand.vmem [shape: f32[1,384], index: 8, kind: input, shape index: {}]   ;;  %s3634_s9 = inlined_call_operand.hbm [shape: f32[128,384], index: 9, kind: output, shape index: {}]  }
   0x1   :  { %15 = vsyncpa [#allocation6], 0 }
   0x2   :  { %16 = vsyncpa [#allocation9], 0 }
   0x3   :  { %17 = vsyncpa [#allocation12], 0 }
   0x4   :  { %18 = vsyncpa [#allocation4], 0  ;;  %s2854_s30 = smov [#allocation5]  }
   0x5   :  { %s36_s10 = sshll.u32 %s2854_s30, 4  ;;  %s37_s10 = int_to_ptr.vmem [resolvable:$true] %s36_s10 }
   0x6   :  { %s2712_s11 = scalar_lea.vmem %s37_s10, 8192  ;;  %p2717_p1 = scmp.lt.s32.totalorder %s37_s10, %s37_s10 }
   0x7   :  { %p2713_p0 = scmp.ne.s32.totalorder %s37_s10, %s2712_s11  ;;  %p2718_p2 = scmp.lt.s32.totalorder %s2712_s11, %s2712_s11 }
   0x9   :  { %p2719_p3 = por %p2718_p2, %p2717_p1 }
   0xb   :  { %p2720_p4 = pnand %p2719_p3, %p2713_p0 }
   0xd   :  { %2723 = shalt.err (!%p2720_p4)
}
   0xe   :  { %s2855_s12 = smov 512   ;;  %s2856_s13 = smov 32  }
   0xf   :  { %42 = dma.hbm_to_vmem [thread:$0]  %s3626_s1, 8192, %s37_s10, [#allocation6], %s2855_s12, %s2855_s12, %s2856_s13  }
  0x10   :  { %s2857_s16 = smov [#allocation8]   ;;  %s2858_s18 = smov [#allocation2]  }
  0x11   :  { %s60_s17 = sshll.u32 %s2857_s16, 4  ;;  %s24_s19 = sshll.u32 %s2858_s18, 4  ;;  %s61_s17 = int_to_ptr.vmem [resolvable:$true] %s60_s17  ;;  %s25_s19 = int_to_ptr.vmem [resolvable:$true] %s24_s19 }
  0x12   :  { %s2732_s20 = scalar_lea.vmem %s61_s17, 24576  ;;  %p2737_p6 = scmp.lt.s32.totalorder %s61_s17, %s61_s17 }
  0x13   :  { %p2733_p5 = scmp.ne.s32.totalorder %s61_s17, %s2732_s20  ;;  %p2738_p7 = scmp.lt.s32.totalorder %s2732_s20, %s2732_s20 }
  0x15   :  { %p2739_p8 = por %p2738_p7, %p2737_p6 }
  0x17   :  { %p2740_p9 = pnand %p2739_p8, %p2733_p5 }
  0x19   :  { %2743 = shalt.err (!%p2740_p9)
}
  0x1a   :  { %66 = dma.hbm_to_vmem [thread:$0]  %s3628_s3, 24576, %s61_s17, [#allocation9], %s2855_s12, %s2855_s12, %s2856_s13  }
  0x1b   :  { %s2752_s23 = scalar_lea.vmem %s25_s19, 6144  ;;  %p2757_p11 = scmp.lt.s32.totalorder %s25_s19, %s25_s19 }
  0x1c   :  { %p2753_p10 = scmp.ne.s32.totalorder %s25_s19, %s2752_s23  ;;  %p2758_p12 = scmp.lt.s32.totalorder %s2752_s23, %s2752_s23 }
  0x1e   :  { %p2759_p13 = por %p2758_p12, %p2757_p11 }
  0x20   :  { %p2760_p0 = pnand %p2759_p13, %p2753_p10 }
  0x22   :  { %2763 = shalt.err (!%p2760_p0)
}
  0x23   :  { %s2859_s1 = smov 384   ;;  %s2860_s24 = smov 24  }
  0x24   :  { %30 = dma.hbm_to_vmem [thread:$0]  %s3625_s0, 6144, %s25_s19, [#allocation3], %s2859_s1, %s2859_s1, %s2860_s24  }
  0x25   :  { %s2861_s27 = smov [#allocation7]  }
  0x26   :  { %s48_s28 = sshll.u32 %s2861_s27, 4  ;;  %s49_s28 = int_to_ptr.vmem [resolvable:$true] %s48_s28 }
  0x27   :  { %s2772_s3 = scalar_lea.vmem %s49_s28, 4096  ;;  %p2777_p2 = scmp.lt.s32.totalorder %s49_s28, %s49_s28 }
  0x28   :  { %p2773_p1 = scmp.ne.s32.totalorder %s49_s28, %s2772_s3  ;;  %p2778_p3 = scmp.lt.s32.totalorder %s2772_s3, %s2772_s3 }
  0x2a   :  { %p2779_p4 = por %p2778_p3, %p2777_p2 }
  0x2c   :  { %p2780_p5 = pnand %p2779_p4, %p2773_p1 }
  0x2e   :  { %2783 = shalt.err (!%p2780_p5)
}
  0x2f   :  { %s2862_s29 = smov 256   ;;  %s2863_s30 = smov 16  }
  0x30   :  { %54 = dma.hbm_to_vmem [thread:$0]  %s3627_s2, 4096, %s49_s28, [#allocation6], %s2862_s29, %s2862_s29, %s2863_s30  }
  0x31   :  { %s2864_s12 = smov [#allocation10]   ;;  %s2865_s14 = smov [#allocation11]  }
  0x32   :  { %s74_s13 = sshll.u32 %s2864_s12, 4  ;;  %s88_s0 = sshll.u32 %s2865_s14, 4  ;;  %s75_s13 = int_to_ptr.vmem [resolvable:$true] %s74_s13  ;;  %s89_s0 = int_to_ptr.vmem [resolvable:$true] %s88_s0 }
  0x33   :  { %s2792_s15 = scalar_lea.vmem %s75_s13, 16384  ;;  %p2797_p7 = scmp.lt.s32.totalorder %s75_s13, %s75_s13 }
  0x34   :  { %p2793_p6 = scmp.ne.s32.totalorder %s75_s13, %s2792_s15  ;;  %p2798_p8 = scmp.lt.s32.totalorder %s2792_s15, %s2792_s15 }
  0x36   :  { %p2799_p9 = por %p2798_p8, %p2797_p7 }
  0x38   :  { %p2800_p10 = pnand %p2799_p9, %p2793_p6 }
  0x3a   :  { %2803 = shalt.err (!%p2800_p10)
}
  0x3b   :  { %80 = dma.hbm_to_vmem [thread:$0]  %s3630_s5, 16384, %s75_s13, [#allocation9], %s2862_s29, %s2862_s29, %s2863_s30  }
  0x3c   :  { %s2812_s18 = scalar_lea.vmem %s89_s0, 12288  ;;  %p2817_p12 = scmp.lt.s32.totalorder %s89_s0, %s89_s0 }
  0x3d   :  { %p2813_p11 = scmp.ne.s32.totalorder %s89_s0, %s2812_s18  ;;  %p2818_p13 = scmp.lt.s32.totalorder %s2812_s18, %s2812_s18 }
  0x3f   :  { %p2819_p0 = por %p2818_p13, %p2817_p12 }
  0x41   :  { %p2820_p1 = pnand %p2819_p0, %p2813_p11 }
  0x43   :  { %2823 = shalt.err (!%p2820_p1)
}
  0x44   :  { %94 = dma.hbm_to_vmem [thread:$0]  %s3632_s7, 12288, %s89_s0, [#allocation12], %s2859_s1, %s2859_s1, %s2860_s24  }
  0x45   :  { %2844 = dma.done.wait [#allocation3], 6144  }
  0x46   :  { %2845 = vsyncadd [#allocation3], 4294961152 }
  0x47   :  { %2846 = dma.done.wait [#allocation6], 12288  }
  0x48   :  { %2847 = vsyncadd [#allocation6], 4294955008 }
  0x49   :  { %2848 = dma.done.wait [#allocation9], 40960  }
  0x4a   :  { %2849 = vsyncadd [#allocation9], 4294926336 }
  0x4b   :  { %2850 = dma.done.wait [#allocation12], 12288  }
  0x4c   :  { %2851 = vsyncadd [#allocation12], 4294955008  ;;  %v2866_v0 = vmov 0.0   ;;  %v224_v1 = vld [vmem:[#allocation8 + $0x1e8] sm:$0xff]  ;;  %v223_v2 = vld [vmem:[#allocation8 + $0x1e0] sm:$0xff] }
  0x4d   :  { %602 = vmatprep.mubr.f32.mxu1 %v2866_v0  ;;  %v220_v3 = vld [vmem:[#allocation8 + $0x1c8] sm:$0xff]  ;;  %377 = vmatprep.subr.mxu0 %v224_v1  ;;  %v219_v4 = vld [vmem:[#allocation8 + $0x1c0] sm:$0xff] }
  0x4e   :  { %378 = vmatpush1.msra.mxu0 %v223_v2  ;;  %v216_v5 = vld [vmem:[#allocation8 + $0x1a8] sm:$0xff]  ;;  %v215_v6 = vld [vmem:[#allocation8 + $0x1a0] sm:$0xff] }
  0x4f   :  { %379 = vmatprep.subr.mxu0 %v220_v3  ;;  %v212_v7 = vld [vmem:[#allocation8 + $0x188] sm:$0xff]  ;;  %v211_v8 = vld [vmem:[#allocation8 + $0x180] sm:$0xff] }
  0x50   :  { %380 = vmatpush1.msra.mxu0 %v219_v4  ;;  %v208_v9 = vld [vmem:[#allocation8 + $0x168] sm:$0xff]  ;;  %v207_v10 = vld [vmem:[#allocation8 + $0x160] sm:$0xff] }
  0x51   :  { %381 = vmatprep.subr.mxu0 %v216_v5  ;;  %v204_v11 = vld [vmem:[#allocation8 + $0x148] sm:$0xff]  ;;  %v203_v12 = vld [vmem:[#allocation8 + $0x140] sm:$0xff] }
  0x52   :  { %382 = vmatpush1.msra.mxu0 %v215_v6  ;;  %v200_v13 = vld [vmem:[#allocation8 + $0x128] sm:$0xff]  ;;  %v351_v15 = vld [vmem:[#allocation8 + $0x5e0] sm:$0xff] }
  0x53   :  { %383 = vmatprep.subr.mxu0 %v212_v7  ;;  %v352_v14 = vld [vmem:[#allocation8 + $0x5e8] sm:$0xff]  ;;  %v199_v16 = vld [vmem:[#allocation8 + $0x120] sm:$0xff] }
  0x54   :  { %384 = vmatpush1.msra.mxu0 %v211_v8  ;;  %538 = vmatprep.subr.mxu1 %v352_v14  ;;  %v348_v17 = vld [vmem:[#allocation8 + $0x5c8] sm:$0xff]  ;;  %v347_v19 = vld [vmem:[#allocation8 + $0x5c0] sm:$0xff] }
  0x55   :  { %385 = vmatprep.subr.mxu0 %v208_v9  ;;  %v196_v18 = vld [vmem:[#allocation8 + $0x108] sm:$0xff]  ;;  %539 = vmatpush1.msra.mxu1 %v351_v15  ;;  %v195_v21 = vld [vmem:[#allocation8 + $0x100] sm:$0xff]  ;;  %v226_v15 = vld [vmem:[#allocation8 + $0x1f8] sm:$0xff] }
  0x56   :  { %386 = vmatpush1.msra.mxu0 %v207_v10  ;;  %v344_v20 = vld [vmem:[#allocation8 + $0x5a8] sm:$0xff]  ;;  %540 = vmatprep.subr.mxu1 %v348_v17  ;;  %v343_v22 = vld [vmem:[#allocation8 + $0x5a0] sm:$0xff]  ;;  %v225_v17 = vld [vmem:[#allocation8 + $0x1f0] sm:$0xff] }
  0x57   :  { %387 = vmatprep.subr.mxu0 %v204_v11  ;;  %v192_v23 = vld [vmem:[#allocation8 + $0xe8] sm:$0xff]  ;;  %541 = vmatpush1.msra.mxu1 %v347_v19  ;;  %v191_v25 = vld [vmem:[#allocation8 + $0xe0] sm:$0xff] }
  0x58   :  { %388 = vmatpush1.msra.mxu0 %v203_v12  ;;  %v340_v24 = vld [vmem:[#allocation8 + $0x588] sm:$0xff]  ;;  %542 = vmatprep.subr.mxu1 %v344_v20  ;;  %v339_v26 = vld [vmem:[#allocation8 + $0x580] sm:$0xff] }
  0x59   :  { %389 = vmatprep.subr.mxu0 %v200_v13  ;;  %v188_v27 = vld [vmem:[#allocation8 + $0xc8] sm:$0xff]  ;;  %543 = vmatpush1.msra.mxu1 %v343_v22  ;;  %v187_v29 = vld [vmem:[#allocation8 + $0xc0] sm:$0xff]  ;;  %v2943_v13 = vld [vmem:[#allocation2 + $0x10] sm:$0xff] }
  0x5a   :  { %390 = vmatpush1.msra.mxu0 %v199_v16  ;;  %v336_v28 = vld [vmem:[#allocation8 + $0x568] sm:$0xff]  ;;  %544 = vmatprep.subr.mxu1 %v340_v24  ;;  %v335_v30 = vld [vmem:[#allocation8 + $0x560] sm:$0xff]  ;;  %v221_v24 = vld [vmem:[#allocation8 + $0x1d0] sm:$0xff] }
  0x5b   :  { %391 = vmatprep.subr.mxu0 %v196_v18  ;;  %v184_v31 = vld [vmem:[#allocation8 + $0xa8] sm:$0xff]  ;;  %545 = vmatpush1.msra.mxu1 %v339_v26  ;;  %v183_v33 = vld [vmem:[#allocation8 + $0xa0] sm:$0xff] }
  0x5c   :  { %392 = vmatpush1.msra.mxu0 %v195_v21  ;;  %v332_v32 = vld [vmem:[#allocation8 + $0x548] sm:$0xff]  ;;  %546 = vmatprep.subr.mxu1 %v336_v28  ;;  %v331_v34 = vld [vmem:[#allocation8 + $0x540] sm:$0xff]  ;;  %v222_v21 = vld [vmem:[#allocation8 + $0x1d8] sm:$0xff] }
  0x5d   :  { %393 = vmatprep.subr.mxu0 %v192_v23  ;;  %v180_v35 = vld [vmem:[#allocation8 + $0x88] sm:$0xff]  ;;  %547 = vmatpush1.msra.mxu1 %v335_v30  ;;  %v179_v37 = vld [vmem:[#allocation8 + $0x80] sm:$0xff]  ;;  %v218_v28 = vld [vmem:[#allocation8 + $0x1b8] sm:$0xff] }
  0x5e   :  { %394 = vmatpush1.msra.mxu0 %v191_v25  ;;  %v328_v36 = vld [vmem:[#allocation8 + $0x528] sm:$0xff]  ;;  %548 = vmatprep.subr.mxu1 %v332_v32  ;;  %v327_v38 = vld [vmem:[#allocation8 + $0x520] sm:$0xff]  ;;  %v217_v30 = vld [vmem:[#allocation8 + $0x1b0] sm:$0xff] }
  0x5f   :  { %395 = vmatprep.subr.mxu0 %v188_v27  ;;  %v176_v39 = vld [vmem:[#allocation8 + $0x68] sm:$0xff]  ;;  %549 = vmatpush1.msra.mxu1 %v331_v34  ;;  %v175_v41 = vld [vmem:[#allocation8 + $0x60] sm:$0xff]  ;;  %v214_v32 = vld [vmem:[#allocation8 + $0x198] sm:$0xff] }
  0x60   :  { %396 = vmatpush1.msra.mxu0 %v187_v29  ;;  %v324_v40 = vld [vmem:[#allocation8 + $0x508] sm:$0xff]  ;;  %550 = vmatprep.subr.mxu1 %v328_v36  ;;  %v323_v42 = vld [vmem:[#allocation8 + $0x500] sm:$0xff] }
  0x61   :  { %397 = vmatprep.subr.mxu0 %v184_v31  ;;  %v172_v43 = vld [vmem:[#allocation8 + $0x48] sm:$0xff]  ;;  %551 = vmatpush1.msra.mxu1 %v327_v38  ;;  %v171_v45 = vld [vmem:[#allocation8 + $0x40] sm:$0xff] }
  0x62   :  { %398 = vmatpush1.msra.mxu0 %v183_v33  ;;  %v320_v44 = vld [vmem:[#allocation8 + $0x4e8] sm:$0xff]  ;;  %552 = vmatprep.subr.mxu1 %v324_v40  ;;  %v319_v46 = vld [vmem:[#allocation8 + $0x4e0] sm:$0xff] }
  0x63   :  { %399 = vmatprep.subr.mxu0 %v180_v35  ;;  %v168_v47 = vld [vmem:[#allocation8 + $0x28] sm:$0xff]  ;;  %553 = vmatpush1.msra.mxu1 %v323_v42  ;;  %v167_v49 = vld [vmem:[#allocation8 + $0x20] sm:$0xff]  ;;  %v213_v35 = vld [vmem:[#allocation8 + $0x190] sm:$0xff] }
  0x64   :  { %400 = vmatpush1.msra.mxu0 %v179_v37  ;;  %v316_v48 = vld [vmem:[#allocation8 + $0x4c8] sm:$0xff]  ;;  %554 = vmatprep.subr.mxu1 %v320_v44  ;;  %v315_v50 = vld [vmem:[#allocation8 + $0x4c0] sm:$0xff] }
  0x65   :  { %401 = vmatprep.subr.mxu0 %v176_v39  ;;  %v164_v51 = vld [vmem:[#allocation8 + $0x8] sm:$0xff]  ;;  %555 = vmatpush1.msra.mxu1 %v319_v46  ;;  %v163_v53 = vld [vmem:[#allocation8] sm:$0xff]  ;;  %v210_v39 = vld [vmem:[#allocation8 + $0x178] sm:$0xff] }
  0x66   :  { %402 = vmatpush1.msra.mxu0 %v175_v41  ;;  %v312_v52 = vld [vmem:[#allocation8 + $0x4a8] sm:$0xff]  ;;  %556 = vmatprep.subr.mxu1 %v316_v48  ;;  %v311_v54 = vld [vmem:[#allocation8 + $0x4a0] sm:$0xff]  ;;  %v209_v41 = vld [vmem:[#allocation8 + $0x170] sm:$0xff] }
  0x67   :  { %403 = vmatprep.subr.mxu0 %v172_v43  ;;  %v288_v55 = vld [vmem:[#allocation8 + $0x3e8] sm:$0xff]  ;;  %557 = vmatpush1.msra.mxu1 %v315_v50  ;;  %v287_v57 = vld [vmem:[#allocation8 + $0x3e0] sm:$0xff]  ;;  %v206_v43 = vld [vmem:[#allocation8 + $0x158] sm:$0xff] }
  0x68   :  { %404 = vmatpush1.msra.mxu0 %v171_v45  ;;  %v308_v56 = vld [vmem:[#allocation8 + $0x488] sm:$0xff]  ;;  %558 = vmatprep.subr.mxu1 %v312_v52  ;;  %v307_v58 = vld [vmem:[#allocation8 + $0x480] sm:$0xff]  ;;  %v205_v46 = vld [vmem:[#allocation8 + $0x150] sm:$0xff] }
  0x69   :  { %405 = vmatprep.subr.mxu0 %v168_v47  ;;  %v284_v59 = vld [vmem:[#allocation8 + $0x3c8] sm:$0xff]  ;;  %559 = vmatpush1.msra.mxu1 %v311_v54  ;;  %v283_v61 = vld [vmem:[#allocation8 + $0x3c0] sm:$0xff]  ;;  %v2957_v48 = vld [vmem:[#allocation2 + $0x58] sm:$0xff] }
  0x6a   :  { %406 = vmatpush1.msra.mxu0 %v167_v49  ;;  %v304_v60 = vld [vmem:[#allocation8 + $0x468] sm:$0xff]  ;;  %560 = vmatprep.subr.mxu1 %v308_v56  ;;  %v303_v62 = vld [vmem:[#allocation8 + $0x460] sm:$0xff]  ;;  %v202_v50 = vld [vmem:[#allocation8 + $0x138] sm:$0xff] }
  0x6b   :  { %407 = vmatprep.subr.mxu0 %v164_v51  ;;  %v280_v63 = vld [vmem:[#allocation8 + $0x3a8] sm:$0xff]  ;;  %561 = vmatpush1.msra.mxu1 %v307_v58  ;;  %v279_v2 = vld [vmem:[#allocation8 + $0x3a0] sm:$0xff]  ;;  %v201_v52 = vld [vmem:[#allocation8 + $0x130] sm:$0xff] }
  0x6c   :  { %408 = vmatpush1.msra.mxu0 %v163_v53  ;;  %v300_v1 = vld [vmem:[#allocation8 + $0x448] sm:$0xff]  ;;  %562 = vmatprep.subr.mxu1 %v304_v60  ;;  %v299_v3 = vld [vmem:[#allocation8 + $0x440] sm:$0xff]  ;;  %v354_v54 = vld [vmem:[#allocation8 + $0x5f8] sm:$0xff] }
  0x6d   :  { %409 = vmatprep.subr.mxu0 %v288_v55  ;;  %v276_v4 = vld [vmem:[#allocation8 + $0x388] sm:$0xff]  ;;  %563 = vmatpush1.msra.mxu1 %v303_v62  ;;  %v275_v6 = vld [vmem:[#allocation8 + $0x380] sm:$0xff]  ;;  %v353_v55 = vld [vmem:[#allocation8 + $0x5f0] sm:$0xff] }
  0x6e   :  { %410 = vmatpush2.msra.mxu0 %v287_v57  ;;  %v296_v5 = vld [vmem:[#allocation8 + $0x428] sm:$0xff]  ;;  %564 = vmatprep.subr.mxu1 %v300_v1  ;;  %v295_v7 = vld [vmem:[#allocation8 + $0x420] sm:$0xff]  ;;  %v350_v57 = vld [vmem:[#allocation8 + $0x5d8] sm:$0xff] }
  0x6f   :  { %411 = vmatprep.subr.mxu0 %v284_v59  ;;  %v272_v8 = vld [vmem:[#allocation8 + $0x368] sm:$0xff]  ;;  %565 = vmatpush1.msra.mxu1 %v299_v3  ;;  %v271_v10 = vld [vmem:[#allocation8 + $0x360] sm:$0xff]  ;;  %v198_v58 = vld [vmem:[#allocation8 + $0x118] sm:$0xff] }
  0x70   :  { %412 = vmatpush2.msra.mxu0 %v283_v61  ;;  %v292_v9 = vld [vmem:[#allocation8 + $0x408] sm:$0xff]  ;;  %566 = vmatprep.subr.mxu1 %v296_v5  ;;  %v291_v11 = vld [vmem:[#allocation8 + $0x400] sm:$0xff]  ;;  %v349_v59 = vld [vmem:[#allocation8 + $0x5d0] sm:$0xff] }
  0x71   :  { %413 = vmatprep.subr.mxu0 %v280_v63  ;;  %v268_v12 = vld [vmem:[#allocation8 + $0x348] sm:$0xff]  ;;  %567 = vmatpush1.msra.mxu1 %v295_v7  ;;  %v267_v14 = vld [vmem:[#allocation8 + $0x340] sm:$0xff]  ;;  %v2967_v60 = vld [vmem:[#allocation2 + $0x18] sm:$0xff] }
  0x72   :  { %414 = vmatpush2.msra.mxu0 %v279_v2  ;;  %568 = vmatprep.subr.mxu1 %v292_v9  ;;  %v264_v16 = vld [vmem:[#allocation8 + $0x328] sm:$0xff]  ;;  %v263_v18 = vld [vmem:[#allocation8 + $0x320] sm:$0xff]  ;;  %v346_v61 = vld [vmem:[#allocation8 + $0x5b8] sm:$0xff] }
  0x73   :  { %415 = vmatprep.subr.mxu0 %v276_v4  ;;  %569 = vmatpush1.msra.mxu1 %v291_v11  ;;  %v2946_v19 = vld [vmem:[#allocation2 + $0x8] sm:$0xff]  ;;  %v259_v22 = vld [vmem:[#allocation8 + $0x300] sm:$0xff]  ;;  %v2969_v62 = vld [vmem:[#allocation2 + $0x38] sm:$0xff] }
  0x74   :  { %416 = vmatpush2.msra.mxu0 %v275_v6  ;;  %603 = vmatmul.mubr.f32.vlgmr.msra.gmra.mxu1 %v2943_v13  ;;  %v260_v20 = vld [vmem:[#allocation8 + $0x308] sm:$0xff]  ;;  %v255_v25 = vld [vmem:[#allocation8 + $0x2e0] sm:$0xff]  ;;  %v345_v63 = vld [vmem:[#allocation8 + $0x5b0] sm:$0xff] }
  0x75   :  { %417 = vmatprep.subr.mxu0 %v272_v8  ;;  %699 = vmatprep.subr.mxu1 %v226_v15  ;;  %v256_v23 = vld [vmem:[#allocation8 + $0x2e8] sm:$0xff]  ;;  %v251_v29 = vld [vmem:[#allocation8 + $0x2c0] sm:$0xff]  ;;  %v197_v1 = vld [vmem:[#allocation8 + $0x110] sm:$0xff] }
  0x76   :  { %418 = vmatpush2.msra.mxu0 %v271_v10  ;;  %700 = vmatpush1.msra.mxu1 %v225_v17  ;;  %v2949_v26 = vld [vmem:[#allocation2 + $0x28] sm:$0xff]  ;;  %v247_v33 = vld [vmem:[#allocation8 + $0x2a0] sm:$0xff]  ;;  %v342_v2 = vld [vmem:[#allocation8 + $0x598] sm:$0xff] }
  0x77   :  { %419 = vmatprep.subr.mxu0 %v268_v12  ;;  %441 = vmatprep.mubr.f32.mxu0 %v2946_v19  ;;  %v252_v27 = vld [vmem:[#allocation8 + $0x2c8] sm:$0xff]  ;;  %v243_v36 = vld [vmem:[#allocation8 + $0x280] sm:$0xff]  ;;  %v2973_v3 = vld [vmem:[#allocation2 + $0x70] sm:$0xff] }
  0x78   :  { %420 = vmatpush2.msra.mxu0 %v267_v14  ;;  %701 = vmatprep.subr.mxu1 %v222_v21  ;;  %v248_v31 = vld [vmem:[#allocation8 + $0x2a8] sm:$0xff]  ;;  %v2953_v37 = vld [vmem:[#allocation2 + $0x40] sm:$0xff]  ;;  %v194_v4 = vld [vmem:[#allocation8 + $0xf8] sm:$0xff] }
  0x79   :  { %421 = vmatprep.subr.mxu0 %v264_v16  ;;  %608 = vmatprep.mubr.f32.mxu1 %v2866_v0  ;;  %v244_v34 = vld [vmem:[#allocation8 + $0x288] sm:$0xff]  ;;  %v239_v40 = vld [vmem:[#allocation8 + $0x260] sm:$0xff]  ;;  %v2976_v5 = vld [vmem:[#allocation2 + $0x30] sm:$0xff] }
  0x7a   :  { %422 = vmatpush2.msra.mxu0 %v263_v18  ;;  %702 = vmatpush1.msra.mxu1 %v221_v24  ;;  %v240_v38 = vld [vmem:[#allocation8 + $0x268] sm:$0xff]  ;;  %v235_v44 = vld [vmem:[#allocation8 + $0x240] sm:$0xff]  ;;  %v193_v6 = vld [vmem:[#allocation8 + $0xf0] sm:$0xff] }
  0x7b   :  { %423 = vmatprep.subr.mxu0 %v260_v20  ;;  %609 = vmatmul.mubr.f32.gmra.mxu1 %v2949_v26  ;;  %v236_v42 = vld [vmem:[#allocation8 + $0x248] sm:$0xff]  ;;  %v231_v47 = vld [vmem:[#allocation8 + $0x220] sm:$0xff]  ;;  %v2978_v7 = vld [vmem:[#allocation2 + $0x50] sm:$0xff] }
  0x7c   :  { %424 = vmatpush2.msra.mxu0 %v259_v22  ;;  %703 = vmatprep.subr.mxu1 %v218_v28  ;;  %v232_v45 = vld [vmem:[#allocation8 + $0x228] sm:$0xff]  ;;  %v227_v51 = vld [vmem:[#allocation8 + $0x200] sm:$0xff]  ;;  %v341_v8 = vld [vmem:[#allocation8 + $0x590] sm:$0xff] }
  0x7d   :  { %425 = vmatprep.subr.mxu0 %v256_v23  ;;  %704 = vmatpush1.msra.mxu1 %v217_v30  ;;  %v228_v49 = vld [vmem:[#allocation8 + $0x208] sm:$0xff]  ;;  %v2960_v53 = vld [vmem:[#allocation2] sm:$0xff]  ;;  %v190_v9 = vld [vmem:[#allocation8 + $0xd8] sm:$0xff] }
  0x7e   :  { %426 = vmatpush2.msra.mxu0 %v255_v25  ;;  %705 = vmatprep.subr.mxu1 %v214_v32  ;;  %v2963_v56 = vld [vmem:[#allocation2 + $0x20] sm:$0xff]  ;;  %v189_v10 = vld [vmem:[#allocation8 + $0xd0] sm:$0xff]  ;;  %v338_v11 = vld [vmem:[#allocation8 + $0x578] sm:$0xff] }
  0x7f   :  { %427 = vmatprep.subr.mxu0 %v252_v27  ;;  %614 = vmatprep.mubr.f32.mxu1 %v2866_v0  ;;  %v2983_v12 = vld [vmem:[#allocation2 + $0x48] sm:$0xff]  ;;  %v186_v16 = vld [vmem:[#allocation8 + $0xb8] sm:$0xff]  ;;  %v337_v17 = vld [vmem:[#allocation8 + $0x570] sm:$0xff] }
  0x80   :  { %428 = vmatpush2.msra.mxu0 %v251_v29  ;;  %706 = vmatpush1.msra.mxu1 %v213_v35  ;;  %v2985_v14 = vld [vmem:[#allocation2 + $0x88] sm:$0xff]  ;;  %v185_v18 = vld [vmem:[#allocation8 + $0xb0] sm:$0xff]  ;;  %v182_v20 = vld [vmem:[#allocation8 + $0x98] sm:$0xff] }
  0x81   :  { %429 = vmatprep.subr.mxu0 %v248_v31  ;;  %615 = vmatmul.mubr.f32.gmra.mxu1 %v2953_v37  ;;  %v2987_v15 = vld [vmem:[#allocation2 + $0x68] sm:$0xff]  ;;  %v2993_v21 = vld [vmem:[#allocation2 + $0x60] sm:$0xff]  ;;  %v181_v22 = vld [vmem:[#allocation8 + $0x90] sm:$0xff] }
  0x82   :  { %430 = vmatpush2.msra.mxu0 %v247_v33  ;;  %707 = vmatprep.subr.mxu1 %v210_v39  ;;  %v2995_v23 = vld [vmem:[#allocation2 + $0x80] sm:$0xff]  ;;  %v334_v24 = vld [vmem:[#allocation8 + $0x558] sm:$0xff]  ;;  %v333_v28 = vld [vmem:[#allocation8 + $0x550] sm:$0xff] }
  0x83   :  { %431 = vmatprep.subr.mxu0 %v244_v34  ;;  %708 = vmatpush1.msra.mxu1 %v209_v41  ;;  %v2998_v25 = vld [vmem:[#allocation2 + $0xa0] sm:$0xff]  ;;  %v178_v27 = vld [vmem:[#allocation8 + $0x78] sm:$0xff]  ;;  %v177_v29 = vld [vmem:[#allocation8 + $0x70] sm:$0xff] }
  0x84   :  { %432 = vmatpush2.msra.mxu0 %v243_v36  ;;  %709 = vmatprep.subr.mxu1 %v206_v43  ;;  %v3002_v30 = vld [vmem:[#allocation2 + $0x78] sm:$0xff]  ;;  %v173_v33 = vld [vmem:[#allocation8 + $0x50] sm:$0xff] }
  0x85   :  { %433 = vmatprep.subr.mxu0 %v240_v38  ;;  %620 = vmatprep.mubr.f32.mxu1 %v2866_v0  ;;  %v174_v31 = vld [vmem:[#allocation8 + $0x58] sm:$0xff]  ;;  %v3011_v38 = vld [vmem:[#allocation2 + $0x90] sm:$0xff] }
  0x86   :  { %434 = vmatpush2.msra.mxu0 %v239_v40  ;;  %710 = vmatpush1.msra.mxu1 %v205_v46  ;;  %v3005_v32 = vld [vmem:[#allocation2 + $0x98] sm:$0xff]  ;;  %v169_v39 = vld [vmem:[#allocation8 + $0x30] sm:$0xff] }
  0x87   :  { %435 = vmatprep.subr.mxu0 %v236_v42  ;;  %621 = vmatmul.mubr.f32.gmra.mxu1 %v2957_v48  ;;  %v330_v34 = vld [vmem:[#allocation8 + $0x538] sm:$0xff]  ;;  %v329_v40 = vld [vmem:[#allocation8 + $0x530] sm:$0xff] }
  0x88   :  { %436 = vmatpush2.msra.mxu0 %v235_v44  ;;  %711 = vmatprep.subr.mxu1 %v202_v50  ;;  %v3008_v35 = vld [vmem:[#allocation2 + $0xb8] sm:$0xff]  ;;  %v3014_v41 = vld [vmem:[#allocation2 + $0xb0] sm:$0xff] }
  0x89   :  { %437 = vmatprep.subr.mxu0 %v232_v45  ;;  %712 = vmatpush1.msra.mxu1 %v201_v52  ;;  %v170_v36 = vld [vmem:[#allocation8 + $0x38] sm:$0xff]  ;;  %v165_v43 = vld [vmem:[#allocation8 + $0x10] sm:$0xff]  ;;  %v3019_v45 = vld [vmem:[#allocation2 + $0xa8] sm:$0xff] }
  0x8a   :  { %438 = vmatpush2.msra.mxu0 %v231_v47  ;;  %713 = vmatprep.subr.mxu1 %v198_v58  ;;  %v166_v42 = vld [vmem:[#allocation8 + $0x18] sm:$0xff]  ;;  %v3021_v46 = vld [vmem:[#allocation2 + $0xd0] sm:$0xff]  ;;  %v3031_v58 = vld [vmem:[#allocation2 + $0xe8] sm:$0xff] }
  0x8b   :  { %439 = vmatprep.subr.mxu0 %v228_v49  ;;  %626 = vmatprep.mubr.f32.mxu1 %v2866_v0  ;;  %v326_v44 = vld [vmem:[#allocation8 + $0x518] sm:$0xff]  ;;  %v325_v49 = vld [vmem:[#allocation8 + $0x510] sm:$0xff] }
  0x8c   :  { %440 = vmatpush2.msra.mxu0 %v227_v51  ;;  %714 = vmatpush1.msra.mxu1 %v197_v1  ;;  %v290_v47 = vld [vmem:[#allocation8 + $0x3f8] sm:$0xff]  ;;  %v289_v50 = vld [vmem:[#allocation8 + $0x3f0] sm:$0xff]  ;;  %v3024_v51 = vld [vmem:[#allocation2 + $0xc8] sm:$0xff] }
  0x8d   :  { %442 = vmatmul.mubr.f32.vlgmr.msra.gmra.mxu0 %v2960_v53  ;;  %860 = vmatprep.subr.mxu0 %v354_v54  ;;  %v286_v52 = vld [vmem:[#allocation8 + $0x3d8] sm:$0xff]  ;;  %v3028_v54 = vld [vmem:[#allocation2 + $0xc0] sm:$0xff] }
  0x8e   :  { %861 = vmatpush1.msra.mxu0 %v353_v55  ;;  %447 = vmatprep.mubr.f32.mxu0 %v2963_v56  ;;  %v285_v55 = vld [vmem:[#allocation8 + $0x3d0] sm:$0xff]  ;;  %v3035_v1 = vld [vmem:[#allocation2 + $0xe0] sm:$0xff] }
  0x8f   :  { %862 = vmatprep.subr.mxu0 %v350_v57  ;;  %627 = vmatmul.mubr.f32.gmra.mxu1 %v2973_v3  ;;  %v322_v57 = vld [vmem:[#allocation8 + $0x4f8] sm:$0xff] }
  0x90   :  { %863 = vmatpush1.msra.mxu0 %v349_v59  ;;  %715 = vmatprep.subr.mxu1 %v194_v4  ;;  %v282_v59 = vld [vmem:[#allocation8 + $0x3b8] sm:$0xff] }
  0x91   :  { %448 = vmatmul.mubr.f32.gmra.mxu0 %v2967_v60  ;;  %864 = vmatprep.subr.mxu0 %v346_v61  ;;  %v321_v61 = vld [vmem:[#allocation8 + $0x4f0] sm:$0xff]  ;;  %v3038_v4 = vld [vmem:[#allocation2 + $0xd8] sm:$0xff] }
  0x92   :  { %453 = vmatprep.mubr.f32.mxu0 %v2969_v62  ;;  %865 = vmatpush1.msra.mxu0 %v345_v63  ;;  %v281_v63 = vld [vmem:[#allocation8 + $0x3b0] sm:$0xff] }
  0x93   :  { %866 = vmatprep.subr.mxu0 %v342_v2  ;;  %716 = vmatpush1.msra.mxu1 %v193_v6  ;;  %v278_v2 = vld [vmem:[#allocation8 + $0x398] sm:$0xff]  ;;  %v277_v6 = vld [vmem:[#allocation8 + $0x390] sm:$0xff] }
  0x94   :  { %867 = vmatpush1.msra.mxu0 %v341_v8  ;;  %717 = vmatprep.subr.mxu1 %v190_v9  ;;  %v318_v8 = vld [vmem:[#allocation8 + $0x4d8] sm:$0xff]  ;;  %v3041_v9 = vld [vmem:[#allocation2 + $0x100] sm:$0xff] }
  0x95   :  { %454 = vmatmul.mubr.f32.gmra.mxu0 %v2976_v5  ;;  %632 = vmatprep.mubr.f32.mxu1 %v2866_v0 }
  0x96   :  { %459 = vmatprep.mubr.f32.mxu0 %v2978_v7  ;;  %718 = vmatpush1.msra.mxu1 %v189_v10  ;;  %v274_v10 = vld [vmem:[#allocation8 + $0x378] sm:$0xff] }
  0x97   :  { %868 = vmatprep.subr.mxu0 %v338_v11  ;;  %633 = vmatmul.mubr.f32.gmra.mxu1 %v2985_v14  ;;  %v317_v11 = vld [vmem:[#allocation8 + $0x4d0] sm:$0xff] }
  0x98   :  { %719 = vmatprep.subr.mxu1 %v186_v16  ;;  %869 = vmatpush1.msra.mxu0 %v337_v17  ;;  %v273_v16 = vld [vmem:[#allocation8 + $0x370] sm:$0xff]  ;;  %v3045_v17 = vld [vmem:[#allocation2 + $0xf8] sm:$0xff] }
  0x99   :  { %460 = vmatmul.mubr.f32.gmra.mxu0 %v2983_v12  ;;  %720 = vmatpush1.msra.mxu1 %v185_v18  ;;  %v270_v18 = vld [vmem:[#allocation8 + $0x358] sm:$0xff] }
  0x9a   :  { %465 = vmatprep.mubr.f32.mxu0 %v2987_v15  ;;  %721 = vmatprep.subr.mxu1 %v182_v20  ;;  %v3048_v20 = vld [vmem:[#allocation2 + $0xf0] sm:$0xff] }
  0x9b   :  { %638 = vmatprep.mubr.f32.mxu1 %v2866_v0  ;;  %722 = vmatpush1.msra.mxu1 %v181_v22  ;;  %v269_v22 = vld [vmem:[#allocation8 + $0x350] sm:$0xff] }
  0x9c   :  { %870 = vmatprep.subr.mxu0 %v334_v24  ;;  %639 = vmatmul.mubr.f32.gmra.mxu1 %v2998_v25  ;;  %v314_v24 = vld [vmem:[#allocation8 + $0x4b8] sm:$0xff] }
  0x9d   :  { %466 = vmatmul.mubr.f32.gmra.mxu0 %v2993_v21  ;;  %723 = vmatprep.subr.mxu1 %v178_v27  ;;  %v3051_v27 = vld [vmem:[#allocation2 + $0x118] sm:$0xff] }
  0x9e   :  { %471 = vmatprep.mubr.f32.mxu0 %v2995_v23  ;;  %871 = vmatpush1.msra.mxu0 %v333_v28  ;;  %v266_v28 = vld [vmem:[#allocation8 + $0x338] sm:$0xff] }
  0x9f   :  { %724 = vmatpush1.msra.mxu1 %v177_v29  ;;  %644 = vmatprep.mubr.f32.mxu1 %v2866_v0  ;;  %v313_v29 = vld [vmem:[#allocation8 + $0x4b0] sm:$0xff] }
  0xa0   :  { %725 = vmatprep.subr.mxu1 %v174_v31  ;;  %872 = vmatprep.subr.mxu0 %v330_v34  ;;  %v265_v31 = vld [vmem:[#allocation8 + $0x330] sm:$0xff]  ;;  %v262_v34 = vld [vmem:[#allocation8 + $0x318] sm:$0xff] }
  0xa1   :  { %472 = vmatmul.mubr.f32.gmra.mxu0 %v3002_v30  ;;  %726 = vmatpush1.msra.mxu1 %v173_v33  ;;  %v3055_v33 = vld [vmem:[#allocation2 + $0x110] sm:$0xff] }
  0xa2   :  { %477 = vmatprep.mubr.f32.mxu0 %v3005_v32  ;;  %645 = vmatmul.mubr.f32.gmra.mxu1 %v3008_v35 }
  0xa3   :  { %727 = vmatprep.subr.mxu1 %v170_v36  ;;  %873 = vmatpush1.msra.mxu0 %v329_v40  ;;  %v3058_v36 = vld [vmem:[#allocation2 + $0x108] sm:$0xff]  ;;  %v310_v40 = vld [vmem:[#allocation8 + $0x498] sm:$0xff] }
  0xa4   :  { %728 = vmatpush1.msra.mxu1 %v169_v39  ;;  %650 = vmatprep.mubr.f32.mxu1 %v2866_v0  ;;  %v261_v39 = vld [vmem:[#allocation8 + $0x310] sm:$0xff] }
  0xa5   :  { %478 = vmatmul.mubr.f32.gmra.mxu0 %v3011_v38  ;;  %729 = vmatprep.subr.mxu1 %v166_v42  ;;  %v3061_v42 = vld [vmem:[#allocation2 + $0x130] sm:$0xff] }
  0xa6   :  { %483 = vmatprep.mubr.f32.mxu0 %v3014_v41  ;;  %730 = vmatpush1.msra.mxu1 %v165_v43  ;;  %v258_v43 = vld [vmem:[#allocation8 + $0x2f8] sm:$0xff] }
  0xa7   :  { %874 = vmatprep.subr.mxu0 %v326_v44  ;;  %651 = vmatmul.mubr.f32.gmra.mxu1 %v3021_v46  ;;  %v309_v44 = vld [vmem:[#allocation8 + $0x490] sm:$0xff] }
  0xa8   :  { %731 = vmatprep.subr.mxu1 %v290_v47  ;;  %875 = vmatpush1.msra.mxu0 %v325_v49  ;;  %v257_v47 = vld [vmem:[#allocation8 + $0x2f0] sm:$0xff]  ;;  %v3065_v49 = vld [vmem:[#allocation2 + $0x128] sm:$0xff] }
  0xa9   :  { %484 = vmatmul.mubr.f32.gmra.mxu0 %v3019_v45  ;;  %732 = vmatpush2.msra.mxu1 %v289_v50  ;;  %v254_v50 = vld [vmem:[#allocation8 + $0x2d8] sm:$0xff] }
  0xaa   :  { %489 = vmatprep.mubr.f32.mxu0 %v3024_v51  ;;  %733 = vmatprep.subr.mxu1 %v286_v52  ;;  %v3068_v52 = vld [vmem:[#allocation2 + $0x120] sm:$0xff] }
  0xab   :  { %656 = vmatprep.mubr.f32.mxu1 %v2866_v0  ;;  %734 = vmatpush2.msra.mxu1 %v285_v55  ;;  %v253_v55 = vld [vmem:[#allocation8 + $0x2d0] sm:$0xff] }
  0xac   :  { %876 = vmatprep.subr.mxu0 %v322_v57  ;;  %657 = vmatmul.mubr.f32.gmra.mxu1 %v3031_v58  ;;  %v306_v57 = vld [vmem:[#allocation8 + $0x478] sm:$0xff] }
  0xad   :  { %490 = vmatmul.mubr.f32.gmra.mxu0 %v3028_v54  ;;  %735 = vmatprep.subr.mxu1 %v282_v59  ;;  %v3071_v59 = vld [vmem:[#allocation2 + $0x148] sm:$0xff] }
  0xae   :  { %877 = vmatpush1.msra.mxu0 %v321_v61  ;;  %736 = vmatpush2.msra.mxu1 %v281_v63  ;;  %v250_v61 = vld [vmem:[#allocation8 + $0x2b8] sm:$0xff]  ;;  %v305_v63 = vld [vmem:[#allocation8 + $0x470] sm:$0xff] }
  0xaf   :  { %495 = vmatprep.mubr.f32.mxu0 %v3035_v1  ;;  %737 = vmatprep.subr.mxu1 %v278_v2  ;;  %v249_v2 = vld [vmem:[#allocation8 + $0x2b0] sm:$0xff] }
  0xb0   :  { %662 = vmatprep.mubr.f32.mxu1 %v2866_v0  ;;  %738 = vmatpush2.msra.mxu1 %v277_v6  ;;  %v3075_v6 = vld [vmem:[#allocation2 + $0x140] sm:$0xff] }
  0xb1   :  { %496 = vmatmul.mubr.f32.gmra.mxu0 %v3038_v4  ;;  %878 = vmatprep.subr.mxu0 %v318_v8  ;;  %v246_v8 = vld [vmem:[#allocation8 + $0x298] sm:$0xff] }
  0xb2   :  { %663 = vmatmul.mubr.f32.gmra.mxu1 %v3041_v9  ;;  %739 = vmatprep.subr.mxu1 %v274_v10  ;;  %v3078_v10 = vld [vmem:[#allocation2 + $0x138] sm:$0xff] }
  0xb3   :  { %879 = vmatpush1.msra.mxu0 %v317_v11  ;;  %740 = vmatpush2.msra.mxu1 %v273_v16  ;;  %v245_v11 = vld [vmem:[#allocation8 + $0x290] sm:$0xff]  ;;  %v302_v16 = vld [vmem:[#allocation8 + $0x458] sm:$0xff] }
  0xb4   :  { %501 = vmatprep.mubr.f32.mxu0 %v3045_v17  ;;  %741 = vmatprep.subr.mxu1 %v270_v18  ;;  %v3081_v18 = vld [vmem:[#allocation2 + $0x160] sm:$0xff] }
  0xb5   :  { %502 = vmatmul.mubr.f32.gmra.mxu0 %v3048_v20  ;;  %668 = vmatprep.mubr.f32.mxu1 %v2866_v0 }
  0xb6   :  { %742 = vmatpush2.msra.mxu1 %v269_v22  ;;  %880 = vmatprep.subr.mxu0 %v314_v24  ;;  %v242_v22 = vld [vmem:[#allocation8 + $0x278] sm:$0xff]  ;;  %v301_v24 = vld [vmem:[#allocation8 + $0x450] sm:$0xff] }
  0xb7   :  { %669 = vmatmul.mubr.f32.gmra.mxu1 %v3051_v27  ;;  %743 = vmatprep.subr.mxu1 %v266_v28  ;;  %v241_v28 = vld [vmem:[#allocation8 + $0x270] sm:$0xff] }
  0xb8   :  { %881 = vmatpush1.msra.mxu0 %v313_v29  ;;  %744 = vmatpush2.msra.mxu1 %v265_v31  ;;  %v3085_v29 = vld [vmem:[#allocation2 + $0x158] sm:$0xff] }
  0xb9   :  { %507 = vmatprep.mubr.f32.mxu0 %v3055_v33  ;;  %745 = vmatprep.subr.mxu1 %v262_v34  ;;  %v238_v31 = vld [vmem:[#allocation8 + $0x258] sm:$0xff]  ;;  %v3088_v34 = vld [vmem:[#allocation2 + $0x150] sm:$0xff] }
  0xba   :  { %508 = vmatmul.mubr.f32.gmra.mxu0 %v3058_v36  ;;  %674 = vmatprep.mubr.f32.mxu1 %v2866_v0 }
  0xbb   :  { %746 = vmatpush2.msra.mxu1 %v261_v39  ;;  %882 = vmatprep.subr.mxu0 %v310_v40  ;;  %v237_v39 = vld [vmem:[#allocation8 + $0x250] sm:$0xff]  ;;  %v298_v40 = vld [vmem:[#allocation8 + $0x438] sm:$0xff] }
  0xbc   :  { %675 = vmatmul.mubr.f32.gmra.mxu1 %v3061_v42  ;;  %747 = vmatprep.subr.mxu1 %v258_v43  ;;  %v3091_v43 = vld [vmem:[#allocation2 + $0x178] sm:$0xff] }
  0xbd   :  { %883 = vmatpush1.msra.mxu0 %v309_v44  ;;  %748 = vmatpush2.msra.mxu1 %v257_v47  ;;  %v234_v44 = vld [vmem:[#allocation8 + $0x238] sm:$0xff]  ;;  %v297_v47 = vld [vmem:[#allocation8 + $0x430] sm:$0xff] }
  0xbe   :  { %513 = vmatprep.mubr.f32.mxu0 %v3065_v49  ;;  %749 = vmatprep.subr.mxu1 %v254_v50  ;;  %v233_v50 = vld [vmem:[#allocation8 + $0x230] sm:$0xff] }
  0xbf   :  { %514 = vmatmul.mubr.f32.gmra.mxu0 %v3068_v52  ;;  %680 = vmatprep.mubr.f32.mxu1 %v2866_v0 }
  0xc0   :  { %750 = vmatpush2.msra.mxu1 %v253_v55  ;;  %884 = vmatprep.subr.mxu0 %v306_v57  ;;  %v3095_v55 = vld [vmem:[#allocation2 + $0x170] sm:$0xff]  ;;  %v230_v57 = vld [vmem:[#allocation8 + $0x218] sm:$0xff] }
  0xc1   :  { %681 = vmatmul.mubr.f32.gmra.mxu1 %v3071_v59  ;;  %751 = vmatprep.subr.mxu1 %v250_v61  ;;  %v3098_v61 = vld [vmem:[#allocation2 + $0x168] sm:$0xff] }
  0xc2   :  { %885 = vmatpush1.msra.mxu0 %v305_v63  ;;  %752 = vmatpush2.msra.mxu1 %v249_v2  ;;  %v229_v63 = vld [vmem:[#allocation8 + $0x210] sm:$0xff]  ;;  %v294_v2 = vld [vmem:[#allocation8 + $0x418] sm:$0xff] }
  0xc3   :  { %519 = vmatprep.mubr.f32.mxu0 %v3075_v6  ;;  %753 = vmatprep.subr.mxu1 %v246_v8  ;;  %v293_v8 = vld [vmem:[#allocation8 + $0x410] sm:$0xff] }
  0xc4   :  { %520 = vmatmul.mubr.f32.gmra.mxu0 %v3078_v10  ;;  %686 = vmatprep.mubr.f32.mxu1 %v2866_v0 }
  0xc5   :  { %754 = vmatpush2.msra.mxu1 %v245_v11  ;;  %886 = vmatprep.subr.mxu0 %v302_v16  ;;  %v1372_v11 = vld [vmem:[#allocation10 + $0xf8] sm:$0xff]  ;;  %v1371_v16 = vld [vmem:[#allocation10 + $0xf0] sm:$0xff] }
  0xc6   :  { %687 = vmatmul.mubr.f32.gmra.mxu1 %v3081_v18  ;;  %755 = vmatprep.subr.mxu1 %v242_v22  ;;  %v1370_v22 = vld [vmem:[#allocation10 + $0xe8] sm:$0xff] }
  0xc7   :  { %887 = vmatpush1.msra.mxu0 %v301_v24  ;;  %756 = vmatpush2.msra.mxu1 %v241_v28  ;;  %v1369_v24 = vld [vmem:[#allocation10 + $0xe0] sm:$0xff] }
  0xc8   :  { %525 = vmatprep.mubr.f32.mxu0 %v3085_v29  ;;  %757 = vmatprep.subr.mxu1 %v238_v31  ;;  %v1361_v28 = vld [vmem:[#allocation10 + $0xa0] sm:$0xff] }
  0xc9   :  { %526 = vmatmul.mubr.f32.gmra.mxu0 %v3088_v34  ;;  %692 = vmatprep.mubr.f32.mxu1 %v2866_v0  ;;  %v1357_v31 = vld [vmem:[#allocation10 + $0x80] sm:$0xff] }
  0xca   :  { %758 = vmatpush2.msra.mxu1 %v237_v39  ;;  %888 = vmatprep.subr.mxu0 %v298_v40  ;;  %v1353_v39 = vld [vmem:[#allocation10 + $0x60] sm:$0xff] }
  0xcb   :  { %693 = vmatmul.mubr.f32.gmra.mxu1 %v3091_v43  ;;  %759 = vmatprep.subr.mxu1 %v234_v44  ;;  %v1349_v40 = vld [vmem:[#allocation10 + $0x40] sm:$0xff] }
  0xcc   :  { %889 = vmatpush1.msra.mxu0 %v297_v47  ;;  %760 = vmatpush2.msra.mxu1 %v233_v50  ;;  %v1345_v44 = vld [vmem:[#allocation10 + $0x20] sm:$0xff] }
  0xcd   :  { %531 = vmatprep.mubr.f32.mxu0 %v3095_v55  ;;  %761 = vmatprep.subr.mxu1 %v230_v57  ;;  %v1341_v47 = vld [vmem:[#allocation10] sm:$0xff] }
  0xce   :  { %532 = vmatmul.mubr.f32.gmra.mxu0 %v3098_v61  ;;  %762 = vmatpush2.msra.mxu1 %v229_v63  ;;  %v1401_v50 = vld [vmem:[#allocation10 + $0x1e0] sm:$0xff] }
  0xcf   :  { %763 = vmatprep.mubr.f32.mxu1 %v2946_v19  ;;  %890 = vmatprep.subr.mxu0 %v294_v2  ;;  %v1368_v19 = vld [vmem:[#allocation10 + $0xd8] sm:$0xff]  ;;  %v1397_v57 = vld [vmem:[#allocation10 + $0x1c0] sm:$0xff] }
  0xd0   :  { %764 = vmatmul.mubr.f32.vlgmr.msra.gmra.mxu1 %v2960_v53  ;;  %891 = vmatpush1.msra.mxu0 %v293_v8  ;;  %v1367_v53 = vld [vmem:[#allocation10 + $0xd0] sm:$0xff]  ;;  %v1393_v63 = vld [vmem:[#allocation10 + $0x1a0] sm:$0xff] }
  0xd1   :  { %924 = vmatprep.mubr.f32.mxu0 %v2866_v0  ;;  %769 = vmatprep.mubr.f32.mxu1 %v2963_v56  ;;  %v1365_v56 = vld [vmem:[#allocation10 + $0xc0] sm:$0xff] }
  0xd2   :  { %925 = vmatmul.mubr.f32.vlgmr.msra.gmra.mxu0 %v2943_v13  ;;  %1481 = vmatprep.subr.mxu1 %v1372_v11  ;;  %v1366_v13 = vld [vmem:[#allocation10 + $0xc8] sm:$0xff]  ;;  %v1389_v2 = vld [vmem:[#allocation10 + $0x180] sm:$0xff] }
  0xd3   :  { %930 = vmatprep.mubr.f32.mxu0 %v2866_v0  ;;  %1482 = vmatpush1.msra.mxu1 %v1371_v16  ;;  %v1385_v8 = vld [vmem:[#allocation10 + $0x160] sm:$0xff]  ;;  %v1436_v16 = vld [vmem:[#allocation10 + $0x2f8] sm:$0xff] }
  0xd4   :  { %770 = vmatmul.mubr.f32.gmra.mxu1 %v2967_v60  ;;  %1483 = vmatprep.subr.mxu1 %v1370_v22  ;;  %v1364_v60 = vld [vmem:[#allocation10 + $0xb8] sm:$0xff]  ;;  %v1381_v11 = vld [vmem:[#allocation10 + $0x140] sm:$0xff] }
  0xd5   :  { %775 = vmatprep.mubr.f32.mxu1 %v2969_v62  ;;  %1484 = vmatpush1.msra.mxu1 %v1369_v24  ;;  %v1363_v62 = vld [vmem:[#allocation10 + $0xb0] sm:$0xff]  ;;  %v1377_v22 = vld [vmem:[#allocation10 + $0x120] sm:$0xff]  ;;  %v1376_v24 = vld [vmem:[#allocation10 + $0x118] sm:$0xff] }
  0xd6   :  { %931 = vmatmul.mubr.f32.gmra.mxu0 %v2949_v26  ;;  %1485 = vmatprep.subr.mxu1 %v1368_v19  ;;  %v1362_v26 = vld [vmem:[#allocation10 + $0xa8] sm:$0xff]  ;;  %v1433_v19 = vld [vmem:[#allocation10 + $0x2e0] sm:$0xff] }
  0xd7   :  { %936 = vmatprep.mubr.f32.mxu0 %v2866_v0  ;;  %1486 = vmatpush1.msra.mxu1 %v1367_v53  ;;  %v1374_v53 = vld [vmem:[#allocation10 + $0x108] sm:$0xff] }
  0xd8   :  { %776 = vmatmul.mubr.f32.gmra.mxu1 %v2976_v5  ;;  %1487 = vmatprep.subr.mxu1 %v1366_v13  ;;  %v1360_v5 = vld [vmem:[#allocation10 + $0x98] sm:$0xff]  ;;  %v1373_v13 = vld [vmem:[#allocation10 + $0x100] sm:$0xff] }
  0xd9   :  { %781 = vmatprep.mubr.f32.mxu1 %v2978_v7  ;;  %1488 = vmatpush1.msra.mxu1 %v1365_v56  ;;  %v1359_v7 = vld [vmem:[#allocation10 + $0x90] sm:$0xff]  ;;  %v1430_v56 = vld [vmem:[#allocation10 + $0x2c8] sm:$0xff] }
  0xda   :  { %937 = vmatmul.mubr.f32.gmra.mxu0 %v2953_v37  ;;  %1489 = vmatprep.subr.mxu1 %v1364_v60  ;;  %v1358_v37 = vld [vmem:[#allocation10 + $0x88] sm:$0xff]  ;;  %v1429_v60 = vld [vmem:[#allocation10 + $0x2c0] sm:$0xff] }
  0xdb   :  { %942 = vmatprep.mubr.f32.mxu0 %v2866_v0  ;;  %1490 = vmatpush1.msra.mxu1 %v1363_v62  ;;  %v1427_v62 = vld [vmem:[#allocation10 + $0x2b0] sm:$0xff] }
  0xdc   :  { %782 = vmatmul.mubr.f32.gmra.mxu1 %v2983_v12  ;;  %1491 = vmatprep.subr.mxu1 %v1362_v26  ;;  %v1356_v12 = vld [vmem:[#allocation10 + $0x78] sm:$0xff]  ;;  %v1426_v26 = vld [vmem:[#allocation10 + $0x2a8] sm:$0xff] }
  0xdd   :  { %787 = vmatprep.mubr.f32.mxu1 %v2987_v15  ;;  %1492 = vmatpush1.msra.mxu1 %v1361_v28  ;;  %v1355_v15 = vld [vmem:[#allocation10 + $0x70] sm:$0xff]  ;;  %v1425_v28 = vld [vmem:[#allocation10 + $0x2a0] sm:$0xff] }
  0xde   :  { %943 = vmatmul.mubr.f32.gmra.mxu0 %v2957_v48  ;;  %1493 = vmatprep.subr.mxu1 %v1360_v5  ;;  %v1354_v48 = vld [vmem:[#allocation10 + $0x68] sm:$0xff]  ;;  %v1424_v5 = vld [vmem:[#allocation10 + $0x298] sm:$0xff] }
  0xdf   :  { %948 = vmatprep.mubr.f32.mxu0 %v2866_v0  ;;  %1494 = vmatpush1.msra.mxu1 %v1359_v7  ;;  %v1423_v7 = vld [vmem:[#allocation10 + $0x290] sm:$0xff] }
  0xe0   :  { %788 = vmatmul.mubr.f32.gmra.mxu1 %v2993_v21  ;;  %1495 = vmatprep.subr.mxu1 %v1358_v37  ;;  %v1352_v21 = vld [vmem:[#allocation10 + $0x58] sm:$0xff]  ;;  %v1422_v37 = vld [vmem:[#allocation10 + $0x288] sm:$0xff] }
  0xe1   :  { %793 = vmatprep.mubr.f32.mxu1 %v2995_v23  ;;  %1496 = vmatpush1.msra.mxu1 %v1357_v31  ;;  %v1351_v23 = vld [vmem:[#allocation10 + $0x50] sm:$0xff]  ;;  %v1421_v31 = vld [vmem:[#allocation10 + $0x280] sm:$0xff] }
  0xe2   :  { %949 = vmatmul.mubr.f32.gmra.mxu0 %v2973_v3  ;;  %1497 = vmatprep.subr.mxu1 %v1356_v12  ;;  %v1350_v3 = vld [vmem:[#allocation10 + $0x48] sm:$0xff]  ;;  %v1420_v12 = vld [vmem:[#allocation10 + $0x278] sm:$0xff] }
  0xe3   :  { %954 = vmatprep.mubr.f32.mxu0 %v2866_v0  ;;  %1498 = vmatpush1.msra.mxu1 %v1355_v15  ;;  %v1419_v15 = vld [vmem:[#allocation10 + $0x270] sm:$0xff] }
  0xe4   :  { %794 = vmatmul.mubr.f32.gmra.mxu1 %v3002_v30  ;;  %1499 = vmatprep.subr.mxu1 %v1354_v48  ;;  %v1348_v30 = vld [vmem:[#allocation10 + $0x38] sm:$0xff]  ;;  %v1418_v48 = vld [vmem:[#allocation10 + $0x268] sm:$0xff] }
  0xe5   :  { %799 = vmatprep.mubr.f32.mxu1 %v3005_v32  ;;  %1500 = vmatpush1.msra.mxu1 %v1353_v39  ;;  %v1347_v32 = vld [vmem:[#allocation10 + $0x30] sm:$0xff]  ;;  %v1417_v39 = vld [vmem:[#allocation10 + $0x260] sm:$0xff] }
  0xe6   :  { %955 = vmatmul.mubr.f32.gmra.mxu0 %v2985_v14  ;;  %1501 = vmatprep.subr.mxu1 %v1352_v21  ;;  %v1346_v14 = vld [vmem:[#allocation10 + $0x28] sm:$0xff]  ;;  %v1416_v21 = vld [vmem:[#allocation10 + $0x258] sm:$0xff] }
  0xe7   :  { %960 = vmatprep.mubr.f32.mxu0 %v2866_v0  ;;  %1502 = vmatpush1.msra.mxu1 %v1351_v23  ;;  %v1415_v23 = vld [vmem:[#allocation10 + $0x250] sm:$0xff] }
  0xe8   :  { %800 = vmatmul.mubr.f32.gmra.mxu1 %v3011_v38  ;;  %1503 = vmatprep.subr.mxu1 %v1350_v3  ;;  %v1344_v38 = vld [vmem:[#allocation10 + $0x18] sm:$0xff]  ;;  %v1414_v3 = vld [vmem:[#allocation10 + $0x248] sm:$0xff] }
  0xe9   :  { %805 = vmatprep.mubr.f32.mxu1 %v3014_v41  ;;  %1504 = vmatpush1.msra.mxu1 %v1349_v40  ;;  %v1343_v41 = vld [vmem:[#allocation10 + $0x10] sm:$0xff]  ;;  %v1413_v40 = vld [vmem:[#allocation10 + $0x240] sm:$0xff] }
  0xea   :  { %961 = vmatmul.mubr.f32.gmra.mxu0 %v2998_v25  ;;  %1505 = vmatprep.subr.mxu1 %v1348_v30  ;;  %v1342_v25 = vld [vmem:[#allocation10 + $0x8] sm:$0xff]  ;;  %v1412_v30 = vld [vmem:[#allocation10 + $0x238] sm:$0xff] }
  0xeb   :  { %966 = vmatprep.mubr.f32.mxu0 %v2866_v0  ;;  %1506 = vmatpush1.msra.mxu1 %v1347_v32  ;;  %v1411_v32 = vld [vmem:[#allocation10 + $0x230] sm:$0xff] }
  0xec   :  { %806 = vmatmul.mubr.f32.gmra.mxu1 %v3019_v45  ;;  %1507 = vmatprep.subr.mxu1 %v1346_v14  ;;  %v1404_v45 = vld [vmem:[#allocation10 + $0x1f8] sm:$0xff]  ;;  %v1410_v14 = vld [vmem:[#allocation10 + $0x228] sm:$0xff] }
  0xed   :  { %811 = vmatprep.mubr.f32.mxu1 %v3024_v51  ;;  %1508 = vmatpush1.msra.mxu1 %v1345_v44  ;;  %v1403_v51 = vld [vmem:[#allocation10 + $0x1f0] sm:$0xff]  ;;  %v1409_v44 = vld [vmem:[#allocation10 + $0x220] sm:$0xff] }
  0xee   :  { %967 = vmatmul.mubr.f32.gmra.mxu0 %v3008_v35  ;;  %1509 = vmatprep.subr.mxu1 %v1344_v38  ;;  %v1402_v35 = vld [vmem:[#allocation10 + $0x1e8] sm:$0xff]  ;;  %v1408_v38 = vld [vmem:[#allocation10 + $0x218] sm:$0xff] }
  0xef   :  { %972 = vmatprep.mubr.f32.mxu0 %v2866_v0  ;;  %1510 = vmatpush1.msra.mxu1 %v1343_v41  ;;  %v1407_v41 = vld [vmem:[#allocation10 + $0x210] sm:$0xff] }
  0xf0   :  { %812 = vmatmul.mubr.f32.gmra.mxu1 %v3028_v54  ;;  %1511 = vmatprep.subr.mxu1 %v1342_v25  ;;  %v1400_v54 = vld [vmem:[#allocation10 + $0x1d8] sm:$0xff]  ;;  %v1406_v25 = vld [vmem:[#allocation10 + $0x208] sm:$0xff] }
  0xf1   :  { %817 = vmatprep.mubr.f32.mxu1 %v3035_v1  ;;  %1512 = vmatpush1.msra.mxu1 %v1341_v47  ;;  %v1399_v1 = vld [vmem:[#allocation10 + $0x1d0] sm:$0xff]  ;;  %v1405_v47 = vld [vmem:[#allocation10 + $0x200] sm:$0xff] }
  0xf2   :  { %973 = vmatmul.mubr.f32.gmra.mxu0 %v3021_v46  ;;  %1513 = vmatprep.subr.mxu1 %v1404_v45  ;;  %v1398_v46 = vld [vmem:[#allocation10 + $0x1c8] sm:$0xff]  ;;  %v1468_v45 = vld [vmem:[#allocation10 + $0x3f8] sm:$0xff] }
  0xf3   :  { %978 = vmatprep.mubr.f32.mxu0 %v2866_v0  ;;  %1514 = vmatpush2.msra.mxu1 %v1403_v51  ;;  %v1467_v51 = vld [vmem:[#allocation10 + $0x3f0] sm:$0xff] }
  0xf4   :  { %818 = vmatmul.mubr.f32.gmra.mxu1 %v3038_v4  ;;  %1515 = vmatprep.subr.mxu1 %v1402_v35  ;;  %v1396_v4 = vld [vmem:[#allocation10 + $0x1b8] sm:$0xff]  ;;  %v1466_v35 = vld [vmem:[#allocation10 + $0x3e8] sm:$0xff] }
  0xf5   :  { %823 = vmatprep.mubr.f32.mxu1 %v3045_v17  ;;  %1516 = vmatpush2.msra.mxu1 %v1401_v50  ;;  %v1395_v17 = vld [vmem:[#allocation10 + $0x1b0] sm:$0xff]  ;;  %v1465_v50 = vld [vmem:[#allocation10 + $0x3e0] sm:$0xff] }
  0xf6   :  { %979 = vmatmul.mubr.f32.gmra.mxu0 %v3031_v58  ;;  %1517 = vmatprep.subr.mxu1 %v1400_v54  ;;  %v1394_v58 = vld [vmem:[#allocation10 + $0x1a8] sm:$0xff]  ;;  %v1464_v54 = vld [vmem:[#allocation10 + $0x3d8] sm:$0xff] }
  0xf7   :  { %984 = vmatprep.mubr.f32.mxu0 %v2866_v0  ;;  %1518 = vmatpush2.msra.mxu1 %v1399_v1  ;;  %v1463_v1 = vld [vmem:[#allocation10 + $0x3d0] sm:$0xff] }
  0xf8   :  { %824 = vmatmul.mubr.f32.gmra.mxu1 %v3048_v20  ;;  %1519 = vmatprep.subr.mxu1 %v1398_v46  ;;  %v1392_v20 = vld [vmem:[#allocation10 + $0x198] sm:$0xff]  ;;  %v1462_v46 = vld [vmem:[#allocation10 + $0x3c8] sm:$0xff] }
  0xf9   :  { %829 = vmatprep.mubr.f32.mxu1 %v3055_v33  ;;  %1520 = vmatpush2.msra.mxu1 %v1397_v57  ;;  %v1391_v33 = vld [vmem:[#allocation10 + $0x190] sm:$0xff]  ;;  %v1461_v57 = vld [vmem:[#allocation10 + $0x3c0] sm:$0xff] }
  0xfa   :  { %985 = vmatmul.mubr.f32.gmra.mxu0 %v3041_v9  ;;  %1521 = vmatprep.subr.mxu1 %v1396_v4  ;;  %v1390_v9 = vld [vmem:[#allocation10 + $0x188] sm:$0xff]  ;;  %v1460_v4 = vld [vmem:[#allocation10 + $0x3b8] sm:$0xff] }
  0xfb   :  { %990 = vmatprep.mubr.f32.mxu0 %v2866_v0  ;;  %1522 = vmatpush2.msra.mxu1 %v1395_v17  ;;  %v1459_v17 = vld [vmem:[#allocation10 + $0x3b0] sm:$0xff] }
  0xfc   :  { %830 = vmatmul.mubr.f32.gmra.mxu1 %v3058_v36  ;;  %1523 = vmatprep.subr.mxu1 %v1394_v58  ;;  %v1388_v36 = vld [vmem:[#allocation10 + $0x178] sm:$0xff]  ;;  %v1458_v58 = vld [vmem:[#allocation10 + $0x3a8] sm:$0xff] }
  0xfd   :  { %835 = vmatprep.mubr.f32.mxu1 %v3065_v49  ;;  %1524 = vmatpush2.msra.mxu1 %v1393_v63  ;;  %v1387_v49 = vld [vmem:[#allocation10 + $0x170] sm:$0xff] }
  0xfe   :  { %991 = vmatmul.mubr.f32.gmra.mxu0 %v3051_v27  ;;  %1525 = vmatprep.subr.mxu1 %v1392_v20  ;;  %v1386_v27 = vld [vmem:[#allocation10 + $0x168] sm:$0xff]  ;;  %v1457_v20 = vld [vmem:[#allocation10 + $0x3a0] sm:$0xff] }
  0xff   :  { %996 = vmatprep.mubr.f32.mxu0 %v2866_v0  ;;  %1526 = vmatpush2.msra.mxu1 %v1391_v33  ;;  %v1456_v33 = vld [vmem:[#allocation10 + $0x398] sm:$0xff] }
 0x100   :  { %836 = vmatmul.mubr.f32.gmra.mxu1 %v3068_v52  ;;  %1527 = vmatprep.subr.mxu1 %v1390_v9  ;;  %v1384_v52 = vld [vmem:[#allocation10 + $0x158] sm:$0xff]  ;;  %v1455_v9 = vld [vmem:[#allocation10 + $0x390] sm:$0xff] }
 0x101   :  { %841 = vmatprep.mubr.f32.mxu1 %v3075_v6  ;;  %1528 = vmatpush2.msra.mxu1 %v1389_v2  ;;  %v1383_v6 = vld [vmem:[#allocation10 + $0x150] sm:$0xff] }
 0x102   :  { %997 = vmatmul.mubr.f32.gmra.mxu0 %v3061_v42  ;;  %1529 = vmatprep.subr.mxu1 %v1388_v36  ;;  %v1382_v42 = vld [vmem:[#allocation10 + $0x148] sm:$0xff] }
 0x103   :  { %1002 = vmatprep.mubr.f32.mxu0 %v2866_v0  ;;  %1530 = vmatpush2.msra.mxu1 %v1387_v49  ;;  %v1454_v36 = vld [vmem:[#allocation10 + $0x388] sm:$0xff]  ;;  %v1453_v49 = vld [vmem:[#allocation10 + $0x380] sm:$0xff] }
 0x104   :  { %842 = vmatmul.mubr.f32.gmra.mxu1 %v3078_v10  ;;  %1531 = vmatprep.subr.mxu1 %v1386_v27  ;;  %v1380_v10 = vld [vmem:[#allocation10 + $0x138] sm:$0xff] }
 0x105   :  { %847 = vmatprep.mubr.f32.mxu1 %v3085_v29  ;;  %1532 = vmatpush2.msra.mxu1 %v1385_v8  ;;  %v1379_v29 = vld [vmem:[#allocation10 + $0x130] sm:$0xff]  ;;  %v1452_v27 = vld [vmem:[#allocation10 + $0x378] sm:$0xff] }
 0x106   :  { %1003 = vmatmul.mubr.f32.gmra.mxu0 %v3071_v59  ;;  %1533 = vmatprep.subr.mxu1 %v1384_v52  ;;  %v1378_v59 = vld [vmem:[#allocation10 + $0x128] sm:$0xff]  ;;  %v1451_v8 = vld [vmem:[#allocation10 + $0x370] sm:$0xff]  ;;  %v357_v52 = vlaneseq }
 0x107   :  { %1008 = vmatprep.mubr.f32.mxu0 %v2866_v0  ;;  %1534 = vmatpush2.msra.mxu1 %v1383_v6 }
 0x108   :  { %848 = vmatmul.mubr.f32.gmra.mxu1 %v3088_v34  ;;  %1535 = vmatprep.subr.mxu1 %v1382_v42  ;;  %v1435_v34 = vld [vmem:[#allocation10 + $0x2f0] sm:$0xff]  ;;  %v1450_v42 = vld [vmem:[#allocation10 + $0x368] sm:$0xff] }
 0x109   :  { %853 = vmatprep.mubr.f32.mxu1 %v3095_v55  ;;  %1536 = vmatpush2.msra.mxu1 %v1381_v11  ;;  %v1434_v55 = vld [vmem:[#allocation10 + $0x2e8] sm:$0xff]  ;;  %v1449_v11 = vld [vmem:[#allocation10 + $0x360] sm:$0xff] }
 0x10a   :  { %1009 = vmatmul.mubr.f32.gmra.mxu0 %v3081_v18  ;;  %1537 = vmatprep.subr.mxu1 %v1380_v10  ;;  %v1375_v18 = vld [vmem:[#allocation10 + $0x110] sm:$0xff] }
 0x10b   :  { %1014 = vmatprep.mubr.f32.mxu0 %v2866_v0  ;;  %1538 = vmatpush2.msra.mxu1 %v1379_v29  ;;  %v1432_v0 = vld [vmem:[#allocation10 + $0x2d8] sm:$0xff] }
 0x10c   :  { %854 = vmatmul.mubr.f32.gmra.mxu1 %v3098_v61  ;;  %1642 = vmatprep.subr.mxu0 %v1436_v16  ;;  %v1431_v61 = vld [vmem:[#allocation10 + $0x2d0] sm:$0xff]  ;;  %v1448_v29 = vld [vmem:[#allocation10 + $0x358] sm:$0xff] }
 0x10d   :  { %1539 = vmatprep.subr.mxu1 %v1378_v59  ;;  %1643 = vmatpush1.msra.mxu0 %v1435_v34  ;;  %v1447_v16 = vld [vmem:[#allocation10 + $0x350] sm:$0xff]  ;;  %v3166_v59 = vshrl.u32 %v357_v52, 7  ;;  %v1445_v34 = vld [vmem:[#allocation10 + $0x340] sm:$0xff] }
 0x10e   :  { %1015 = vmatmul.mubr.f32.gmra.mxu0 %v3091_v43  ;;  %1540 = vmatpush2.msra.mxu1 %v1377_v22  ;;  %v1428_v43 = vld [vmem:[#allocation10 + $0x2b8] sm:$0xff]  ;;  %v1446_v22 = vld [vmem:[#allocation10 + $0x348] sm:$0xff] }
 0x10f   :  { %1541 = vmatprep.subr.mxu1 %v1376_v24  ;;  %1644 = vmatprep.subr.mxu0 %v1434_v55  ;;  %3644 = vst [vmem:[#allocation19_spill] sm:$0xff] %v3166_v59  ;;  %v1444_v55 = vld [vmem:[#allocation10 + $0x338] sm:$0xff] }
 0x110   :  { %1542 = vmatpush2.msra.mxu1 %v1375_v18  ;;  %1645 = vmatpush1.msra.mxu0 %v1433_v19  ;;  %v1443_v18 = vld [vmem:[#allocation10 + $0x330] sm:$0xff]  ;;  %v3169_v19 = vsub.s32 0, %v3166_v59 }
 0x111   :  { %1543 = vmatprep.subr.mxu1 %v1374_v53  ;;  %1646 = vmatprep.subr.mxu0 %v1432_v0  ;;  %v1442_v53 = vld [vmem:[#allocation10 + $0x328] sm:$0xff]  ;;  %v3174_v0 = vld [vmem:[%s3629_s4] sm:$0xf] }
 0x112   :  { %1544 = vmatpush2.msra.mxu1 %v1373_v13  ;;  %1647 = vmatpush1.msra.mxu0 %v1431_v61  ;;  %3645 = vst [vmem:[#allocation20_spill] sm:$0xff] %v3169_v19  ;;  %v1441_v13 = vld [vmem:[#allocation10 + $0x320] sm:$0xff]  ;;  %v3177_v61 = vsub.s32 1, %v3166_v59 }
 0x113   :  { %1648 = vmatprep.subr.mxu0 %v1430_v56 }
 0x114   :  { %1649 = vmatpush1.msra.mxu0 %v1429_v60  ;;  %3646 = vst [vmem:[#allocation21_spill] sm:$0xff] %v3177_v61  ;;  %v1440_v60 = vld [vmem:[#allocation10 + $0x318] sm:$0xff] }
 0x115   :  { %1650 = vmatprep.subr.mxu0 %v1428_v43  ;;  %v1439_v43 = vld [vmem:[#allocation10 + $0x310] sm:$0xff] }
 0x116   :  { %1651 = vmatpush1.msra.mxu0 %v1427_v62  ;;  %v3181_v62 = vrot.slane %v3174_v0, %v3169_v19 }
 0x117   :  { %1652 = vmatprep.subr.mxu0 %v1426_v26  ;;  %v1438_v26 = vld [vmem:[#allocation10 + $0x308] sm:$0xff] }
 0x118   :  { %1653 = vmatpush1.msra.mxu0 %v1425_v28  ;;  %v1437_v28 = vld [vmem:[#allocation10 + $0x300] sm:$0xff] }
 0x119   :  { %1654 = vmatprep.subr.mxu0 %v1424_v5  ;;  %v3185_v5 = vrot.slane %v3174_v0, %v3177_v61 }
 0x11a   :  { %1655 = vmatpush1.msra.mxu0 %v1423_v7 }
 0x11b   :  { %1656 = vmatprep.subr.mxu0 %v1422_v37 }
 0x11c   :  { %1657 = vmatpush1.msra.mxu0 %v1421_v31 }
 0x11d   :  { %1658 = vmatprep.subr.mxu0 %v1420_v12 }
 0x11e   :  { %1659 = vmatpush1.msra.mxu0 %v1419_v15 }
 0x11f   :  { %1660 = vmatprep.subr.mxu0 %v1418_v48 }
 0x120   :  { %1661 = vmatpush1.msra.mxu0 %v1417_v39 }
 0x121   :  { %1662 = vmatprep.subr.mxu0 %v1416_v21 }
 0x122   :  { %1663 = vmatpush1.msra.mxu0 %v1415_v23 }
 0x123   :  { %1664 = vmatprep.subr.mxu0 %v1414_v3 }
 0x124   :  { %1665 = vmatpush1.msra.mxu0 %v1413_v40  ;;  %v1086_v40 = vld [vmem:[#allocation5 + $0x8] sm:$0xff] }
 0x125   :  { %1666 = vmatprep.subr.mxu0 %v1412_v30  ;;  %vm1150_vm0 = vcmp.ge.u32.totalorder %v1086_v40, 858993459 }
 0x126   :  { %1667 = vmatpush1.msra.mxu0 %v1411_v32 }
 0x127   :  { %1668 = vmatprep.subr.mxu0 %v1410_v14  ;;  %v1085_v14 = vld [vmem:[#allocation5] sm:$0xff] }
 0x128   :  { %1669 = vmatpush1.msra.mxu0 %v1409_v44  ;;  %vm1149_vm1 = vcmp.ge.u32.totalorder %v1085_v14, 858993459 }
 0x129   :  { %1670 = vmatprep.subr.mxu0 %v1408_v38 }
 0x12a   :  { %1671 = vmatpush1.msra.mxu0 %v1407_v41 }
 0x12b   :  { %1672 = vmatprep.subr.mxu0 %v1406_v25 }
 0x12c   :  { %1673 = vmatpush1.msra.mxu0 %v1405_v47 }
 0x12d   :  { %1674 = vmatprep.subr.mxu0 %v1468_v45 }
 0x12e   :  { %1675 = vmatpush2.msra.mxu0 %v1467_v51 }
 0x12f   :  { %1676 = vmatprep.subr.mxu0 %v1466_v35 }
 0x130   :  { %1677 = vmatpush2.msra.mxu0 %v1465_v50 }
 0x131   :  { %1678 = vmatprep.subr.mxu0 %v1464_v54  ;;  %v1090_v54 = vld [vmem:[#allocation5 + $0x28] sm:$0xff] }
 0x132   :  { %1679 = vmatpush2.msra.mxu0 %v1463_v1  ;;  %vm1154_vm2 = vcmp.ge.u32.totalorder %v1090_v54, 858993459  ;;  %v1105_v54 = vld [vmem:[#allocation5 + $0xa0] sm:$0xff] }
 0x133   :  { %1680 = vmatprep.subr.mxu0 %v1462_v46  ;;  %vm1169_vm11 = vcmp.ge.u32.totalorder %v1105_v54, 858993459 }
 0x134   :  { %1681 = vmatpush2.msra.mxu0 %v1461_v57  ;;  %v604_v63 = vpop.f32.mrf.mxu1 }
 0x135   :  { %1682 = vmatprep.subr.mxu0 %v1460_v4  ;;  %v1089_v4 = vld [vmem:[#allocation5 + $0x20] sm:$0xff] }
 0x136   :  { %1683 = vmatpush2.msra.mxu0 %v1459_v17  ;;  %v606_v2 = vpop.f32.mrf.mxu1  ;;  %vm1153_vm3 = vcmp.ge.u32.totalorder %v1089_v4, 858993459 }
 0x137   :  { %1684 = vmatprep.subr.mxu0 %v1458_v58 }
 0x138   :  { %1685 = vmatpush2.msra.mxu0 %v1457_v20 }
 0x139   :  { %1686 = vmatprep.subr.mxu0 %v1456_v33 }
 0x13a   :  { %1687 = vmatpush2.msra.mxu0 %v1455_v9 }
 0x13b   :  { %1688 = vmatprep.subr.mxu0 %v1454_v36  ;;  %v610_v6 = vpop.f32.mrf.mxu1 }
 0x13c   :  { %1689 = vmatpush2.msra.mxu0 %v1453_v49  ;;  %v1094_v49 = vld [vmem:[#allocation5 + $0x48] sm:$0xff] }
 0x13d   :  { %1690 = vmatprep.subr.mxu0 %v1452_v27  ;;  %v612_v10 = vpop.f32.mrf.mxu1  ;;  %vm1158_vm4 = vcmp.ge.u32.totalorder %v1094_v49, 858993459 }
 0x13e   :  { %1691 = vmatpush2.msra.mxu0 %v1451_v8 }
 0x13f   :  { %1692 = vmatprep.subr.mxu0 %v1450_v42  ;;  %v1093_v42 = vld [vmem:[#allocation5 + $0x40] sm:$0xff] }
 0x140   :  { %1693 = vmatpush2.msra.mxu0 %v1449_v11  ;;  %vm1157_vm5 = vcmp.ge.u32.totalorder %v1093_v42, 858993459 }
 0x141   :  { %1694 = vmatprep.subr.mxu0 %v1448_v29  ;;  %v616_v24 = vpop.f32.mrf.mxu1 }
 0x142   :  { %1695 = vmatpush2.msra.mxu0 %v1447_v16 }
 0x143   :  { %1696 = vmatprep.subr.mxu0 %v1446_v22  ;;  %v618_v56 = vpop.f32.mrf.mxu1 }
 0x144   :  { %1697 = vmatpush2.msra.mxu0 %v1445_v34 }
 0x145   :  { %1698 = vmatprep.subr.mxu0 %v1444_v55  ;;  %v1098_v55 = vld [vmem:[#allocation5 + $0x68] sm:$0xff] }
 0x146   :  { %1699 = vmatpush2.msra.mxu0 %v1443_v18  ;;  %vm1162_vm6 = vcmp.ge.u32.totalorder %v1098_v55, 858993459 }
 0x147   :  { %1700 = vmatprep.subr.mxu0 %v1442_v53  ;;  %v622_v7 = vpop.f32.mrf.mxu1 }
 0x148   :  { %1701 = vmatpush2.msra.mxu0 %v1441_v13 }
 0x149   :  { %1702 = vmatprep.subr.mxu0 %v1440_v60  ;;  %v624_v39 = vpop.f32.mrf.mxu1  ;;  %v1097_v60 = vld [vmem:[#allocation5 + $0x60] sm:$0xff] }
 0x14a   :  { %1703 = vmatpush2.msra.mxu0 %v1439_v43  ;;  %vm1161_vm7 = vcmp.ge.u32.totalorder %v1097_v60, 858993459 }
 0x14b   :  { %1704 = vmatprep.subr.mxu0 %v1438_v26 }
 0x14c   :  { %1705 = vmatpush2.msra.mxu0 %v1437_v28 }
 0x14d   :  { %v443_v37 = vpop.f32.mrf.mxu0 }
 0x14e   :  { %v444_v31 = vadd.f32 %v443_v37, %v3181_v62 }
 0x14f   :  { %v445_v12 = vpop.f32.mrf.mxu0  ;;  %v628_v25 = vpop.f32.mrf.mxu1 }
 0x150   :  { %v605_v15 = vadd.f32 %v604_v63, %v444_v31  ;;  %v446_v48 = vadd.f32 %v445_v12, %v3185_v5 }
 0x151   :  { %v449_v21 = vpop.f32.mrf.mxu0  ;;  %v630_v50 = vpop.f32.mrf.mxu1 }
 0x152   :  { %v607_v23 = vadd.f32 %v606_v2, %v446_v48  ;;  %v450_v3 = vadd.f32 %v449_v21, %v3181_v62  ;;  %v1021_v30 = vmax.f32 %v605_v15, 0.0  ;;  %v1102_v48 = vld [vmem:[#allocation5 + $0x88] sm:$0xff] }
 0x153   :  { %v451_v32 = vpop.f32.mrf.mxu0  ;;  %vm1166_vm8 = vcmp.ge.u32.totalorder %v1102_v48, 858993459 }
 0x154   :  { %v1022_v44 = vmax.f32 %v607_v23, 0.0  ;;  %v611_v38 = vadd.f32 %v610_v6, %v450_v3  ;;  %v452_v41 = vadd.f32 %v451_v32, %v3185_v5  ;;  %v1213_v1 = vmul.f32 1.25, %v1021_v30  ;;  %v1101_v3 = vld [vmem:[#allocation5 + $0x80] sm:$0xff] }
 0x155   :  { %v455_v47 = vpop.f32.mrf.mxu0  ;;  %vm1165_vm9 = vcmp.ge.u32.totalorder %v1101_v3, 858993459 }
 0x156   :  { %v1214_v45 = vmul.f32 1.25, %v1022_v44  ;;  %v613_v51 = vadd.f32 %v612_v10, %v452_v41  ;;  %v456_v35 = vadd.f32 %v455_v47, %v3181_v62  ;;  %v1025_v46 = vmax.f32 %v611_v38, 0.0 }
 0x157   :  { %v457_v57 = vpop.f32.mrf.mxu0  ;;  %v634_v33 = vpop.f32.mrf.mxu1 }
 0x158   :  { %v1026_v17 = vmax.f32 %v613_v51, 0.0  ;;  %v617_v58 = vadd.f32 %v616_v24, %v456_v35  ;;  %v458_v63 = vadd.f32 %v457_v57, %v3185_v5  ;;  %2450 = vmatprep.mubr.msk.f32.mxu1 %vm1150_vm0, %v1214_v45  ;;  %v1217_v27 = vmul.f32 1.25, %v1025_v46  ;;  %v1106_v45 = vld [vmem:[#allocation5 + $0xa8] sm:$0xff] }
 0x159   :  { %v461_v20 = vpop.f32.mrf.mxu0  ;;  %2451 = vmatmul.mubr.msk.f32.vlgmr.msra.gmra.mxu1 %vm1149_vm1, %v1213_v1  ;;  %v636_v6 = vpop.f32.mrf.mxu1  ;;  %vm1170_vm10 = vcmp.ge.u32.totalorder %v1106_v45, 858993459 }
 0x15a   :  { %v1218_v9 = vmul.f32 1.25, %v1026_v17  ;;  %v619_v2 = vadd.f32 %v618_v56, %v458_v63  ;;  %v462_v36 = vadd.f32 %v461_v20, %v3181_v62  ;;  %v1029_v8 = vmax.f32 %v617_v58, 0.0 }
 0x15b   :  { %v463_v52 = vpop.f32.mrf.mxu0 }
 0x15c   :  { %v1030_v11 = vmax.f32 %v619_v2, 0.0  ;;  %v623_v10 = vadd.f32 %v622_v7, %v462_v36  ;;  %v464_v29 = vadd.f32 %v463_v52, %v3185_v5  ;;  %2452 = vmatprep.mubr.msk.f32.mxu1 %vm1154_vm2, %v1218_v9  ;;  %v1221_v18 = vmul.f32 1.25, %v1029_v8  ;;  %v640_v56 = vpop.f32.mrf.mxu1 }
 0x15d   :  { %v467_v16 = vpop.f32.mrf.mxu0  ;;  %2453 = vmatmul.mubr.msk.f32.gmra.mxu1 %vm1153_vm3, %v1217_v27  ;;  %v1109_v27 = vld [vmem:[#allocation5 + $0xc0] sm:$0xff] }
 0x15e   :  { %v1222_v22 = vmul.f32 1.25, %v1030_v11  ;;  %v625_v34 = vadd.f32 %v624_v39, %v464_v29  ;;  %v468_v24 = vadd.f32 %v467_v16, %v3181_v62  ;;  %v1033_v53 = vmax.f32 %v623_v10, 0.0  ;;  %v642_v37 = vpop.f32.mrf.mxu1 }
 0x15f   :  { %v469_v13 = vpop.f32.mrf.mxu0  ;;  %vm1173_vm13 = vcmp.ge.u32.totalorder %v1109_v27, 858993459 }
 0x160   :  { %v1034_v43 = vmax.f32 %v625_v34, 0.0  ;;  %v629_v26 = vadd.f32 %v628_v25, %v468_v24  ;;  %v470_v28 = vadd.f32 %v469_v13, %v3185_v5  ;;  %2454 = vmatprep.mubr.msk.f32.mxu1 %vm1158_vm4, %v1222_v22  ;;  %v1225_v39 = vmul.f32 1.25, %v1033_v53  ;;  %v1114_v22 = vld [vmem:[#allocation5 + $0xe8] sm:$0xff] }
 0x161   :  { %v473_v7 = vpop.f32.mrf.mxu0  ;;  %2455 = vmatmul.mubr.msk.f32.gmra.mxu1 %vm1157_vm5, %v1221_v18  ;;  %v1113_v18 = vld [vmem:[#allocation5 + $0xe0] sm:$0xff]  ;;  %vm1178_vm14 = vcmp.ge.u32.totalorder %v1114_v22, 858993459 }
 0x162   :  { %v1226_v31 = vmul.f32 1.25, %v1034_v43  ;;  %v631_v12 = vadd.f32 %v630_v50, %v470_v28  ;;  %v474_v15 = vadd.f32 %v473_v7, %v3181_v62  ;;  %v1037_v21 = vmax.f32 %v629_v26, 0.0  ;;  %v646_v14 = vpop.f32.mrf.mxu1  ;;  %v1129_v22 = vld [vmem:[#allocation5 + $0x160] sm:$0xff] }
 0x163   :  { %v475_v23 = vpop.f32.mrf.mxu0  ;;  %vm1177_vm15 = vcmp.ge.u32.totalorder %v1113_v18, 858993459 }
 0x164   :  { %v1038_v40 = vmax.f32 %v631_v12, 0.0  ;;  %v635_v30 = vadd.f32 %v634_v33, %v474_v15  ;;  %v476_v32 = vadd.f32 %v475_v23, %v3185_v5  ;;  %2456 = vmatprep.mubr.msk.f32.mxu1 %vm1162_vm6, %v1226_v31  ;;  %v648_v47 = vpop.f32.mrf.mxu1  ;;  %v1229_v51 = vmul.f32 1.25, %v1037_v21  ;;  %v1110_v33 = vld [vmem:[#allocation5 + $0xc8] sm:$0xff] }
 0x165   :  { %v479_v44 = vpop.f32.mrf.mxu0  ;;  %2457 = vmatmul.mubr.msk.f32.gmra.mxu1 %vm1161_vm7, %v1225_v39  ;;  %vm1174_vm12 = vcmp.ge.u32.totalorder %v1110_v33, 858993459  ;;  %v1117_v39 = vld [vmem:[#allocation5 + $0x100] sm:$0xff]  ;;  %vm1193_vm7 = vcmp.ge.u32.totalorder %v1129_v22, 858993459  ;;  %v1146_v22 = vld [vmem:[#allocation5 + $0x1e8] sm:$0xff] }
 0x166   :  { %v1230_v38 = vmul.f32 1.25, %v1038_v40  ;;  %v637_v41 = vadd.f32 %v636_v6, %v476_v32  ;;  %v480_v25 = vadd.f32 %v479_v44, %v3181_v62  ;;  %v1041_v35 = vmax.f32 %v635_v30, 0.0  ;;  %v1122_v44 = vld [vmem:[#allocation5 + $0x128] sm:$0xff]  ;;  %v1125_v33 = vld [vmem:[#allocation5 + $0x140] sm:$0xff] }
 0x167   :  { %v481_v50 = vpop.f32.mrf.mxu0  ;;  %v652_v17 = vpop.f32.mrf.mxu1  ;;  %vm1181_vm1 = vcmp.ge.u32.totalorder %v1117_v39, 858993459  ;;  %vm1186_vm2 = vcmp.ge.u32.totalorder %v1122_v44, 858993459  ;;  %vm1189_vm5 = vcmp.ge.u32.totalorder %v1125_v33, 858993459 }
 0x168   :  { %v1042_v1 = vmax.f32 %v637_v41, 0.0  ;;  %v641_v46 = vadd.f32 %v640_v56, %v480_v25  ;;  %v482_v57 = vadd.f32 %v481_v50, %v3185_v5  ;;  %2458 = vmatprep.mubr.msk.f32.mxu1 %vm1166_vm8, %v1230_v38  ;;  %v1233_v9 = vmul.f32 1.25, %v1041_v35  ;;  %v1138_v44 = vld [vmem:[#allocation5 + $0x1a8] sm:$0xff] }
 0x169   :  { %v485_v4 = vpop.f32.mrf.mxu0  ;;  %2459 = vmatmul.mubr.msk.f32.gmra.mxu1 %vm1165_vm9, %v1229_v51  ;;  %v654_v49 = vpop.f32.mrf.mxu1 }
 0x16a   :  { %v1234_v58 = vmul.f32 1.25, %v1042_v1  ;;  %v643_v63 = vadd.f32 %v642_v37, %v482_v57  ;;  %v486_v20 = vadd.f32 %v485_v4, %v3181_v62  ;;  %v1045_v2 = vmax.f32 %v641_v46, 0.0  ;;  %v1118_v37 = vld [vmem:[#allocation5 + $0x108] sm:$0xff] }
 0x16b   :  { %v487_v36 = vpop.f32.mrf.mxu0  ;;  %vm1182_vm0 = vcmp.ge.u32.totalorder %v1118_v37, 858993459 }
 0x16c   :  { %v1046_v8 = vmax.f32 %v643_v63, 0.0  ;;  %v647_v52 = vadd.f32 %v646_v14, %v486_v20  ;;  %v488_v6 = vadd.f32 %v487_v36, %v3185_v5  ;;  %2460 = vmatprep.mubr.msk.f32.mxu1 %vm1170_vm10, %v1234_v58  ;;  %v658_v16 = vpop.f32.mrf.mxu1  ;;  %v1237_v34 = vmul.f32 1.25, %v1045_v2  ;;  %v1126_v58 = vld [vmem:[#allocation5 + $0x148] sm:$0xff] }
 0x16d   :  { %v491_v42 = vpop.f32.mrf.mxu0  ;;  %2461 = vmatmul.mubr.msk.f32.gmra.mxu1 %vm1169_vm11, %v1233_v9  ;;  %vm1190_vm4 = vcmp.ge.u32.totalorder %v1126_v58, 858993459  ;;  %vm1202_vm10 = vcmp.ge.u32.totalorder %v1138_v44, 858993459 }
 0x16e   :  { %v1238_v11 = vmul.f32 1.25, %v1046_v8  ;;  %v649_v10 = vadd.f32 %v648_v47, %v488_v6  ;;  %v492_v29 = vadd.f32 %v491_v42, %v3181_v62  ;;  %v1049_v24 = vmax.f32 %v647_v52, 0.0  ;;  %v660_v60 = vpop.f32.mrf.mxu1  ;;  %v1121_v47 = vld [vmem:[#allocation5 + $0x120] sm:$0xff] }
 0x16f   :  { %v493_v55 = vpop.f32.mrf.mxu0  ;;  %vm1185_vm3 = vcmp.ge.u32.totalorder %v1121_v47, 858993459 }
 0x170   :  { %v1050_v53 = vmax.f32 %v649_v10, 0.0  ;;  %v653_v13 = vadd.f32 %v652_v17, %v492_v29  ;;  %v494_v56 = vadd.f32 %v493_v55, %v3185_v5  ;;  %2462 = vmatprep.mubr.msk.f32.mxu1 %vm1174_vm12, %v1238_v11  ;;  %v1241_v31 = vmul.f32 1.25, %v1049_v24  ;;  %v1130_v10 = vld [vmem:[#allocation5 + $0x168] sm:$0xff] }
 0x171   :  { %v497_v43 = vpop.f32.mrf.mxu0  ;;  %2463 = vmatmul.mubr.msk.f32.gmra.mxu1 %vm1173_vm13, %v1237_v34  ;;  %vm1194_vm6 = vcmp.ge.u32.totalorder %v1130_v10, 858993459 }
 0x172   :  { %v1242_v26 = vmul.f32 1.25, %v1050_v53  ;;  %v655_v28 = vadd.f32 %v654_v49, %v494_v56  ;;  %v498_v7 = vadd.f32 %v497_v43, %v3181_v62  ;;  %v1053_v12 = vmax.f32 %v653_v13, 0.0  ;;  %v664_v15 = vpop.f32.mrf.mxu1 }
 0x173   :  { %v499_v48 = vpop.f32.mrf.mxu0 }
 0x174   :  { %v1054_v21 = vmax.f32 %v655_v28, 0.0  ;;  %v659_v23 = vadd.f32 %v658_v16, %v498_v7  ;;  %v500_v3 = vadd.f32 %v499_v48, %v3185_v5  ;;  %2464 = vmatprep.mubr.msk.f32.mxu1 %vm1178_vm14, %v1242_v26  ;;  %v666_v40 = vpop.f32.mrf.mxu1  ;;  %v1245_v38 = vmul.f32 1.25, %v1053_v12  ;;  %v1134_v28 = vld [vmem:[#allocation5 + $0x188] sm:$0xff] }
 0x175   :  { %2465 = vmatmul.mubr.msk.f32.gmra.mxu1 %vm1177_vm15, %v1241_v31  ;;  %v503_v14 = vpop.f32.mrf.mxu0  ;;  %v1133_v31 = vld [vmem:[#allocation5 + $0x180] sm:$0xff]  ;;  %vm1198_vm8 = vcmp.ge.u32.totalorder %v1134_v28, 858993459  ;;  %vm1210_vm14 = vcmp.ge.u32.totalorder %v1146_v22, 858993459 }
 0x176   :  { %v1246_v30 = vmul.f32 1.25, %v1054_v21  ;;  %v661_v32 = vadd.f32 %v660_v60, %v500_v3  ;;  %v1057_v41 = vmax.f32 %v659_v23, 0.0  ;;  %v504_v25 = vadd.f32 %v503_v14, %v3181_v62 }
 0x177   :  { %v670_v51 = vpop.f32.mrf.mxu1  ;;  %v505_v35 = vpop.f32.mrf.mxu0  ;;  %vm1197_vm9 = vcmp.ge.u32.totalorder %v1133_v31, 858993459  ;;  %v3635_v14 = vsub.s32 2, %v3166_v59  ;;  %v1087_v31 = vld [vmem:[#allocation5 + $0x10] sm:$0xff] }
 0x178   :  { %v1058_v45 = vmax.f32 %v661_v32, 0.0  ;;  %2466 = vmatprep.mubr.msk.f32.mxu1 %vm1182_vm0, %v1246_v30  ;;  %v665_v50 = vadd.f32 %v664_v15, %v504_v25  ;;  %v506_v54 = vadd.f32 %v505_v35, %v3185_v5  ;;  %v1249_v57 = vmul.f32 1.25, %v1057_v41  ;;  %v1137_v25 = vld [vmem:[#allocation5 + $0x1a0] sm:$0xff] }
 0x179   :  { %2467 = vmatmul.mubr.msk.f32.gmra.mxu1 %vm1181_vm1, %v1245_v38  ;;  %v672_v46 = vpop.f32.mrf.mxu1  ;;  %vm1201_vm11 = vcmp.ge.u32.totalorder %v1137_v25, 858993459  ;;  %vm1151_vm1 = vcmp.ge.u32.totalorder %v1087_v31, 858993459 }
 0x17a   :  { %v1250_v1 = vmul.f32 1.25, %v1058_v45  ;;  %v667_v4 = vadd.f32 %v666_v40, %v506_v54  ;;  %v509_v17 = vpop.f32.mrf.mxu0  ;;  %v1061_v63 = vmax.f32 %v665_v50, 0.0  ;;  %v371_v54 = vsub.s32 3, %v3166_v59 }
 0x17b   :  { %v510_v20 = vadd.f32 %v509_v17, %v3181_v62 }
 0x17c   :  { %2468 = vmatprep.mubr.msk.f32.mxu1 %vm1186_vm2, %v1250_v1  ;;  %v1062_v9 = vmax.f32 %v667_v4, 0.0  ;;  %v676_v2 = vpop.f32.mrf.mxu1  ;;  %v511_v36 = vpop.f32.mrf.mxu0  ;;  %v1253_v6 = vmul.f32 1.25, %v1061_v63  ;;  %v1142_v63 = vld [vmem:[#allocation5 + $0x1c8] sm:$0xff] }
 0x17d   :  { %2469 = vmatmul.mubr.msk.f32.gmra.mxu1 %vm1185_vm3, %v1249_v57  ;;  %v671_v49 = vadd.f32 %v670_v51, %v510_v20  ;;  %v512_v27 = vadd.f32 %v511_v36, %v3185_v5  ;;  %v3222_v57 = vrot.slane %v3174_v0, %v3635_v14  ;;  %vm1206_vm12 = vcmp.ge.u32.totalorder %v1142_v63, 858993459 }
 0x17e   :  { %v1254_v8 = vmul.f32 1.25, %v1062_v9  ;;  %v678_v52 = vpop.f32.mrf.mxu1  ;;  %v1141_v9 = vld [vmem:[#allocation5 + $0x1c0] sm:$0xff] }
 0x17f   :  { %v673_v42 = vadd.f32 %v672_v46, %v512_v27  ;;  %v515_v11 = vpop.f32.mrf.mxu0  ;;  %v1065_v29 = vmax.f32 %v671_v49, 0.0  ;;  %v3226_v27 = vrot.slane %v3174_v0, %v371_v54  ;;  %vm1205_vm13 = vcmp.ge.u32.totalorder %v1141_v9, 858993459 }
 0x180   :  { %v516_v16 = vadd.f32 %v515_v11, %v3181_v62  ;;  %2470 = vmatprep.mubr.msk.f32.mxu1 %vm1190_vm4, %v1254_v8 }
 0x181   :  { %v1066_v34 = vmax.f32 %v673_v42, 0.0  ;;  %v682_v24 = vpop.f32.mrf.mxu1  ;;  %v517_v55 = vpop.f32.mrf.mxu0  ;;  %2471 = vmatmul.mubr.msk.f32.gmra.mxu1 %vm1189_vm5, %v1253_v6  ;;  %v1257_v60 = vmul.f32 1.25, %v1065_v29 }
 0x182   :  { %v677_v18 = vadd.f32 %v676_v2, %v516_v16  ;;  %v518_v53 = vadd.f32 %v517_v55, %v3185_v5 }
 0x183   :  { %v1258_v13 = vmul.f32 1.25, %v1066_v34  ;;  %v684_v56 = vpop.f32.mrf.mxu1  ;;  %v1145_v34 = vld [vmem:[#allocation5 + $0x1e0] sm:$0xff] }
 0x184   :  { %v679_v43 = vadd.f32 %v678_v52, %v518_v53  ;;  %v521_v26 = vpop.f32.mrf.mxu0  ;;  %v1069_v7 = vmax.f32 %v677_v18, 0.0  ;;  %vm1209_vm15 = vcmp.ge.u32.totalorder %v1145_v34, 858993459 }
 0x185   :  { %v522_v37 = vadd.f32 %v521_v26, %v3181_v62  ;;  %2472 = vmatprep.mubr.msk.f32.mxu1 %vm1194_vm6, %v1258_v13 }
 0x186   :  { %v1070_v12 = vmax.f32 %v679_v43, 0.0  ;;  %v688_v15 = vpop.f32.mrf.mxu1  ;;  %v523_v48 = vpop.f32.mrf.mxu0  ;;  %2473 = vmatmul.mubr.msk.f32.gmra.mxu1 %vm1193_vm7, %v1257_v60  ;;  %v1261_v40 = vmul.f32 1.25, %v1069_v7  ;;  %v1088_v43 = vld [vmem:[#allocation5 + $0x18] sm:$0xff] }
 0x187   :  { %v683_v39 = vadd.f32 %v682_v24, %v522_v37  ;;  %v524_v21 = vadd.f32 %v523_v48, %v3185_v5  ;;  %vm1152_vm0 = vcmp.ge.u32.totalorder %v1088_v43, 858993459 }
 0x188   :  { %v1262_v23 = vmul.f32 1.25, %v1070_v12  ;;  %v690_v3 = vpop.f32.mrf.mxu1 }
 0x189   :  { %v685_v30 = vadd.f32 %v684_v56, %v524_v21  ;;  %v527_v32 = vpop.f32.mrf.mxu0  ;;  %v1073_v38 = vmax.f32 %v683_v39, 0.0 }
 0x18a   :  { %v528_v41 = vadd.f32 %v527_v32, %v3181_v62  ;;  %2474 = vmatprep.mubr.msk.f32.mxu1 %vm1198_vm8, %v1262_v23 }
 0x18b   :  { %v1074_v47 = vmax.f32 %v685_v30, 0.0  ;;  %v694_v45 = vpop.f32.mrf.mxu1  ;;  %v529_v51 = vpop.f32.mrf.mxu0  ;;  %2475 = vmatmul.mubr.msk.f32.gmra.mxu1 %vm1197_vm9, %v1261_v40  ;;  %v1265_v4 = vmul.f32 1.25, %v1073_v38 }
 0x18c   :  { %v689_v35 = vadd.f32 %v688_v15, %v528_v41  ;;  %v530_v50 = vadd.f32 %v529_v51, %v3185_v5 }
 0x18d   :  { %v1266_v1 = vmul.f32 1.25, %v1074_v47  ;;  %v696_v46 = vpop.f32.mrf.mxu1 }
 0x18e   :  { %v691_v17 = vadd.f32 %v690_v3, %v530_v50  ;;  %v533_v58 = vpop.f32.mrf.mxu0  ;;  %v1077_v20 = vmax.f32 %v689_v35, 0.0  ;;  %v1092_v3 = vld [vmem:[#allocation5 + $0x38] sm:$0xff] }
 0x18f   :  { %v534_v33 = vadd.f32 %v533_v58, %v3181_v62  ;;  %2476 = vmatprep.mubr.msk.f32.mxu1 %vm1202_vm10, %v1266_v1  ;;  %vm1156_vm2 = vcmp.ge.u32.totalorder %v1092_v3, 858993459  ;;  %v2000_v3 = vld [vmem:[#allocation11 + $0x128] sm:$0xff] }
 0x190   :  { %v1078_v2 = vmax.f32 %v691_v17, 0.0  ;;  %v765_v36 = vpop.f32.mrf.mxu1  ;;  %v535_v49 = vpop.f32.mrf.mxu0  ;;  %2477 = vmatmul.mubr.msk.f32.gmra.mxu1 %vm1201_vm11, %v1265_v4  ;;  %v1269_v62 = vmul.f32 1.25, %v1077_v20 }
 0x191   :  { %v695_v8 = vadd.f32 %v694_v45, %v534_v33  ;;  %v766_v52 = vadd.f32 %v765_v36, %v3222_v57  ;;  %v536_v6 = vadd.f32 %v535_v49, %v3185_v5  ;;  %v1091_v45 = vld [vmem:[#allocation5 + $0x30] sm:$0xff] }
 0x192   :  { %v1270_v42 = vmul.f32 1.25, %v1078_v2  ;;  %v767_v11 = vpop.f32.mrf.mxu1  ;;  %v926_v10 = vpop.f32.mrf.mxu0  ;;  %vm1155_vm3 = vcmp.ge.u32.totalorder %v1091_v45, 858993459  ;;  %v1095_v2 = vld [vmem:[#allocation5 + $0x50] sm:$0xff]  ;;  %v1996_v45 = vld [vmem:[#allocation11 + $0x108] sm:$0xff] }
 0x193   :  { %v697_v29 = vadd.f32 %v696_v46, %v536_v6  ;;  %v927_v16 = vadd.f32 %v926_v10, %v766_v52  ;;  %v1081_v24 = vmax.f32 %v695_v8, 0.0  ;;  %v768_v0 = vadd.f32 %v767_v11, %v3226_v27  ;;  %v1096_v46 = vld [vmem:[#allocation5 + $0x58] sm:$0xff]  ;;  %v2009_v11 = vld [vmem:[#allocation11 + $0x170] sm:$0xff]  ;;  %v2008_v10 = vld [vmem:[#allocation11 + $0x168] sm:$0xff] }
 0x194   :  { %v771_v55 = vpop.f32.mrf.mxu1  ;;  %v928_v18 = vpop.f32.mrf.mxu0  ;;  %2478 = vmatprep.mubr.msk.f32.mxu1 %vm1206_vm12, %v1270_v42  ;;  %vm1160_vm4 = vcmp.ge.u32.totalorder %v1096_v46, 858993459  ;;  %v1100_v42 = vld [vmem:[#allocation5 + $0x78] sm:$0xff]  ;;  %vm1159_vm5 = vcmp.ge.u32.totalorder %v1095_v2, 858993459  ;;  %2076 = vmatprep.subr.mxu1 %v2009_v11 }
 0x195   :  { %v1082_v53 = vmax.f32 %v697_v29, 0.0  ;;  %v772_v13 = vadd.f32 %v771_v55, %v3222_v57  ;;  %2479 = vmatmul.mubr.msk.f32.gmra.mxu1 %vm1205_vm13, %v1269_v62  ;;  %v929_v5 = vadd.f32 %v928_v18, %v768_v0  ;;  %v1023_v28 = vmax.f32 %v927_v16, 0.0  ;;  %v1099_v55 = vld [vmem:[#allocation5 + $0x70] sm:$0xff]  ;;  %v2006_v18 = vld [vmem:[#allocation11 + $0x158] sm:$0xff] }
 0x196   :  { %v773_v56 = vpop.f32.mrf.mxu1  ;;  %v932_v60 = vpop.f32.mrf.mxu0  ;;  %v1273_v12 = vmul.f32 1.25, %v1081_v24  ;;  %2077 = vmatpush1.msra.mxu1 %v2008_v10  ;;  %vm1164_vm6 = vcmp.ge.u32.totalorder %v1100_v42, 858993459  ;;  %vm1163_vm7 = vcmp.ge.u32.totalorder %v1099_v55, 858993459 }
 0x197   :  { %v1274_v26 = vmul.f32 1.25, %v1082_v53  ;;  %v774_v7 = vadd.f32 %v773_v56, %v3226_v27  ;;  %v933_v37 = vadd.f32 %v932_v60, %v772_v13  ;;  %v1024_v15 = vmax.f32 %v929_v5, 0.0  ;;  %v2005_v53 = vld [vmem:[#allocation11 + $0x150] sm:$0xff]  ;;  %2078 = vmatprep.subr.mxu1 %v2006_v18 }
 0x198   :  { %v777_v48 = vpop.f32.mrf.mxu1  ;;  %v934_v39 = vpop.f32.mrf.mxu0  ;;  %v1215_v38 = vmul.f32 1.25, %v1023_v28  ;;  %2079 = vmatpush1.msra.mxu1 %v2005_v53  ;;  %v2003_v28 = vld [vmem:[#allocation11 + $0x140] sm:$0xff] }
 0x199   :  { %v778_v21 = vadd.f32 %v777_v48, %v3222_v57  ;;  %v935_v23 = vadd.f32 %v934_v39, %v774_v7  ;;  %2480 = vmatprep.mubr.msk.f32.mxu1 %vm1210_vm14, %v1274_v26  ;;  %v1216_v40 = vmul.f32 1.25, %v1024_v15  ;;  %v1027_v30 = vmax.f32 %v933_v37, 0.0  ;;  %v1104_v26 = vld [vmem:[#allocation5 + $0x98] sm:$0xff]  ;;  %2080 = vmatprep.subr.mxu1 %v2003_v28 }
 0x19a   :  { %v779_v32 = vpop.f32.mrf.mxu1  ;;  %v938_v44 = vpop.f32.mrf.mxu0  ;;  %2481 = vmatmul.mubr.msk.f32.gmra.mxu1 %vm1209_vm15, %v1273_v12  ;;  %v2002_v7 = vld [vmem:[#allocation11 + $0x138] sm:$0xff]  ;;  %vm1168_vm8 = vcmp.ge.u32.totalorder %v1104_v26, 858993459 }
 0x19b   :  { %v1028_v41 = vmax.f32 %v935_v23, 0.0  ;;  %v780_v25 = vadd.f32 %v779_v32, %v3226_v27  ;;  %v939_v47 = vadd.f32 %v938_v44, %v778_v21  ;;  %2482 = vmatprep.mubr.msk.f32.mxu0 %vm1152_vm0, %v1216_v40  ;;  %v1219_v4 = vmul.f32 1.25, %v1027_v30  ;;  %v1103_v23 = vld [vmem:[#allocation5 + $0x90] sm:$0xff]  ;;  %2081 = vmatpush1.msra.mxu1 %v2002_v7  ;;  %v1999_v40 = vld [vmem:[#allocation11 + $0x120] sm:$0xff] }
 0x19c   :  { %v783_v51 = vpop.f32.mrf.mxu1  ;;  %v940_v35 = vpop.f32.mrf.mxu0  ;;  %2483 = vmatmul.mubr.msk.f32.vlgmr.msra.gmra.mxu0 %vm1151_vm1, %v1215_v38  ;;  %2082 = vmatprep.subr.mxu1 %v2000_v3  ;;  %vm1167_vm9 = vcmp.ge.u32.totalorder %v1103_v23, 858993459 }
 0x19d   :  { %v1220_v50 = vmul.f32 1.25, %v1028_v41  ;;  %v784_v54 = vadd.f32 %v783_v51, %v3222_v57  ;;  %v941_v1 = vadd.f32 %v940_v35, %v780_v25  ;;  %v1031_v63 = vmax.f32 %v939_v47, 0.0  ;;  %v1108_v25 = vld [vmem:[#allocation5 + $0xb8] sm:$0xff]  ;;  %2083 = vmatpush1.msra.mxu1 %v1999_v40  ;;  %v1997_v47 = vld [vmem:[#allocation11 + $0x110] sm:$0xff] }
 0x19e   :  { %v785_v17 = vpop.f32.mrf.mxu1  ;;  %v944_v58 = vpop.f32.mrf.mxu0  ;;  %2084 = vmatprep.subr.mxu1 %v1997_v47  ;;  %vm1172_vm10 = vcmp.ge.u32.totalorder %v1108_v25, 858993459 }
 0x19f   :  { %v1032_v20 = vmax.f32 %v941_v1, 0.0  ;;  %v786_v33 = vadd.f32 %v785_v17, %v3226_v27  ;;  %v945_v9 = vadd.f32 %v944_v58, %v784_v54  ;;  %2484 = vmatprep.mubr.msk.f32.mxu0 %vm1156_vm2, %v1220_v50  ;;  %v1223_v22 = vmul.f32 1.25, %v1031_v63  ;;  %v1107_v17 = vld [vmem:[#allocation5 + $0xb0] sm:$0xff]  ;;  %2085 = vmatpush1.msra.mxu1 %v1996_v45  ;;  %v1994_v58 = vld [vmem:[#allocation11 + $0xf8] sm:$0xff] }
 0x1a0   :  { %v789_v36 = vpop.f32.mrf.mxu1  ;;  %v946_v49 = vpop.f32.mrf.mxu0  ;;  %2485 = vmatmul.mubr.msk.f32.gmra.mxu0 %vm1155_vm3, %v1219_v4  ;;  %v1993_v63 = vld [vmem:[#allocation11 + $0xf0] sm:$0xff]  ;;  %2086 = vmatprep.subr.mxu1 %v1994_v58  ;;  %vm1171_vm11 = vcmp.ge.u32.totalorder %v1107_v17, 858993459 }
 0x1a1   :  { %v1224_v8 = vmul.f32 1.25, %v1032_v20  ;;  %v790_v52 = vadd.f32 %v789_v36, %v3222_v57  ;;  %v947_v6 = vadd.f32 %v946_v49, %v786_v33  ;;  %v1035_v62 = vmax.f32 %v945_v9, 0.0  ;;  %v1112_v49 = vld [vmem:[#allocation5 + $0xd8] sm:$0xff]  ;;  %2087 = vmatpush1.msra.mxu1 %v1993_v63 }
 0x1a2   :  { %v791_v29 = vpop.f32.mrf.mxu1  ;;  %v950_v16 = vpop.f32.mrf.mxu0  ;;  %vm1176_vm12 = vcmp.ge.u32.totalorder %v1112_v49, 858993459 }
 0x1a3   :  { %v1036_v34 = vmax.f32 %v947_v6, 0.0  ;;  %v792_v24 = vadd.f32 %v791_v29, %v3226_v27  ;;  %v951_v0 = vadd.f32 %v950_v16, %v790_v52  ;;  %2486 = vmatprep.mubr.msk.f32.mxu0 %vm1160_vm4, %v1224_v8  ;;  %v1227_v37 = vmul.f32 1.25, %v1035_v62  ;;  %v1991_v8 = vld [vmem:[#allocation11 + $0xe0] sm:$0xff]  ;;  %v1990_v52 = vld [vmem:[#allocation11 + $0xd8] sm:$0xff] }
 0x1a4   :  { %v795_v13 = vpop.f32.mrf.mxu1  ;;  %v952_v5 = vpop.f32.mrf.mxu0  ;;  %2487 = vmatmul.mubr.msk.f32.gmra.mxu0 %vm1159_vm5, %v1223_v22  ;;  %2088 = vmatprep.subr.mxu1 %v1991_v8  ;;  %v1111_v22 = vld [vmem:[#allocation5 + $0xd0] sm:$0xff] }
 0x1a5   :  { %v1228_v56 = vmul.f32 1.25, %v1036_v34  ;;  %v796_v60 = vadd.f32 %v795_v13, %v3222_v57  ;;  %v953_v43 = vadd.f32 %v952_v5, %v792_v24  ;;  %v1039_v15 = vmax.f32 %v951_v0, 0.0  ;;  %2089 = vmatpush1.msra.mxu1 %v1990_v52  ;;  %v1988_v34 = vld [vmem:[#allocation11 + $0xc8] sm:$0xff]  ;;  %v1987_v24 = vld [vmem:[#allocation11 + $0xc0] sm:$0xff]  ;;  %v1116_v5 = vld [vmem:[#allocation5 + $0xf8] sm:$0xff] }
 0x1a6   :  { %v797_v31 = vpop.f32.mrf.mxu1  ;;  %v956_v12 = vpop.f32.mrf.mxu0  ;;  %2090 = vmatprep.subr.mxu1 %v1988_v34  ;;  %vm1175_vm13 = vcmp.ge.u32.totalorder %v1111_v22, 858993459  ;;  %vm1180_vm14 = vcmp.ge.u32.totalorder %v1116_v5, 858993459 }
 0x1a7   :  { %v1040_v48 = vmax.f32 %v953_v43, 0.0  ;;  %v798_v39 = vadd.f32 %v797_v31, %v3226_v27  ;;  %v957_v21 = vadd.f32 %v956_v12, %v796_v60  ;;  %2488 = vmatprep.mubr.msk.f32.mxu0 %vm1164_vm6, %v1228_v56  ;;  %v1231_v54 = vmul.f32 1.25, %v1039_v15  ;;  %2091 = vmatpush1.msra.mxu1 %v1987_v24  ;;  %v1985_v56 = vld [vmem:[#allocation11 + $0xb0] sm:$0xff]  ;;  %v1984_v60 = vld [vmem:[#allocation11 + $0xa8] sm:$0xff] }
 0x1a8   :  { %v801_v30 = vpop.f32.mrf.mxu1  ;;  %v958_v32 = vpop.f32.mrf.mxu0  ;;  %2489 = vmatmul.mubr.msk.f32.gmra.mxu0 %vm1163_vm7, %v1227_v37  ;;  %2092 = vmatprep.subr.mxu1 %v1985_v56  ;;  %v1115_v15 = vld [vmem:[#allocation5 + $0xf0] sm:$0xff] }
 0x1a9   :  { %v1232_v44 = vmul.f32 1.25, %v1040_v48  ;;  %v802_v38 = vadd.f32 %v801_v30, %v3222_v57  ;;  %v959_v41 = vadd.f32 %v958_v32, %v798_v39  ;;  %v1043_v51 = vmax.f32 %v957_v21, 0.0  ;;  %2093 = vmatpush1.msra.mxu1 %v1984_v60  ;;  %v1982_v48 = vld [vmem:[#allocation11 + $0x98] sm:$0xff]  ;;  %v1981_v39 = vld [vmem:[#allocation11 + $0x90] sm:$0xff] }
 0x1aa   :  { %v803_v35 = vpop.f32.mrf.mxu1  ;;  %v962_v50 = vpop.f32.mrf.mxu0  ;;  %2094 = vmatprep.subr.mxu1 %v1982_v48  ;;  %v1120_v32 = vld [vmem:[#allocation5 + $0x118] sm:$0xff]  ;;  %vm1179_vm15 = vcmp.ge.u32.totalorder %v1115_v15, 858993459 }
 0x1ab   :  { %v1044_v1 = vmax.f32 %v959_v41, 0.0  ;;  %v804_v46 = vadd.f32 %v803_v35, %v3226_v27  ;;  %v963_v4 = vadd.f32 %v962_v50, %v802_v38  ;;  %2490 = vmatprep.mubr.msk.f32.mxu0 %vm1168_vm8, %v1232_v44  ;;  %v1235_v6 = vmul.f32 1.25, %v1043_v51  ;;  %2095 = vmatpush1.msra.mxu1 %v1981_v39  ;;  %v1979_v44 = vld [vmem:[#allocation11 + $0x80] sm:$0xff]  ;;  %v1978_v38 = vld [vmem:[#allocation11 + $0x78] sm:$0xff] }
 0x1ac   :  { %v807_v20 = vpop.f32.mrf.mxu1  ;;  %v964_v33 = vpop.f32.mrf.mxu0  ;;  %2491 = vmatmul.mubr.msk.f32.gmra.mxu0 %vm1167_vm9, %v1231_v54  ;;  %2096 = vmatprep.subr.mxu1 %v1979_v44  ;;  %v1119_v54 = vld [vmem:[#allocation5 + $0x110] sm:$0xff]  ;;  %vm1184_vm0 = vcmp.ge.u32.totalorder %v1120_v32, 858993459  ;;  %v3271_v44 = vld [vmem:[#allocation11 + $0x2f8] sm:$0xff] }
 0x1ad   :  { %v1236_v9 = vmul.f32 1.25, %v1044_v1  ;;  %v808_v2 = vadd.f32 %v807_v20, %v3222_v57  ;;  %v965_v36 = vadd.f32 %v964_v33, %v804_v46  ;;  %v1047_v10 = vmax.f32 %v963_v4, 0.0  ;;  %2097 = vmatpush1.msra.mxu1 %v1978_v38  ;;  %v1976_v1 = vld [vmem:[#allocation11 + $0x68] sm:$0xff]  ;;  %v1975_v46 = vld [vmem:[#allocation11 + $0x60] sm:$0xff]  ;;  %v1124_v33 = vld [vmem:[#allocation5 + $0x138] sm:$0xff]  ;;  %2578 = vmatprep.subr.mxu0 %v3271_v44 }
 0x1ae   :  { %v809_v42 = vpop.f32.mrf.mxu1  ;;  %v968_v11 = vpop.f32.mrf.mxu0  ;;  %2098 = vmatprep.subr.mxu1 %v1976_v1  ;;  %vm1183_vm1 = vcmp.ge.u32.totalorder %v1119_v54, 858993459  ;;  %vm1188_vm2 = vcmp.ge.u32.totalorder %v1124_v33, 858993459  ;;  %v2057_v32 = vld [vmem:[#allocation11 + $0x2f0] sm:$0xff]  ;;  %v2056_v38 = vld [vmem:[#allocation11 + $0x2e8] sm:$0xff] }
 0x1af   :  { %v1048_v62 = vmax.f32 %v965_v36, 0.0  ;;  %v810_v29 = vadd.f32 %v809_v42, %v3226_v27  ;;  %v969_v16 = vadd.f32 %v968_v11, %v808_v2  ;;  %2492 = vmatprep.mubr.msk.f32.mxu0 %vm1172_vm10, %v1236_v9  ;;  %v1239_v7 = vmul.f32 1.25, %v1047_v10  ;;  %2099 = vmatpush1.msra.mxu1 %v1975_v46  ;;  %v1973_v9 = vld [vmem:[#allocation11 + $0x50] sm:$0xff]  ;;  %v1972_v2 = vld [vmem:[#allocation11 + $0x48] sm:$0xff]  ;;  %v2054_v1 = vld [vmem:[#allocation11 + $0x2d8] sm:$0xff] }
 0x1b0   :  { %v813_v0 = vpop.f32.mrf.mxu1  ;;  %v970_v55 = vpop.f32.mrf.mxu0  ;;  %2493 = vmatmul.mubr.msk.f32.gmra.mxu0 %vm1171_vm11, %v1235_v6  ;;  %2100 = vmatprep.subr.mxu1 %v1973_v9  ;;  %v1123_v10 = vld [vmem:[#allocation5 + $0x130] sm:$0xff]  ;;  %v3278_v46 = vld [vmem:[#allocation11 + $0x2e0] sm:$0xff] }
 0x1b1   :  { %v1240_v18 = vmul.f32 1.25, %v1048_v62  ;;  %v814_v53 = vadd.f32 %v813_v0, %v3222_v57  ;;  %v971_v13 = vadd.f32 %v970_v55, %v810_v29  ;;  %v1051_v43 = vmax.f32 %v969_v16, 0.0  ;;  %2101 = vmatpush1.msra.mxu1 %v1972_v2  ;;  %v1970_v62 = vld [vmem:[#allocation11 + $0x38] sm:$0xff]  ;;  %v1969_v29 = vld [vmem:[#allocation11 + $0x30] sm:$0xff]  ;;  %v3282_v33 = vld [vmem:[#allocation11 + $0x160] sm:$0xff] }
 0x1b2   :  { %v815_v26 = vpop.f32.mrf.mxu1  ;;  %v974_v28 = vpop.f32.mrf.mxu0  ;;  %2102 = vmatprep.subr.mxu1 %v1970_v62  ;;  %v1128_v55 = vld [vmem:[#allocation5 + $0x158] sm:$0xff]  ;;  %vm1187_vm3 = vcmp.ge.u32.totalorder %v1123_v10, 858993459  ;;  %v3288_v10 = vld [vmem:[#allocation11 + $0x2c8] sm:$0xff] }
 0x1b3   :  { %v1052_v37 = vmax.f32 %v971_v13, 0.0  ;;  %v816_v31 = vadd.f32 %v815_v26, %v3226_v27  ;;  %v975_v12 = vadd.f32 %v974_v28, %v814_v53  ;;  %2494 = vmatprep.mubr.msk.f32.mxu0 %vm1176_vm12, %v1240_v18  ;;  %v1243_v41 = vmul.f32 1.25, %v1051_v43  ;;  %2103 = vmatpush1.msra.mxu1 %v1969_v29  ;;  %v1967_v18 = vld [vmem:[#allocation11 + $0x20] sm:$0xff]  ;;  %v1966_v53 = vld [vmem:[#allocation11 + $0x18] sm:$0xff] }
 0x1b4   :  { %v819_v21 = vpop.f32.mrf.mxu1  ;;  %v976_v23 = vpop.f32.mrf.mxu0  ;;  %2495 = vmatmul.mubr.msk.f32.gmra.mxu0 %vm1175_vm13, %v1239_v7  ;;  %2104 = vmatprep.subr.mxu1 %v1967_v18  ;;  %v1127_v7 = vld [vmem:[#allocation5 + $0x150] sm:$0xff]  ;;  %vm1192_vm4 = vcmp.ge.u32.totalorder %v1128_v55, 858993459  ;;  %v2050_v62 = vld [vmem:[#allocation11 + $0x2b8] sm:$0xff]  ;;  %v2048_v18 = vld [vmem:[#allocation11 + $0x2a8] sm:$0xff] }
 0x1b5   :  { %v1244_v3 = vmul.f32 1.25, %v1052_v37  ;;  %v820_v40 = vadd.f32 %v819_v21, %v3222_v57  ;;  %v977_v30 = vadd.f32 %v976_v23, %v816_v31  ;;  %v1055_v45 = vmax.f32 %v975_v12, 0.0  ;;  %2105 = vmatpush1.msra.mxu1 %v1966_v53  ;;  %v1964_v37 = vld [vmem:[#allocation11 + $0x8] sm:$0xff]  ;;  %v1963_v31 = vld [vmem:[#allocation11] sm:$0xff]  ;;  %v1132_v23 = vld [vmem:[#allocation5 + $0x178] sm:$0xff] }
 0x1b6   :  { %v821_v25 = vpop.f32.mrf.mxu1  ;;  %v980_v47 = vpop.f32.mrf.mxu0  ;;  %2106 = vmatprep.subr.mxu1 %v1964_v37  ;;  %vm1191_vm5 = vcmp.ge.u32.totalorder %v1127_v7, 858993459  ;;  %vm1196_vm6 = vcmp.ge.u32.totalorder %v1132_v23, 858993459  ;;  %v3296_v53 = vld [vmem:[#allocation11 + $0x2b0] sm:$0xff] }
 0x1b7   :  { %v1056_v51 = vmax.f32 %v977_v30, 0.0  ;;  %v822_v35 = vadd.f32 %v821_v25, %v3226_v27  ;;  %v981_v50 = vadd.f32 %v980_v47, %v820_v40  ;;  %2496 = vmatprep.mubr.msk.f32.mxu0 %vm1180_vm14, %v1244_v3  ;;  %v1247_v52 = vmul.f32 1.25, %v1055_v45  ;;  %2107 = vmatpush1.msra.mxu1 %v1963_v31  ;;  %v1139_v37 = vld [vmem:[#allocation5 + $0x1b0] sm:$0xff] }
 0x1b8   :  { %v825_v4 = vpop.f32.mrf.mxu1  ;;  %v982_v17 = vpop.f32.mrf.mxu0  ;;  %2497 = vmatmul.mubr.msk.f32.gmra.mxu0 %vm1179_vm15, %v1243_v41  ;;  %2108 = vmatprep.subr.mxu1 %v2057_v32  ;;  %v3301_v31 = vld [vmem:[#allocation11 + $0x130] sm:$0xff]  ;;  %v3308_v32 = vld [vmem:[#allocation11 + $0x118] sm:$0xff]  ;;  %vm1203_vm11 = vcmp.ge.u32.totalorder %v1139_v37, 858993459  ;;  %v3350_v37 = vld [vmem:[#allocation11 + $0x88] sm:$0xff] }
 0x1b9   :  { %v1248_v58 = vmul.f32 1.25, %v1056_v51  ;;  %v826_v63 = vadd.f32 %v825_v4, %v3222_v57  ;;  %v983_v20 = vadd.f32 %v982_v17, %v822_v35  ;;  %v1059_v36 = vmax.f32 %v981_v50, 0.0  ;;  %v1131_v51 = vld [vmem:[#allocation5 + $0x170] sm:$0xff]  ;;  %v3275_v35 = vld [vmem:[#allocation11 + $0x178] sm:$0xff]  ;;  %2109 = vmatpush2.msra.mxu1 %v2056_v38 }
 0x1ba   :  { %v827_v49 = vpop.f32.mrf.mxu1  ;;  %v986_v8 = vpop.f32.mrf.mxu0  ;;  %v2053_v4 = vld [vmem:[#allocation11 + $0x2d0] sm:$0xff]  ;;  %2110 = vmatprep.subr.mxu1 %v2054_v1  ;;  %vm1195_vm7 = vcmp.ge.u32.totalorder %v1131_v51, 858993459  ;;  %2579 = vmatpush3.msra.mxu0 %v3275_v35 }
 0x1bb   :  { %v1060_v6 = vmax.f32 %v983_v20, 0.0  ;;  %v828_v42 = vadd.f32 %v827_v49, %v3226_v27  ;;  %v987_v11 = vadd.f32 %v986_v8, %v826_v63  ;;  %2498 = vmatprep.mubr.msk.f32.mxu0 %vm1184_vm0, %v1248_v58  ;;  %v1251_v13 = vmul.f32 1.25, %v1059_v36  ;;  %v1136_v20 = vld [vmem:[#allocation5 + $0x198] sm:$0xff]  ;;  %v1135_v49 = vld [vmem:[#allocation5 + $0x190] sm:$0xff]  ;;  %2111 = vmatpush2.msra.mxu1 %v2053_v4 }
 0x1bc   :  { %v831_v16 = vpop.f32.mrf.mxu1  ;;  %v988_v22 = vpop.f32.mrf.mxu0  ;;  %2499 = vmatmul.mubr.msk.f32.gmra.mxu0 %vm1183_vm1, %v1247_v52  ;;  %2580 = vmatprep.subr.mxu0 %v3278_v46  ;;  %vm1200_vm8 = vcmp.ge.u32.totalorder %v1136_v20, 858993459  ;;  %vm1199_vm9 = vcmp.ge.u32.totalorder %v1135_v49, 858993459  ;;  %v1143_v1 = vld [vmem:[#allocation5 + $0x1d0] sm:$0xff] }
 0x1bd   :  { %v1252_v34 = vmul.f32 1.25, %v1060_v6  ;;  %v832_v24 = vadd.f32 %v831_v16, %v3222_v57  ;;  %v989_v0 = vadd.f32 %v988_v22, %v828_v42  ;;  %v1063_v60 = vmax.f32 %v987_v11, 0.0  ;;  %v2051_v11 = vld [vmem:[#allocation11 + $0x2c0] sm:$0xff]  ;;  %v1140_v22 = vld [vmem:[#allocation5 + $0x1b8] sm:$0xff]  ;;  %2581 = vmatpush3.msra.mxu0 %v3282_v33  ;;  %v2041_v4 = vld [vmem:[#allocation11 + $0x270] sm:$0xff] }
 0x1be   :  { %v833_v5 = vpop.f32.mrf.mxu1  ;;  %v992_v56 = vpop.f32.mrf.mxu0  ;;  %2112 = vmatprep.subr.mxu1 %v2051_v11  ;;  %2582 = vmatprep.subr.mxu0 %v3288_v10  ;;  %vm1204_vm10 = vcmp.ge.u32.totalorder %v1140_v22, 858993459  ;;  %vm1207_vm13 = vcmp.ge.u32.totalorder %v1143_v1, 858993459  ;;  %v1147_v49 = vld [vmem:[#allocation5 + $0x1f0] sm:$0xff]  ;;  %v2036_v11 = vld [vmem:[#allocation11 + $0x248] sm:$0xff] }
 0x1bf   :  { %v1064_v43 = vmax.f32 %v989_v0, 0.0  ;;  %v834_v26 = vadd.f32 %v833_v5, %v3226_v27  ;;  %v993_v28 = vadd.f32 %v992_v56, %v832_v24  ;;  %2500 = vmatprep.mubr.msk.f32.mxu0 %vm1188_vm2, %v1252_v34  ;;  %v1255_v41 = vmul.f32 1.25, %v1063_v60  ;;  %v3291_v34 = vld [vmem:[#allocation11 + $0x148] sm:$0xff]  ;;  %2113 = vmatpush2.msra.mxu1 %v2050_v62  ;;  %v2035_v62 = vld [vmem:[#allocation11 + $0x240] sm:$0xff]  ;;  %v3331_v22 = vld [vmem:[#allocation11 + $0xd0] sm:$0xff] }
 0x1c0   :  { %v837_v12 = vpop.f32.mrf.mxu1  ;;  %v994_v15 = vpop.f32.mrf.mxu0  ;;  %2501 = vmatmul.mubr.msk.f32.gmra.mxu0 %vm1187_vm3, %v1251_v13  ;;  %v2047_v13 = vld [vmem:[#allocation11 + $0x2a0] sm:$0xff]  ;;  %2114 = vmatprep.subr.mxu1 %v2048_v18  ;;  %vm1211_vm15 = vcmp.ge.u32.totalorder %v1147_v49, 858993459  ;;  %v2032_v18 = vld [vmem:[#allocation11 + $0x228] sm:$0xff] }
 0x1c1   :  { %v1256_v48 = vmul.f32 1.25, %v1064_v43  ;;  %v838_v39 = vadd.f32 %v837_v12, %v3222_v57  ;;  %v995_v21 = vadd.f32 %v994_v15, %v834_v26  ;;  %v1067_v3 = vmax.f32 %v993_v28, 0.0  ;;  %2583 = vmatpush3.msra.mxu0 %v3291_v34  ;;  %2115 = vmatpush2.msra.mxu1 %v2047_v13  ;;  %v3337_v13 = vld [vmem:[#allocation11 + $0xb8] sm:$0xff]  ;;  %v2012_v1 = vld [vmem:[#allocation11 + $0x188] sm:$0xff] }
 0x1c2   :  { %v839_v40 = vpop.f32.mrf.mxu1  ;;  %v998_v30 = vpop.f32.mrf.mxu0  ;;  %2584 = vmatprep.subr.mxu0 %v3296_v53 }
 0x1c3   :  { %v1068_v25 = vmax.f32 %v995_v21, 0.0  ;;  %v840_v47 = vadd.f32 %v839_v40, %v3226_v27  ;;  %v999_v45 = vadd.f32 %v998_v30, %v838_v39  ;;  %2502 = vmatprep.mubr.msk.f32.mxu0 %vm1192_vm4, %v1256_v48  ;;  %v1259_v9 = vmul.f32 1.25, %v1067_v3  ;;  %v2045_v48 = vld [vmem:[#allocation11 + $0x290] sm:$0xff]  ;;  %v3304_v39 = vld [vmem:[#allocation11 + $0x298] sm:$0xff]  ;;  %v2044_v21 = vld [vmem:[#allocation11 + $0x288] sm:$0xff]  ;;  %2585 = vmatpush3.msra.mxu0 %v3301_v31 }
 0x1c4   :  { %v843_v50 = vpop.f32.mrf.mxu1  ;;  %v1000_v54 = vpop.f32.mrf.mxu0  ;;  %2503 = vmatmul.mubr.msk.f32.gmra.mxu0 %vm1191_vm5, %v1255_v41  ;;  %v1144_v30 = vld [vmem:[#allocation5 + $0x1d8] sm:$0xff]  ;;  %2116 = vmatprep.subr.mxu1 %v2045_v48  ;;  %v2023_v48 = vld [vmem:[#allocation11 + $0x1e0] sm:$0xff] }
 0x1c5   :  { %v1260_v17 = vmul.f32 1.25, %v1068_v25  ;;  %v844_v58 = vadd.f32 %v843_v50, %v3222_v57  ;;  %v1001_v63 = vadd.f32 %v1000_v54, %v840_v47  ;;  %v1071_v8 = vmax.f32 %v999_v45, 0.0  ;;  %2117 = vmatpush2.msra.mxu1 %v2044_v21  ;;  %v2042_v47 = vld [vmem:[#allocation11 + $0x278] sm:$0xff]  ;;  %v3311_v45 = vld [vmem:[#allocation11 + $0x280] sm:$0xff]  ;;  %2586 = vmatprep.subr.mxu0 %v3304_v39  ;;  %v3356_v21 = vld [vmem:[#allocation11 + $0x70] sm:$0xff] }
 0x1c6   :  { %v845_v2 = vpop.f32.mrf.mxu1  ;;  %v1004_v36 = vpop.f32.mrf.mxu0  ;;  %vm1208_vm12 = vcmp.ge.u32.totalorder %v1144_v30, 858993459  ;;  %2587 = vmatpush3.msra.mxu0 %v3308_v32  ;;  %2118 = vmatprep.subr.mxu1 %v2042_v47  ;;  %v3362_v30 = vld [vmem:[#allocation11 + $0x58] sm:$0xff]  ;;  %v3368_v47 = vld [vmem:[#allocation11 + $0x40] sm:$0xff] }
 0x1c7   :  { %v1072_v52 = vmax.f32 %v1001_v63, 0.0  ;;  %v846_v6 = vadd.f32 %v845_v2, %v3226_v27  ;;  %v1005_v42 = vadd.f32 %v1004_v36, %v844_v58  ;;  %2504 = vmatprep.mubr.msk.f32.mxu0 %vm1196_vm6, %v1260_v17  ;;  %v1263_v43 = vmul.f32 1.25, %v1071_v8  ;;  %v3316_v17 = vld [vmem:[#allocation11 + $0x100] sm:$0xff]  ;;  %v1148_v63 = vld [vmem:[#allocation5 + $0x1f8] sm:$0xff]  ;;  %2588 = vmatprep.subr.mxu0 %v3311_v45  ;;  %v3321_v2 = vld [vmem:[#allocation11 + $0x268] sm:$0xff]  ;;  %3647 = vst [vmem:[#allocation22_spill] sm:$0xff] %v3368_v47 }
 0x1c8   :  { %v849_v29 = vpop.f32.mrf.mxu1  ;;  %v1006_v16 = vpop.f32.mrf.mxu0  ;;  %2505 = vmatmul.mubr.msk.f32.gmra.mxu0 %vm1195_vm7, %v1259_v9  ;;  %v2038_v36 = vld [vmem:[#allocation11 + $0x258] sm:$0xff]  ;;  %2119 = vmatpush2.msra.mxu1 %v2041_v4  ;;  %vm1212_vm14 = vcmp.ge.u32.totalorder %v1148_v63, 858993459  ;;  %v3377_v4 = vld [vmem:[#allocation11 + $0x190] sm:$0xff] }
 0x1c9   :  { %v1264_v24 = vmul.f32 1.25, %v1072_v52  ;;  %v850_v0 = vadd.f32 %v849_v29, %v3222_v57  ;;  %v1007_v55 = vadd.f32 %v1006_v16, %v846_v6  ;;  %v1075_v5 = vmax.f32 %v1005_v42, 0.0  ;;  %2589 = vmatpush3.msra.mxu0 %v3316_v17  ;;  %v3325_v42 = vld [vmem:[#allocation11 + $0xe8] sm:$0xff]  ;;  %v3328_v29 = vld [vmem:[#allocation11 + $0x250] sm:$0xff]  ;;  %3650 = vst [vmem:[#allocation25_spill] sm:$0xff] %v3377_v4 }
 0x1ca   :  { %v851_v56 = vpop.f32.mrf.mxu1  ;;  %v1010_v60 = vpop.f32.mrf.mxu0  ;;  %2590 = vmatprep.subr.mxu0 %v3321_v2  ;;  %v3380_v63 = vld [vmem:[#allocation11 + $0x10] sm:$0xff] }
 0x1cb   :  { %v1076_v26 = vmax.f32 %v1007_v55, 0.0  ;;  %v852_v28 = vadd.f32 %v851_v56, %v3226_v27  ;;  %v1011_v7 = vadd.f32 %v1010_v60, %v850_v0  ;;  %2506 = vmatprep.mubr.msk.f32.mxu0 %vm1200_vm8, %v1264_v24  ;;  %v1267_v38 = vmul.f32 1.25, %v1075_v5  ;;  %2591 = vmatpush3.msra.mxu0 %v3325_v42  ;;  %v2033_v24 = vld [vmem:[#allocation11 + $0x230] sm:$0xff]  ;;  %v3334_v0 = vld [vmem:[#allocation11 + $0x238] sm:$0xff]  ;;  %v3340_v56 = vld [vmem:[#allocation11 + $0x220] sm:$0xff]  ;;  %3651 = vst [vmem:[#allocation26_spill] sm:$0xff] %v3380_v63 }
 0x1cc   :  { %v855_v12 = vpop.f32.mrf.mxu1  ;;  %v1012_v15 = vpop.f32.mrf.mxu0  ;;  %2507 = vmatmul.mubr.msk.f32.gmra.mxu0 %vm1199_vm9, %v1263_v43  ;;  %2592 = vmatprep.subr.mxu0 %v3328_v29  ;;  %v2030_v5 = vld [vmem:[#allocation11 + $0x218] sm:$0xff]  ;;  %v2029_v60 = vld [vmem:[#allocation11 + $0x210] sm:$0xff]  ;;  %v3343_v43 = vld [vmem:[#allocation11 + $0xa0] sm:$0xff] }
 0x1cd   :  { %v1268_v23 = vmul.f32 1.25, %v1076_v26  ;;  %v856_v3 = vadd.f32 %v855_v12, %v3222_v57  ;;  %v1013_v40 = vadd.f32 %v1012_v15, %v852_v28  ;;  %v1079_v51 = vmax.f32 %v1011_v7, 0.0  ;;  %2593 = vmatpush3.msra.mxu0 %v3331_v22  ;;  %v2027_v26 = vld [vmem:[#allocation11 + $0x200] sm:$0xff]  ;;  %v3347_v28 = vld [vmem:[#allocation11 + $0x208] sm:$0xff]  ;;  %v2026_v7 = vld [vmem:[#allocation11 + $0x1f8] sm:$0xff] }
 0x1ce   :  { %v857_v41 = vpop.f32.mrf.mxu1  ;;  %v1016_v25 = vpop.f32.mrf.mxu0  ;;  %2594 = vmatprep.subr.mxu0 %v3334_v0  ;;  %v2024_v12 = vld [vmem:[#allocation11 + $0x1e8] sm:$0xff]  ;;  %v3353_v15 = vld [vmem:[#allocation11 + $0x1f0] sm:$0xff] }
 0x1cf   :  { %v1080_v50 = vmax.f32 %v1013_v40, 0.0  ;;  %v858_v57 = vadd.f32 %v857_v41, %v3226_v27  ;;  %v1017_v54 = vadd.f32 %v1016_v25, %v856_v3  ;;  %2508 = vmatprep.mubr.msk.f32.mxu0 %vm1204_vm10, %v1268_v23  ;;  %v2039_v27 = vld [vmem:[#allocation11 + $0x260] sm:$0xff]  ;;  %v1271_v8 = vmul.f32 1.25, %v1079_v51  ;;  %2595 = vmatpush3.msra.mxu0 %v3337_v13  ;;  %v2021_v23 = vld [vmem:[#allocation11 + $0x1d0] sm:$0xff]  ;;  %v3359_v3 = vld [vmem:[#allocation11 + $0x1d8] sm:$0xff] }
 0x1d0   :  { %v1018_v58 = vpop.f32.mrf.mxu0  ;;  %2509 = vmatmul.mubr.msk.f32.gmra.mxu0 %vm1203_vm11, %v1267_v38  ;;  %2120 = vmatprep.subr.mxu1 %v2039_v27  ;;  %v2020_v40 = vld [vmem:[#allocation11 + $0x1c8] sm:$0xff]  ;;  %v2018_v38 = vld [vmem:[#allocation11 + $0x1b8] sm:$0xff]  ;;  %v3365_v41 = vld [vmem:[#allocation11 + $0x1c0] sm:$0xff] }
 0x1d1   :  { %v1272_v20 = vmul.f32 1.25, %v1080_v50  ;;  %v1019_v9 = vadd.f32 %v1018_v58, %v858_v57  ;;  %v1083_v52 = vmax.f32 %v1017_v54, 0.0  ;;  %2121 = vmatpush2.msra.mxu1 %v2038_v36  ;;  %2596 = vmatprep.subr.mxu0 %v3340_v56  ;;  %v2017_v25 = vld [vmem:[#allocation11 + $0x1b0] sm:$0xff]  ;;  %v2015_v51 = vld [vmem:[#allocation11 + $0x1a0] sm:$0xff]  ;;  %v3371_v50 = vld [vmem:[#allocation11 + $0x1a8] sm:$0xff] }
 0x1d2   :  { %2122 = vmatprep.subr.mxu1 %v2036_v11  ;;  %2597 = vmatpush3.msra.mxu0 %v3343_v43  ;;  %3648 = vst [vmem:[#allocation23_spill] sm:$0xff] %v3371_v50  ;;  %v2014_v57 = vld [vmem:[#allocation11 + $0x198] sm:$0xff]  ;;  %v3374_v54 = vld [vmem:[#allocation11 + $0x28] sm:$0xff]  ;;  %v2011_v58 = vld [vmem:[#allocation11 + $0x180] sm:$0xff] }
 0x1d3   :  { %v1084_v6 = vmax.f32 %v1019_v9, 0.0  ;;  %2510 = vmatprep.mubr.msk.f32.mxu0 %vm1208_vm12, %v1272_v20  ;;  %2123 = vmatpush2.msra.mxu1 %v2035_v62  ;;  %v1275_v55 = vmul.f32 1.25, %v1083_v52  ;;  %3649 = vst [vmem:[#allocation24_spill] sm:$0xff] %v3374_v54 }
 0x1d4   :  { %2511 = vmatmul.mubr.msk.f32.gmra.mxu0 %vm1207_vm13, %v1271_v8  ;;  %2124 = vmatprep.subr.mxu1 %v2033_v24 }
 0x1d5   :  { %v1276_v16 = vmul.f32 1.25, %v1084_v6  ;;  %2125 = vmatpush2.msra.mxu1 %v2032_v18  ;;  %2598 = vmatprep.subr.mxu0 %v3347_v28 }
 0x1d6   :  { %2126 = vmatprep.subr.mxu1 %v2030_v5  ;;  %2599 = vmatpush3.msra.mxu0 %v3350_v37  ;;  %v1469_v5 = vld [vmem:[%s3631_s6] sm:$0x3] }
 0x1d7   :  { %2512 = vmatprep.mubr.msk.f32.mxu0 %vm1212_vm14, %v1276_v16  ;;  %2127 = vmatpush2.msra.mxu1 %v2029_v60 }
 0x1d8   :  { %2513 = vmatmul.mubr.msk.f32.gmra.mxu0 %vm1211_vm15, %v1275_v55  ;;  %2128 = vmatprep.subr.mxu1 %v2027_v26  ;;  %v3405_v26 = vrot.slane %v1469_v5, %v3169_v19  ;;  %v1835_v19 = vld [vmem:[#allocation7] sm:$0xff] }
 0x1d9   :  { %2129 = vmatpush2.msra.mxu1 %v2026_v7  ;;  %2600 = vmatprep.subr.mxu0 %v3353_v15  ;;  %v3408_v7 = vrot.slane %v1469_v5, %v3177_v61  ;;  %vm1867_vm1 = vcmp.ge.u32.totalorder %v1835_v19, 858993459 }
 0x1da   :  { %2130 = vmatprep.subr.mxu1 %v2024_v12  ;;  %2601 = vmatpush3.msra.mxu0 %v3356_v21 }
 0x1db   :  { %2131 = vmatpush2.msra.mxu1 %v2023_v48  ;;  %2602 = vmatprep.subr.mxu0 %v3359_v3 }
 0x1dc   :  { %2132 = vmatprep.subr.mxu1 %v2021_v23  ;;  %2603 = vmatpush3.msra.mxu0 %v3362_v30 }
 0x1dd   :  { %2133 = vmatpush2.msra.mxu1 %v2020_v40  ;;  %2604 = vmatprep.subr.mxu0 %v3365_v41 }
 0x1de   :  { %2134 = vmatprep.subr.mxu1 %v2018_v38  ;;  %2605 = vmatpush3.msra.mxu0 %v3368_v47 }
 0x1df   :  { %2135 = vmatpush2.msra.mxu1 %v2017_v25  ;;  %2606 = vmatprep.subr.mxu0 %v3371_v50 }
 0x1e0   :  { %2136 = vmatprep.subr.mxu1 %v2015_v51  ;;  %2607 = vmatpush3.msra.mxu0 %v3374_v54  ;;  %v1838_v54 = vld [vmem:[#allocation7 + $0x18] sm:$0xff] }
 0x1e1   :  { %2137 = vmatpush2.msra.mxu1 %v2014_v57  ;;  %2608 = vmatprep.subr.mxu0 %v3377_v4  ;;  %vm1870_vm2 = vcmp.ge.u32.totalorder %v1838_v54, 858993459  ;;  %v1841_v54 = vld [vmem:[#allocation7 + $0x30] sm:$0xff] }
 0x1e2   :  { %2138 = vmatprep.subr.mxu1 %v2012_v1  ;;  %2609 = vmatpush3.msra.mxu0 %v3380_v63  ;;  %vm1873_vm7 = vcmp.ge.u32.totalorder %v1841_v54, 858993459 }
 0x1e3   :  { %2139 = vmatpush2.msra.mxu1 %v2011_v58  ;;  %v1836_v58 = vld [vmem:[#allocation7 + $0x8] sm:$0xff] }
 0x1e4   :  { %2658 = vmatprep.subr.mxu1 %v3271_v44  ;;  %vm1868_vm0 = vcmp.ge.u32.totalorder %v1836_v58, 858993459  ;;  %v1839_v58 = vld [vmem:[#allocation7 + $0x20] sm:$0xff] }
 0x1e5   :  { %vm1871_vm5 = vcmp.ge.u32.totalorder %v1839_v58, 858993459 }
 0x219   :  { %v1547_v20 = vpop.f32.mrf.mxu1 }
 0x21a   :  { %v1548_v48 = vadd.f32 %v1547_v20, %v3405_v26 }
 0x21b   :  { %v1549_v9 = vpop.f32.mrf.mxu1 }
 0x21c   :  { %v1550_v40 = vadd.f32 %v1549_v9, %v3408_v7 }
 0x21d   :  { %v1553_v27 = vpop.f32.mrf.mxu1 }
 0x21e   :  { %v1554_v57 = vadd.f32 %v1553_v27, %v3405_v26 }
 0x21f   :  { %v1555_v36 = vpop.f32.mrf.mxu1 }
 0x220   :  { %v1556_v5 = vadd.f32 %v1555_v36, %v3408_v7 }
 0x221   :  { %v1559_v49 = vpop.f32.mrf.mxu1 }
 0x222   :  { %v1560_v9 = vadd.f32 %v1559_v49, %v3405_v26 }
 0x223   :  { %v1561_v8 = vpop.f32.mrf.mxu1 }
 0x224   :  { %v1562_v50 = vadd.f32 %v1561_v8, %v3408_v7 }
 0x225   :  { %v1565_v52 = vpop.f32.mrf.mxu1 }
 0x227   :  { %v1567_v6 = vpop.f32.mrf.mxu1 }
 0x229   :  { %v3385_v11 = vpop.f32.mrf.mxu1 }
 0x22b   :  { %v3387_v62 = vpop.f32.mrf.mxu1 }
 0x22d   :  { %v3389_v16 = vpop.f32.mrf.mxu1 }
 0x22f   :  { %v3391_v24 = vpop.f32.mrf.mxu1 }
 0x231   :  { %v3393_v55 = vpop.f32.mrf.mxu1 }
 0x232   :  { %v1584_v58 = vadd.f32 %v3393_v55, %v3405_v26 }
 0x233   :  { %v3395_v18 = vpop.f32.mrf.mxu1 }
 0x235   :  { %v3397_v44 = vpop.f32.mrf.mxu1 }
 0x237   :  { %v3402_v60 = vpop.f32.mrf.mxu1 }
 0x239   :  { %v3410_v12 = vpop.f32.mrf.mxu1 }
 0x23b   :  { %v3414_v25 = vpop.f32.mrf.mxu1 }
 0x23d   :  { %v3418_v4 = vpop.f32.mrf.mxu1 }
 0x25c   :  { %v1708_v23 = vpop.f32.mrf.mxu0 }
 0x25d   :  { %v1709_v38 = vadd.f32 %v1708_v23, %v1548_v48 }
 0x25e   :  { %v1710_v51 = vpop.f32.mrf.mxu0 }
 0x25f   :  { %v1711_v1 = vadd.f32 %v1710_v51, %v1550_v40  ;;  %v1803_v14 = vmax.f32 %v1709_v38, 0.0  ;;  %v1837_v38 = vld [vmem:[#allocation7 + $0x10] sm:$0xff] }
 0x260   :  { %v1714_v59 = vpop.f32.mrf.mxu0  ;;  %vm1869_vm3 = vcmp.ge.u32.totalorder %v1837_v38, 858993459 }
 0x261   :  { %v1804_v61 = vmax.f32 %v1711_v1, 0.0  ;;  %v1715_v63 = vadd.f32 %v1714_v59, %v1554_v57  ;;  %v1899_v27 = vmul.f32 1.25, %v1803_v14  ;;  %v3422_v59 = vpop.f32.mrf.mxu1  ;;  %v1840_v14 = vld [vmem:[#allocation7 + $0x28] sm:$0xff] }
 0x262   :  { %v1716_v20 = vpop.f32.mrf.mxu0  ;;  %vm1872_vm4 = vcmp.ge.u32.totalorder %v1840_v14, 858993459  ;;  %v1843_v14 = vld [vmem:[#allocation7 + $0x40] sm:$0xff] }
 0x263   :  { %v1900_v48 = vmul.f32 1.25, %v1804_v61  ;;  %v1717_v23 = vadd.f32 %v1716_v20, %v1556_v5  ;;  %v1805_v40 = vmax.f32 %v1715_v63, 0.0  ;;  %v1566_v61 = vadd.f32 %v1565_v52, %v3405_v26 }
 0x264   :  { %v1720_v51 = vpop.f32.mrf.mxu0  ;;  %v1568_v5 = vadd.f32 %v1567_v6, %v3408_v7  ;;  %v1842_v6 = vld [vmem:[#allocation7 + $0x38] sm:$0xff]  ;;  %vm1875_vm9 = vcmp.ge.u32.totalorder %v1843_v14, 858993459  ;;  %v1598_v14 = vadd.f32 %v3414_v25, %v3408_v7  ;;  %v1852_v25 = vld [vmem:[#allocation7 + $0x88] sm:$0xff] }
 0x265   :  { %v1806_v47 = vmax.f32 %v1717_v23, 0.0  ;;  %v1721_v36 = vadd.f32 %v1720_v51, %v1560_v9  ;;  %2514 = vmatprep.mubr.msk.f32.mxu1 %vm1868_vm0, %v1900_v48  ;;  %2546 = vmatprep.mubr.msk.f32.mxu0 %vm1868_vm0, %v1900_v48  ;;  %v1901_v63 = vmul.f32 1.25, %v1805_v40  ;;  %v1574_v40 = vadd.f32 %v3387_v62, %v3408_v7  ;;  %v1844_v62 = vld [vmem:[#allocation7 + $0x48] sm:$0xff] }
 0x266   :  { %v1722_v57 = vpop.f32.mrf.mxu0  ;;  %2515 = vmatmul.mubr.msk.f32.vlgmr.msra.gmra.mxu1 %vm1867_vm1, %v1899_v27  ;;  %2547 = vmatmul.mubr.msk.f32.vlgmr.msra.gmra.mxu0 %vm1867_vm1, %v1899_v27  ;;  %vm1874_vm6 = vcmp.ge.u32.totalorder %v1842_v6, 858993459  ;;  %vm1876_vm8 = vcmp.ge.u32.totalorder %v1844_v62, 858993459  ;;  %vm1884_vm0 = vcmp.ge.u32.totalorder %v1852_v25, 858993459 }
 0x267   :  { %v1902_v19 = vmul.f32 1.25, %v1806_v47  ;;  %v1723_v49 = vadd.f32 %v1722_v57, %v1562_v50  ;;  %2674 = vmatpush3.msra.mxu1 %v3275_v35  ;;  %v1807_v8 = vmax.f32 %v1721_v36, 0.0  ;;  %v3430_v47 = vpop.f32.mrf.mxu1  ;;  %v1572_v35 = vadd.f32 %v3385_v11, %v3405_v26  ;;  %v3522_v25 = vld [vmem:[#allocation7 + $0xc0] sm:$0xff] }
 0x268   :  { %v1726_v1 = vpop.f32.mrf.mxu0  ;;  %2659 = vmatprep.subr.mxu1 %v3278_v46  ;;  %v1578_v36 = vadd.f32 %v3389_v16, %v3405_v26 }
 0x269   :  { %v1808_v20 = vmax.f32 %v1723_v49, 0.0  ;;  %v1727_v9 = vadd.f32 %v1726_v1, %v1566_v61  ;;  %2516 = vmatprep.mubr.msk.f32.mxu1 %vm1870_vm2, %v1902_v19  ;;  %2548 = vmatprep.mubr.msk.f32.mxu0 %vm1870_vm2, %v1902_v19  ;;  %v1903_v48 = vmul.f32 1.25, %v1807_v8  ;;  %v3440_v11 = vpop.f32.mrf.mxu1 }
 0x26a   :  { %v1728_v50 = vpop.f32.mrf.mxu0  ;;  %2517 = vmatmul.mubr.msk.f32.gmra.mxu1 %vm1869_vm3, %v1901_v63  ;;  %2549 = vmatmul.mubr.msk.f32.gmra.mxu0 %vm1869_vm3, %v1901_v63  ;;  %v1580_v63 = vadd.f32 %v3391_v24, %v3408_v7  ;;  %v1846_v24 = vld [vmem:[#allocation7 + $0x58] sm:$0xff] }
 0x26b   :  { %v1904_v52 = vmul.f32 1.25, %v1808_v20  ;;  %v1729_v46 = vadd.f32 %v1728_v50, %v1568_v5  ;;  %2675 = vmatpush3.msra.mxu1 %v3282_v33  ;;  %v1809_v23 = vmax.f32 %v1727_v9, 0.0  ;;  %v3450_v16 = vpop.f32.mrf.mxu1  ;;  %vm1878_vm10 = vcmp.ge.u32.totalorder %v1846_v24, 858993459  ;;  %v1851_v24 = vld [vmem:[#allocation7 + $0x80] sm:$0xff] }
 0x26c   :  { %v1732_v27 = vpop.f32.mrf.mxu0  ;;  %2660 = vmatprep.subr.mxu1 %v3288_v10  ;;  %vm1883_vm1 = vcmp.ge.u32.totalorder %v1851_v24, 858993459 }
 0x26d   :  { %v1810_v51 = vmax.f32 %v1729_v46, 0.0  ;;  %v1733_v38 = vadd.f32 %v1732_v27, %v1572_v35  ;;  %2518 = vmatprep.mubr.msk.f32.mxu1 %vm1872_vm4, %v1904_v52  ;;  %2550 = vmatprep.mubr.msk.f32.mxu0 %vm1872_vm4, %v1904_v52  ;;  %v1905_v61 = vmul.f32 1.25, %v1809_v23  ;;  %v1845_v35 = vld [vmem:[#allocation7 + $0x50] sm:$0xff]  ;;  %v1586_v52 = vadd.f32 %v3395_v18, %v3408_v7  ;;  %v3460_v55 = vpop.f32.mrf.mxu1  ;;  %v1848_v18 = vld [vmem:[#allocation7 + $0x68] sm:$0xff] }
 0x26e   :  { %v1734_v33 = vpop.f32.mrf.mxu0  ;;  %2519 = vmatmul.mubr.msk.f32.gmra.mxu1 %vm1871_vm5, %v1903_v48  ;;  %2551 = vmatmul.mubr.msk.f32.gmra.mxu0 %vm1871_vm5, %v1903_v48  ;;  %v1590_v48 = vadd.f32 %v3397_v44, %v3405_v26  ;;  %vm1877_vm11 = vcmp.ge.u32.totalorder %v1845_v35, 858993459  ;;  %vm1880_vm12 = vcmp.ge.u32.totalorder %v1848_v18, 858993459  ;;  %v1608_v35 = vadd.f32 %v3430_v47, %v3405_v26 }
 0x26f   :  { %v1906_v10 = vmul.f32 1.25, %v1810_v51  ;;  %v1735_v57 = vadd.f32 %v1734_v33, %v1574_v40  ;;  %2676 = vmatpush3.msra.mxu1 %v3291_v34  ;;  %v1811_v19 = vmax.f32 %v1733_v38, 0.0  ;;  %v1847_v51 = vld [vmem:[#allocation7 + $0x60] sm:$0xff]  ;;  %v1592_v38 = vadd.f32 %v3402_v60, %v3408_v7  ;;  %v3470_v44 = vpop.f32.mrf.mxu1  ;;  %v1850_v60 = vld [vmem:[#allocation7 + $0x78] sm:$0xff] }
 0x270   :  { %v1738_v49 = vpop.f32.mrf.mxu0  ;;  %2661 = vmatprep.subr.mxu1 %v3296_v53  ;;  %vm1879_vm13 = vcmp.ge.u32.totalorder %v1847_v51, 858993459  ;;  %vm1882_vm14 = vcmp.ge.u32.totalorder %v1850_v60, 858993459 }
 0x271   :  { %v1812_v8 = vmax.f32 %v1735_v57, 0.0  ;;  %v1739_v1 = vadd.f32 %v1738_v49, %v1578_v36  ;;  %2520 = vmatprep.mubr.msk.f32.mxu1 %vm1874_vm6, %v1906_v10  ;;  %2552 = vmatprep.mubr.msk.f32.mxu0 %vm1874_vm6, %v1906_v10  ;;  %v1907_v20 = vmul.f32 1.25, %v1811_v19  ;;  %v1596_v10 = vadd.f32 %v3410_v12, %v3405_v26  ;;  %v1849_v49 = vld [vmem:[#allocation7 + $0x70] sm:$0xff]  ;;  %v3480_v12 = vpop.f32.mrf.mxu1 }
 0x272   :  { %v1740_v34 = vpop.f32.mrf.mxu0  ;;  %2521 = vmatmul.mubr.msk.f32.gmra.mxu1 %vm1873_vm7, %v1905_v61  ;;  %2553 = vmatmul.mubr.msk.f32.gmra.mxu0 %vm1873_vm7, %v1905_v61  ;;  %vm1881_vm15 = vcmp.ge.u32.totalorder %v1849_v49, 858993459  ;;  %v1622_v49 = vadd.f32 %v3480_v12, %v3408_v7  ;;  %v3519_v12 = vld [vmem:[#allocation7 + $0xc8] sm:$0xff] }
 0x273   :  { %v1908_v53 = vmul.f32 1.25, %v1812_v8  ;;  %v1741_v5 = vadd.f32 %v1740_v34, %v1580_v63  ;;  %2677 = vmatpush3.msra.mxu1 %v3301_v31  ;;  %v1813_v9 = vmax.f32 %v1739_v1, 0.0  ;;  %v1602_v1 = vadd.f32 %v3418_v4, %v3405_v26  ;;  %v3490_v4 = vpop.f32.mrf.mxu1 }
 0x274   :  { %v1744_v50 = vpop.f32.mrf.mxu0  ;;  %2662 = vmatprep.subr.mxu1 %v3304_v39 }
 0x275   :  { %v1814_v46 = vmax.f32 %v1741_v5, 0.0  ;;  %v1745_v6 = vadd.f32 %v1744_v50, %v1584_v58  ;;  %2522 = vmatprep.mubr.msk.f32.mxu1 %vm1876_vm8, %v1908_v53  ;;  %2554 = vmatprep.mubr.msk.f32.mxu0 %vm1876_vm8, %v1908_v53  ;;  %v1909_v27 = vmul.f32 1.25, %v1813_v9  ;;  %v1627_v47 = vpop.f32.mrf.mxu1  ;;  %vm1892_vm8 = vcmp.ge.u32.totalorder %v3519_v12, 858993459 }
 0x276   :  { %v1746_v31 = vpop.f32.mrf.mxu0  ;;  %2523 = vmatmul.mubr.msk.f32.gmra.mxu1 %vm1875_vm9, %v1907_v20  ;;  %2555 = vmatmul.mubr.msk.f32.gmra.mxu0 %vm1875_vm9, %v1907_v20  ;;  %v1604_v20 = vadd.f32 %v3422_v59, %v3408_v7  ;;  %v1854_v59 = vld [vmem:[#allocation7 + $0x98] sm:$0xff]  ;;  %vm1891_vm9 = vcmp.ge.u32.totalorder %v3522_v25, 858993459 }
 0x277   :  { %v1910_v39 = vmul.f32 1.25, %v1814_v46  ;;  %v1747_v23 = vadd.f32 %v1746_v31, %v1586_v52  ;;  %2678 = vmatpush3.msra.mxu1 %v3308_v32  ;;  %v1815_v54 = vmax.f32 %v1745_v6, 0.0  ;;  %vm1886_vm2 = vcmp.ge.u32.totalorder %v1854_v59, 858993459 }
 0x278   :  { %v1750_v40 = vpop.f32.mrf.mxu0  ;;  %2663 = vmatprep.subr.mxu1 %v3311_v45 }
 0x279   :  { %v1816_v33 = vmax.f32 %v1747_v23, 0.0  ;;  %v1751_v36 = vadd.f32 %v1750_v40, %v1590_v48  ;;  %2524 = vmatprep.mubr.msk.f32.mxu1 %vm1878_vm10, %v1910_v39  ;;  %2556 = vmatprep.mubr.msk.f32.mxu0 %vm1878_vm10, %v1910_v39  ;;  %v1911_v62 = vmul.f32 1.25, %v1815_v54  ;;  %v1853_v48 = vld [vmem:[#allocation7 + $0x90] sm:$0xff]  ;;  %v1610_v39 = vadd.f32 %v3440_v11, %v3408_v7  ;;  %v1856_v11 = vld [vmem:[#allocation7 + $0xa8] sm:$0xff] }
 0x27a   :  { %v1752_v32 = vpop.f32.mrf.mxu0  ;;  %2525 = vmatmul.mubr.msk.f32.gmra.mxu1 %vm1877_vm11, %v1909_v27  ;;  %2557 = vmatmul.mubr.msk.f32.gmra.mxu0 %vm1877_vm11, %v1909_v27  ;;  %vm1885_vm3 = vcmp.ge.u32.totalorder %v1853_v48, 858993459  ;;  %vm1888_vm4 = vcmp.ge.u32.totalorder %v1856_v11, 858993459 }
 0x27b   :  { %v1912_v45 = vmul.f32 1.25, %v1816_v33  ;;  %v1753_v57 = vadd.f32 %v1752_v32, %v1592_v38  ;;  %2679 = vmatpush3.msra.mxu1 %v3316_v17  ;;  %v1817_v61 = vmax.f32 %v1751_v36, 0.0  ;;  %v1855_v33 = vld [vmem:[#allocation7 + $0xa0] sm:$0xff]  ;;  %v1616_v36 = vadd.f32 %v3460_v55, %v3408_v7  ;;  %v1858_v55 = vld [vmem:[#allocation7 + $0xb8] sm:$0xff] }
 0x27c   :  { %v1756_v19 = vpop.f32.mrf.mxu0  ;;  %2664 = vmatprep.subr.mxu1 %v3321_v2  ;;  %vm1887_vm5 = vcmp.ge.u32.totalorder %v1855_v33, 858993459  ;;  %vm1890_vm6 = vcmp.ge.u32.totalorder %v1858_v55, 858993459  ;;  %v1866_v33 = vld [vmem:[#allocation7 + $0xf8] sm:$0xff] }
 0x27d   :  { %v1818_v63 = vmax.f32 %v1753_v57, 0.0  ;;  %v1757_v8 = vadd.f32 %v1756_v19, %v1596_v10  ;;  %2526 = vmatprep.mubr.msk.f32.mxu1 %vm1880_vm12, %v1912_v45  ;;  %2558 = vmatprep.mubr.msk.f32.mxu0 %vm1880_vm12, %v1912_v45  ;;  %v1913_v58 = vmul.f32 1.25, %v1817_v61  ;;  %v1857_v19 = vld [vmem:[#allocation7 + $0xb0] sm:$0xff] }
 0x27e   :  { %v1758_v17 = vpop.f32.mrf.mxu0  ;;  %2527 = vmatmul.mubr.msk.f32.gmra.mxu1 %vm1879_vm13, %v1911_v62  ;;  %2559 = vmatmul.mubr.msk.f32.gmra.mxu0 %vm1879_vm13, %v1911_v62  ;;  %vm1889_vm7 = vcmp.ge.u32.totalorder %v1857_v19, 858993459 }
 0x27f   :  { %v1914_v2 = vmul.f32 1.25, %v1818_v63  ;;  %v1759_v34 = vadd.f32 %v1758_v17, %v1598_v14  ;;  %2680 = vmatpush3.msra.mxu1 %v3325_v42  ;;  %v1819_v53 = vmax.f32 %v1757_v8, 0.0 }
 0x280   :  { %v1762_v5 = vpop.f32.mrf.mxu0  ;;  %2665 = vmatprep.subr.mxu1 %v3328_v29 }
 0x281   :  { %v1820_v9 = vmax.f32 %v1759_v34, 0.0  ;;  %v1763_v50 = vadd.f32 %v1762_v5, %v1602_v1  ;;  %2528 = vmatprep.mubr.msk.f32.mxu1 %vm1882_vm14, %v1914_v2  ;;  %2560 = vmatprep.mubr.msk.f32.mxu0 %vm1882_vm14, %v1914_v2  ;;  %v1915_v46 = vmul.f32 1.25, %v1819_v53  ;;  %vm1898_vm14 = vcmp.ge.u32.totalorder %v1866_v33, 858993459 }
 0x282   :  { %v1764_v42 = vpop.f32.mrf.mxu0  ;;  %2529 = vmatmul.mubr.msk.f32.gmra.mxu1 %vm1881_vm15, %v1913_v58  ;;  %2561 = vmatmul.mubr.msk.f32.gmra.mxu0 %vm1881_vm15, %v1913_v58  ;;  %v1628_v58 = vadd.f32 %v1627_v47, %v3408_v7 }
 0x283   :  { %v1916_v29 = vmul.f32 1.25, %v1820_v9  ;;  %v1765_v52 = vadd.f32 %v1764_v42, %v1604_v20  ;;  %2681 = vmatpush3.msra.mxu1 %v3331_v22  ;;  %v1821_v6 = vmax.f32 %v1763_v50, 0.0  ;;  %v1614_v22 = vadd.f32 %v3450_v16, %v3405_v26  ;;  %v1631_v16 = vpop.f32.mrf.mxu1  ;;  %v1862_v50 = vld [vmem:[#allocation7 + $0xd8] sm:$0xff] }
 0x284   :  { %v1768_v31 = vpop.f32.mrf.mxu0  ;;  %2666 = vmatprep.subr.mxu1 %v3334_v0  ;;  %v1632_v20 = vadd.f32 %v1631_v16, %v3405_v26  ;;  %vm1894_vm10 = vcmp.ge.u32.totalorder %v1862_v50, 858993459 }
 0x285   :  { %v1822_v23 = vmax.f32 %v1765_v52, 0.0  ;;  %v1769_v18 = vadd.f32 %v1768_v31, %v1608_v35  ;;  %2530 = vmatprep.mubr.msk.f32.mxu1 %vm1884_vm0, %v1916_v29  ;;  %2562 = vmatprep.mubr.msk.f32.mxu0 %vm1884_vm0, %v1916_v29  ;;  %v1917_v40 = vmul.f32 1.25, %v1821_v6  ;;  %v1861_v29 = vld [vmem:[#allocation7 + $0xd0] sm:$0xff] }
 0x286   :  { %v1770_v27 = vpop.f32.mrf.mxu0  ;;  %2531 = vmatmul.mubr.msk.f32.gmra.mxu1 %vm1883_vm1, %v1915_v46  ;;  %2563 = vmatmul.mubr.msk.f32.gmra.mxu0 %vm1883_vm1, %v1915_v46  ;;  %vm1893_vm11 = vcmp.ge.u32.totalorder %v1861_v29, 858993459 }
 0x287   :  { %v1918_v54 = vmul.f32 1.25, %v1822_v23  ;;  %v1771_v0 = vadd.f32 %v1770_v27, %v1610_v39  ;;  %2682 = vmatpush3.msra.mxu1 %v3337_v13  ;;  %v1823_v51 = vmax.f32 %v1769_v18, 0.0  ;;  %v1620_v13 = vadd.f32 %v3470_v44, %v3405_v26  ;;  %v1633_v44 = vpop.f32.mrf.mxu1  ;;  %v3652_v39 = vld [vmem:[#allocation22_spill] sm:$0xff]  ;;  %v1864_v23 = vld [vmem:[#allocation7 + $0xe8] sm:$0xff] }
 0x288   :  { %v1774_v38 = vpop.f32.mrf.mxu0  ;;  %2667 = vmatprep.subr.mxu1 %v3340_v56  ;;  %v1634_v52 = vadd.f32 %v1633_v44, %v3408_v7  ;;  %vm1896_vm12 = vcmp.ge.u32.totalorder %v1864_v23, 858993459 }
 0x289   :  { %v1824_v32 = vmax.f32 %v1771_v0, 0.0  ;;  %v1775_v10 = vadd.f32 %v1774_v38, %v1614_v22  ;;  %2532 = vmatprep.mubr.msk.f32.mxu1 %vm1886_vm2, %v1918_v54  ;;  %2564 = vmatprep.mubr.msk.f32.mxu0 %vm1886_vm2, %v1918_v54  ;;  %v1919_v60 = vmul.f32 1.25, %v1823_v51  ;;  %v1637_v24 = vpop.f32.mrf.mxu1  ;;  %v3653_v22 = vld [vmem:[#allocation23_spill] sm:$0xff] }
 0x28a   :  { %v1776_v45 = vpop.f32.mrf.mxu0  ;;  %2533 = vmatmul.mubr.msk.f32.gmra.mxu1 %vm1885_vm3, %v1917_v40  ;;  %2565 = vmatmul.mubr.msk.f32.gmra.mxu0 %vm1885_vm3, %v1917_v40  ;;  %v3655_v40 = vld [vmem:[#allocation25_spill] sm:$0xff] }
 0x28b   :  { %v1920_v57 = vmul.f32 1.25, %v1824_v32  ;;  %v1777_v56 = vadd.f32 %v1776_v45, %v1616_v36  ;;  %2683 = vmatpush3.msra.mxu1 %v3343_v43  ;;  %v1825_v62 = vmax.f32 %v1775_v10, 0.0  ;;  %v1626_v43 = vadd.f32 %v3490_v4, %v3405_v26  ;;  %v1639_v6 = vpop.f32.mrf.mxu1  ;;  %v3656_v36 = vld [vmem:[#allocation26_spill] sm:$0xff]  ;;  %v1865_v10 = vld [vmem:[#allocation7 + $0xf0] sm:$0xff] }
 0x28c   :  { %v1780_v61 = vpop.f32.mrf.mxu0  ;;  %2668 = vmatprep.subr.mxu1 %v3347_v28  ;;  %v1640_v54 = vadd.f32 %v1639_v6, %v3408_v7  ;;  %vm1897_vm15 = vcmp.ge.u32.totalorder %v1865_v10, 858993459 }
 0x28d   :  { %v1826_v14 = vmax.f32 %v1777_v56, 0.0  ;;  %v1781_v63 = vadd.f32 %v1780_v61, %v1620_v13  ;;  %2534 = vmatprep.mubr.msk.f32.mxu1 %vm1888_vm4, %v1920_v57  ;;  %2566 = vmatprep.mubr.msk.f32.mxu0 %vm1888_vm4, %v1920_v57  ;;  %v1921_v1 = vmul.f32 1.25, %v1825_v62  ;;  %v2059_v57 = vld [vmem:[%s3633_s8] sm:$0x7]  ;;  %v3657_v56 = vld [vmem:[#allocation20_spill] sm:$0xff]  ;;  %s2867_s8 = smov [#allocation13]  }
 0x28e   :  { %v1782_v8 = vpop.f32.mrf.mxu0  ;;  %2535 = vmatmul.mubr.msk.f32.gmra.mxu1 %vm1887_vm5, %v1919_v60  ;;  %2567 = vmatmul.mubr.msk.f32.gmra.mxu0 %vm1887_vm5, %v1919_v60  ;;  %v3562_v55 = vrot.slane %v2059_v57, %v3657_v56  ;;  %v3658_v60 = vld [vmem:[#allocation21_spill] sm:$0xff]  ;;  %s2435_s22 = sshll.u32 %s2867_s8, 4  ;;  %s2436_s22 = int_to_ptr.vmem [resolvable:$true] %s2435_s22 }
 0x28f   :  { %v1922_v17 = vmul.f32 1.25, %v1826_v14  ;;  %v1783_v28 = vadd.f32 %v1782_v8, %v1622_v49  ;;  %2684 = vmatpush3.msra.mxu1 %v3350_v37  ;;  %v1827_v2 = vmax.f32 %v1781_v63, 0.0  ;;  %v3565_v62 = vrot.slane %v2059_v57, %v3658_v60  ;;  %v3659_v14 = vld [vmem:[#allocation19_spill] sm:$0xff]  ;;  %s2824_s23 = scalar_lea.vmem %s2436_s22, 6144  ;;  %p2829_p3 = scmp.lt.s32.totalorder %s2436_s22, %s2436_s22 }
 0x290   :  { %v1786_v34 = vpop.f32.mrf.mxu0  ;;  %2669 = vmatprep.subr.mxu1 %v3353_v15  ;;  %v3660_v63 = vsub.s32 2, %v3659_v14  ;;  %p2825_p2 = scmp.ne.s32.totalorder %s2436_s22, %s2824_s23  ;;  %p2830_p4 = scmp.lt.s32.totalorder %s2824_s23, %s2824_s23 }
 0x291   :  { %v1828_v53 = vmax.f32 %v1783_v28, 0.0  ;;  %v1787_v5 = vadd.f32 %v1786_v34, %v1626_v43  ;;  %2536 = vmatprep.mubr.msk.f32.mxu1 %vm1890_vm6, %v1922_v17  ;;  %2568 = vmatprep.mubr.msk.f32.mxu0 %vm1890_vm6, %v1922_v17  ;;  %v1923_v4 = vmul.f32 1.25, %v1827_v2 }
 0x292   :  { %v1788_v37 = vpop.f32.mrf.mxu0  ;;  %2537 = vmatmul.mubr.msk.f32.gmra.mxu1 %vm1889_vm7, %v1921_v1  ;;  %2569 = vmatmul.mubr.msk.f32.gmra.mxu0 %vm1889_vm7, %v1921_v1  ;;  %v3570_v44 = vrot.slane %v2059_v57, %v3660_v63  ;;  %p2831_p5 = por %p2830_p4, %p2829_p3 }
 0x293   :  { %v1924_v9 = vmul.f32 1.25, %v1828_v53  ;;  %v1789_v15 = vadd.f32 %v1788_v37, %v1628_v58  ;;  %2685 = vmatpush3.msra.mxu1 %v3356_v21  ;;  %v1829_v42 = vmax.f32 %v1787_v5, 0.0 }
 0x294   :  { %v1792_v35 = vpop.f32.mrf.mxu0  ;;  %2670 = vmatprep.subr.mxu1 %v3359_v3  ;;  %v1638_v3 = vadd.f32 %v1637_v24, %v3405_v26  ;;  %p2832_p6 = pnand %p2831_p5, %p2825_p2 }
 0x295   :  { %v1830_v59 = vmax.f32 %v1789_v15, 0.0  ;;  %v1793_v46 = vadd.f32 %v1792_v35, %v1632_v20  ;;  %2538 = vmatprep.mubr.msk.f32.mxu1 %vm1892_vm8, %v1924_v9  ;;  %2686 = vmatpush3.msra.mxu1 %v3362_v30  ;;  %v1925_v18 = vmul.f32 1.25, %v1829_v42  ;;  %v1863_v30 = vld [vmem:[#allocation7 + $0xe0] sm:$0xff] }
 0x296   :  { %v1794_v21 = vpop.f32.mrf.mxu0  ;;  %2539 = vmatmul.mubr.msk.f32.gmra.mxu1 %vm1891_vm9, %v1923_v4  ;;  %2671 = vmatprep.subr.mxu1 %v3365_v41  ;;  %v3654_v41 = vld [vmem:[#allocation24_spill] sm:$0xff]  ;;  %vm1895_vm13 = vcmp.ge.u32.totalorder %v1863_v30, 858993459 }
 0x297   :  { %v1926_v31 = vmul.f32 1.25, %v1830_v59  ;;  %v1795_v48 = vadd.f32 %v1794_v21, %v1634_v52  ;;  %2687 = vmatpush3.msra.mxu1 %v3652_v39  ;;  %v1831_v47 = vmax.f32 %v1793_v46, 0.0 }
 0x298   :  { %v1798_v27 = vpop.f32.mrf.mxu0  ;;  %2672 = vmatprep.subr.mxu1 %v3653_v22 }
 0x299   :  { %v1832_v0 = vmax.f32 %v1795_v48, 0.0  ;;  %v1799_v11 = vadd.f32 %v1798_v27, %v1638_v3  ;;  %2540 = vmatprep.mubr.msk.f32.mxu1 %vm1894_vm10, %v1926_v31  ;;  %2688 = vmatpush3.msra.mxu1 %v3654_v41  ;;  %v1927_v32 = vmul.f32 1.25, %v1831_v47 }
 0x29a   :  { %v1800_v26 = vpop.f32.mrf.mxu0  ;;  %2541 = vmatmul.mubr.msk.f32.gmra.mxu1 %vm1893_vm11, %v1925_v18  ;;  %2673 = vmatprep.subr.mxu1 %v3655_v40 }
 0x29b   :  { %v1928_v51 = vmul.f32 1.25, %v1832_v0  ;;  %v1801_v38 = vadd.f32 %v1800_v26, %v1640_v54  ;;  %2689 = vmatpush3.msra.mxu1 %v3656_v36  ;;  %v1833_v7 = vmax.f32 %v1799_v11, 0.0 }
 0x29d   :  { %v1834_v16 = vmax.f32 %v1801_v38, 0.0  ;;  %2542 = vmatprep.mubr.msk.f32.mxu1 %vm1896_vm12, %v1928_v51  ;;  %v1929_v13 = vmul.f32 1.25, %v1833_v7 }
 0x29e   :  { %2543 = vmatmul.mubr.msk.f32.gmra.mxu1 %vm1895_vm13, %v1927_v32 }
 0x29f   :  { %v1930_v45 = vmul.f32 1.25, %v1834_v16 }
 0x2a1   :  { %2544 = vmatprep.mubr.msk.f32.mxu1 %vm1898_vm14, %v1930_v45 }
 0x2a2   :  { %2545 = vmatmul.mubr.msk.f32.gmra.mxu1 %vm1897_vm15, %v1929_v13 }
 0x2a3   :  { %2570 = vmatprep.mubr.msk.f32.mxu1 %vm1892_vm8, %v1924_v9 }
 0x2a6   :  { %2571 = vmatmul.mubr.msk.f32.vlgmr.msra.gmra.mxu1 %vm1891_vm9, %v1923_v4 }
 0x2a7   :  { %2572 = vmatprep.mubr.msk.f32.mxu1 %vm1894_vm10, %v1926_v31 }
 0x2aa   :  { %2573 = vmatmul.mubr.msk.f32.gmra.mxu1 %vm1893_vm11, %v1925_v18 }
 0x2ab   :  { %2574 = vmatprep.mubr.msk.f32.mxu1 %vm1896_vm12, %v1928_v51 }
 0x2ae   :  { %2575 = vmatmul.mubr.msk.f32.gmra.mxu1 %vm1895_vm13, %v1927_v32 }
 0x2af   :  { %2576 = vmatprep.mubr.msk.f32.mxu1 %vm1898_vm14, %v1930_v45 }
 0x2b2   :  { %2577 = vmatmul.mubr.msk.f32.gmra.mxu1 %vm1897_vm15, %v1929_v13 }
 0x326   :  { %v2142_v61 = vpop.f32.mrf.mxu1  ;;  %v2610_v19 = vpop.f32.mrf.mxu0 }
 0x327   :  { %v2143_v49 = vadd.f32 %v2142_v61, %v3562_v55 }
 0x328   :  { %v2144_v8 = vpop.f32.mrf.mxu1  ;;  %v2611_v43 = vpop.f32.mrf.mxu0 }
 0x329   :  { %2382 = vst [vmem:[#allocation13] sm:$0xff] %v2143_v49  ;;  %v2145_v17 = vadd.f32 %v2144_v8, %v3565_v62  ;;  %v2612_v28 = vadd.f32 %v2611_v43, %v2610_v19 }
 0x32a   :  { %v2148_v12 = vpop.f32.mrf.mxu1  ;;  %v2613_v1 = vpop.f32.mrf.mxu0 }
 0x32b   :  { %2383 = vst [vmem:[#allocation13 + $0x8] sm:$0xff] %v2145_v17  ;;  %v2304_v2 = vadd.f32 %v2612_v28, %v3570_v44  ;;  %v2149_v34 = vadd.f32 %v2148_v12, %v3562_v55 }
 0x32c   :  { %v2150_v25 = vpop.f32.mrf.mxu1  ;;  %v2614_v58 = vpop.f32.mrf.mxu0 }
 0x32d   :  { %2384 = vst [vmem:[#allocation13 + $0x10] sm:$0xff] %v2304_v2  ;;  %2385 = vst [vmem:[#allocation13 + $0x18] sm:$0xff] %v2149_v34  ;;  %v2151_v53 = vadd.f32 %v2150_v25, %v3565_v62  ;;  %v2615_v5 = vadd.f32 %v2614_v58, %v2613_v1 }
 0x32e   :  { %v2154_v24 = vpop.f32.mrf.mxu1  ;;  %v2616_v37 = vpop.f32.mrf.mxu0 }
 0x32f   :  { %2386 = vst [vmem:[#allocation13 + $0x20] sm:$0xff] %v2151_v53  ;;  %v2309_v20 = vadd.f32 %v2615_v5, %v3570_v44  ;;  %v2155_v9 = vadd.f32 %v2154_v24, %v3562_v55 }
 0x330   :  { %v2156_v15 = vpop.f32.mrf.mxu1  ;;  %v2617_v50 = vpop.f32.mrf.mxu0 }
 0x331   :  { %2387 = vst [vmem:[#allocation13 + $0x28] sm:$0xff] %v2309_v20  ;;  %2388 = vst [vmem:[#allocation13 + $0x30] sm:$0xff] %v2155_v9  ;;  %v2157_v4 = vadd.f32 %v2156_v15, %v3565_v62  ;;  %v2618_v42 = vadd.f32 %v2617_v50, %v2616_v37 }
 0x332   :  { %v2160_v35 = vpop.f32.mrf.mxu1  ;;  %v2619_v29 = vpop.f32.mrf.mxu0 }
 0x333   :  { %2389 = vst [vmem:[#allocation13 + $0x38] sm:$0xff] %v2157_v4  ;;  %v2314_v52 = vadd.f32 %v2618_v42, %v3570_v44  ;;  %v2161_v59 = vadd.f32 %v2160_v35, %v3562_v55 }
 0x334   :  { %v2162_v46 = vpop.f32.mrf.mxu1  ;;  %v2620_v6 = vpop.f32.mrf.mxu0 }
 0x335   :  { %2390 = vst [vmem:[#allocation13 + $0x40] sm:$0xff] %v2314_v52  ;;  %2391 = vst [vmem:[#allocation13 + $0x48] sm:$0xff] %v2161_v59  ;;  %v2163_v21 = vadd.f32 %v2162_v46, %v3565_v62  ;;  %v2621_v3 = vadd.f32 %v2620_v6, %v2619_v29 }
 0x336   :  { %v2166_v31 = vpop.f32.mrf.mxu1  ;;  %v2622_v48 = vpop.f32.mrf.mxu0 }
 0x337   :  { %2392 = vst [vmem:[#allocation13 + $0x50] sm:$0xff] %v2163_v21  ;;  %v2319_v39 = vadd.f32 %v2621_v3, %v3570_v44  ;;  %v2167_v23 = vadd.f32 %v2166_v31, %v3562_v55 }
 0x338   :  { %v2168_v18 = vpop.f32.mrf.mxu1  ;;  %v2623_v47 = vpop.f32.mrf.mxu0 }
 0x339   :  { %2393 = vst [vmem:[#allocation13 + $0x58] sm:$0xff] %v2319_v39  ;;  %2394 = vst [vmem:[#allocation13 + $0x60] sm:$0xff] %v2167_v23  ;;  %v2169_v27 = vadd.f32 %v2168_v18, %v3565_v62  ;;  %v2624_v30 = vadd.f32 %v2623_v47, %v2622_v48 }
 0x33a   :  { %v2172_v22 = vpop.f32.mrf.mxu1  ;;  %v2625_v54 = vpop.f32.mrf.mxu0 }
 0x33b   :  { %2395 = vst [vmem:[#allocation13 + $0x68] sm:$0xff] %v2169_v27  ;;  %v2324_v0 = vadd.f32 %v2624_v30, %v3570_v44  ;;  %v2173_v11 = vadd.f32 %v2172_v22, %v3562_v55 }
 0x33c   :  { %v2174_v41 = vpop.f32.mrf.mxu1  ;;  %v2626_v26 = vpop.f32.mrf.mxu0 }
 0x33d   :  { %2396 = vst [vmem:[#allocation13 + $0x70] sm:$0xff] %v2324_v0  ;;  %2397 = vst [vmem:[#allocation13 + $0x78] sm:$0xff] %v2173_v11  ;;  %v2175_v40 = vadd.f32 %v2174_v41, %v3565_v62  ;;  %v2627_v51 = vadd.f32 %v2626_v26, %v2625_v54 }
 0x33e   :  { %v2178_v38 = vpop.f32.mrf.mxu1  ;;  %v2628_v33 = vpop.f32.mrf.mxu0 }
 0x33f   :  { %2398 = vst [vmem:[#allocation13 + $0x80] sm:$0xff] %v2175_v40  ;;  %v2329_v36 = vadd.f32 %v2627_v51, %v3570_v44  ;;  %v2179_v32 = vadd.f32 %v2178_v38, %v3562_v55 }
 0x340   :  { %v2180_v7 = vpop.f32.mrf.mxu1  ;;  %v2629_v10 = vpop.f32.mrf.mxu0 }
 0x341   :  { %2399 = vst [vmem:[#allocation13 + $0x88] sm:$0xff] %v2329_v36  ;;  %2400 = vst [vmem:[#allocation13 + $0x90] sm:$0xff] %v2179_v32  ;;  %v2181_v16 = vadd.f32 %v2180_v7, %v3565_v62  ;;  %v2630_v45 = vadd.f32 %v2629_v10, %v2628_v33 }
 0x342   :  { %v2184_v13 = vpop.f32.mrf.mxu1  ;;  %v2631_v57 = vpop.f32.mrf.mxu0 }
 0x343   :  { %2401 = vst [vmem:[#allocation13 + $0x98] sm:$0xff] %v2181_v16  ;;  %v2334_v56 = vadd.f32 %v2630_v45, %v3570_v44  ;;  %v2185_v60 = vadd.f32 %v2184_v13, %v3562_v55 }
 0x344   :  { %v2186_v61 = vpop.f32.mrf.mxu1  ;;  %v2632_v19 = vpop.f32.mrf.mxu0 }
 0x345   :  { %2402 = vst [vmem:[#allocation13 + $0xa0] sm:$0xff] %v2334_v56  ;;  %2403 = vst [vmem:[#allocation13 + $0xa8] sm:$0xff] %v2185_v60  ;;  %v2187_v49 = vadd.f32 %v2186_v61, %v3565_v62  ;;  %v2633_v14 = vadd.f32 %v2632_v19, %v2631_v57 }
 0x346   :  { %v2190_v63 = vpop.f32.mrf.mxu1  ;;  %v2634_v8 = vpop.f32.mrf.mxu0 }
 0x347   :  { %2404 = vst [vmem:[#allocation13 + $0xb0] sm:$0xff] %v2187_v49  ;;  %v2339_v43 = vadd.f32 %v2633_v14, %v3570_v44  ;;  %v2191_v17 = vadd.f32 %v2190_v63, %v3562_v55 }
 0x348   :  { %v2192_v28 = vpop.f32.mrf.mxu1  ;;  %v2635_v12 = vpop.f32.mrf.mxu0 }
 0x349   :  { %2405 = vst [vmem:[#allocation13 + $0xb8] sm:$0xff] %v2339_v43  ;;  %2406 = vst [vmem:[#allocation13 + $0xc0] sm:$0xff] %v2191_v17  ;;  %v2193_v1 = vadd.f32 %v2192_v28, %v3565_v62  ;;  %v2636_v2 = vadd.f32 %v2635_v12, %v2634_v8 }
 0x34a   :  { %v2196_v34 = vpop.f32.mrf.mxu1  ;;  %v2637_v25 = vpop.f32.mrf.mxu0 }
 0x34b   :  { %2407 = vst [vmem:[#allocation13 + $0xc8] sm:$0xff] %v2193_v1  ;;  %v2344_v58 = vadd.f32 %v2636_v2, %v3570_v44  ;;  %v2197_v53 = vadd.f32 %v2196_v34, %v3562_v55 }
 0x34c   :  { %v2198_v5 = vpop.f32.mrf.mxu1  ;;  %v2638_v24 = vpop.f32.mrf.mxu0 }
 0x34d   :  { %2408 = vst [vmem:[#allocation13 + $0xd0] sm:$0xff] %v2344_v58  ;;  %2409 = vst [vmem:[#allocation13 + $0xd8] sm:$0xff] %v2197_v53  ;;  %v2199_v37 = vadd.f32 %v2198_v5, %v3565_v62  ;;  %v2639_v20 = vadd.f32 %v2638_v24, %v2637_v25 }
 0x34e   :  { %v2202_v9 = vpop.f32.mrf.mxu1  ;;  %v2640_v15 = vpop.f32.mrf.mxu0 }
 0x34f   :  { %2410 = vst [vmem:[#allocation13 + $0xe0] sm:$0xff] %v2199_v37  ;;  %v2349_v50 = vadd.f32 %v2639_v20, %v3570_v44  ;;  %v2203_v4 = vadd.f32 %v2202_v9, %v3562_v55 }
 0x350   :  { %v2204_v42 = vpop.f32.mrf.mxu1  ;;  %v2641_v35 = vpop.f32.mrf.mxu0 }
 0x351   :  { %2411 = vst [vmem:[#allocation13 + $0xe8] sm:$0xff] %v2349_v50  ;;  %2412 = vst [vmem:[#allocation13 + $0xf0] sm:$0xff] %v2203_v4  ;;  %v2205_v29 = vadd.f32 %v2204_v42, %v3565_v62  ;;  %v2642_v52 = vadd.f32 %v2641_v35, %v2640_v15 }
 0x352   :  { %v2208_v59 = vpop.f32.mrf.mxu1  ;;  %v2643_v46 = vpop.f32.mrf.mxu0 }
 0x353   :  { %2413 = vst [vmem:[#allocation13 + $0xf8] sm:$0xff] %v2205_v29  ;;  %v2354_v6 = vadd.f32 %v2642_v52, %v3570_v44  ;;  %v2209_v21 = vadd.f32 %v2208_v59, %v3562_v55 }
 0x354   :  { %v2210_v3 = vpop.f32.mrf.mxu1  ;;  %v2644_v31 = vpop.f32.mrf.mxu0 }
 0x355   :  { %2414 = vst [vmem:[#allocation13 + $0x100] sm:$0xff] %v2354_v6  ;;  %2415 = vst [vmem:[#allocation13 + $0x108] sm:$0xff] %v2209_v21  ;;  %v2211_v48 = vadd.f32 %v2210_v3, %v3565_v62  ;;  %v2645_v39 = vadd.f32 %v2644_v31, %v2643_v46 }
 0x356   :  { %v2214_v23 = vpop.f32.mrf.mxu1 }
 0x357   :  { %2416 = vst [vmem:[#allocation13 + $0x110] sm:$0xff] %v2211_v48  ;;  %v2359_v18 = vadd.f32 %v2645_v39, %v3570_v44  ;;  %v2215_v47 = vadd.f32 %v2214_v23, %v3562_v55 }
 0x358   :  { %v2216_v27 = vpop.f32.mrf.mxu1 }
 0x359   :  { %2417 = vst [vmem:[#allocation13 + $0x118] sm:$0xff] %v2359_v18  ;;  %2418 = vst [vmem:[#allocation13 + $0x120] sm:$0xff] %v2215_v47  ;;  %v2217_v30 = vadd.f32 %v2216_v27, %v3565_v62 }
 0x35a   :  { %v2220_v22 = vpop.f32.mrf.mxu1 }
 0x35b   :  { %2419 = vst [vmem:[#allocation13 + $0x128] sm:$0xff] %v2217_v30  ;;  %v2221_v54 = vadd.f32 %v2220_v22, %v3562_v55 }
 0x35c   :  { %v2222_v0 = vpop.f32.mrf.mxu1 }
 0x35d   :  { %2421 = vst [vmem:[#allocation13 + $0x138] sm:$0xff] %v2221_v54  ;;  %v2223_v11 = vadd.f32 %v2222_v0, %v3565_v62 }
 0x35e   :  { %v2226_v41 = vpop.f32.mrf.mxu1 }
 0x35f   :  { %2422 = vst [vmem:[#allocation13 + $0x140] sm:$0xff] %v2223_v11  ;;  %v2227_v26 = vadd.f32 %v2226_v41, %v3562_v55 }
 0x360   :  { %v2228_v40 = vpop.f32.mrf.mxu1 }
 0x361   :  { %2424 = vst [vmem:[#allocation13 + $0x150] sm:$0xff] %v2227_v26  ;;  %v2229_v51 = vadd.f32 %v2228_v40, %v3565_v62 }
 0x362   :  { %v2232_v38 = vpop.f32.mrf.mxu1 }
 0x363   :  { %2425 = vst [vmem:[#allocation13 + $0x158] sm:$0xff] %v2229_v51  ;;  %v2233_v33 = vadd.f32 %v2232_v38, %v3562_v55 }
 0x364   :  { %v2234_v36 = vpop.f32.mrf.mxu1 }
 0x365   :  { %2427 = vst [vmem:[#allocation13 + $0x168] sm:$0xff] %v2233_v33  ;;  %v2235_v32 = vadd.f32 %v2234_v36, %v3565_v62 }
 0x366   :  { %v2646_v7 = vpop.f32.mrf.mxu1 }
 0x367   :  { %2428 = vst [vmem:[#allocation13 + $0x170] sm:$0xff] %v2235_v32 }
 0x368   :  { %v2647_v10 = vpop.f32.mrf.mxu1 }
 0x369   :  { %v2648_v16 = vadd.f32 %v2647_v10, %v2646_v7 }
 0x36a   :  { %v2649_v45 = vpop.f32.mrf.mxu1 }
 0x36b   :  { %v2364_v13 = vadd.f32 %v2648_v16, %v3570_v44 }
 0x36c   :  { %v2650_v57 = vpop.f32.mrf.mxu1 }
 0x36d   :  { %2420 = vst [vmem:[#allocation13 + $0x130] sm:$0xff] %v2364_v13  ;;  %v2651_v56 = vadd.f32 %v2650_v57, %v2649_v45 }
 0x36e   :  { %v2652_v60 = vpop.f32.mrf.mxu1 }
 0x36f   :  { %v2369_v61 = vadd.f32 %v2651_v56, %v3570_v44 }
 0x370   :  { %v2653_v19 = vpop.f32.mrf.mxu1 }
 0x371   :  { %2423 = vst [vmem:[#allocation13 + $0x148] sm:$0xff] %v2369_v61  ;;  %v2654_v55 = vadd.f32 %v2653_v19, %v2652_v60 }
 0x372   :  { %v2655_v49 = vpop.f32.mrf.mxu1 }
 0x373   :  { %v2374_v14 = vadd.f32 %v2654_v55, %v3570_v44 }
 0x374   :  { %v2656_v62 = vpop.f32.mrf.mxu1 }
 0x375   :  { %2426 = vst [vmem:[#allocation13 + $0x160] sm:$0xff] %v2374_v14  ;;  %v2657_v63 = vadd.f32 %v2656_v62, %v2655_v49 }
 0x377   :  { %v2379_v8 = vadd.f32 %v2657_v63, %v3570_v44 }
 0x379   :  { %2429 = vst [vmem:[#allocation13 + $0x178] sm:$0xff] %v2379_v8 }
 0x37a   :  { %2835 = shalt.err (!%p2832_p6)
}
 0x37b   :  { %2441 = dma.vmem_to_hbm [thread:$0]  %s2436_s22, 6144, %s3634_s9, [#allocation4], %s2859_s1, %s2859_s1, %s2860_s24  }
 0x37c   :  { %2852 = dma.done.wait [#allocation4], 6144  }
 0x37d   :  { %2853 = vsyncadd [#allocation4], 4294961152 }
 0x37e   :  { %2445 = vsyncpa [#allocation3], 1 }
 0x37f   :  { %2446 = vsyncpa [#allocation6], 1 }
 0x380   :  { %2447 = vsyncpa [#allocation9], 1 }
 0x381   :  { %2448 = vsyncpa [#allocation12], 1 }
 0x382   :  { %2449 = vsyncpa [#allocation4], 1 }

</bundles_post_ra>
